<compile_context>
chip_gen: v6e
topology: v6e:2x2x1
jax: 0.10.0
libtpu: 0.0.40
codegen_flags: <defaults>
</compile_context>

<pallas_src>
import functools

import numpy as np
import jax
import jax.numpy as jnp
from jax.experimental import pallas as pl
from jax.experimental.pallas import tpu as pltpu

EPS = 1e-5  # PyTorch InstanceNorm3d default (affine=False, biased variance)


# ----------------------------------------------------------------------------
# In-kernel helpers
# ----------------------------------------------------------------------------
def _in_relu(a, inv_n):
    """One-pass InstanceNorm (per row = per channel, over lanes) + ReLU.

    a: (C, N) float32 for a single batch instance.
    """
    s1 = jnp.sum(a, axis=1, keepdims=True)
    s2 = jnp.sum(a * a, axis=1, keepdims=True)
    mean = s1 * inv_n
    var = jnp.maximum(s2 * inv_n - mean * mean, 0.0)  # guard tiny cancellation
    y = (a - mean) * jax.lax.rsqrt(var + EPS)
    return jnp.maximum(y, 0.0)


def _conv3_via_slab(mask_ref, xpad_ref, slab_ref, w2d, x_f32, *, D, H, W, C):
    """3x3x3 conv (padding 1) on one instance as a single K=27*C matmul.

    x_f32: (C, N) float32.  Returns (C, N) float32 (pre-norm).
    """
    N = D * H * W
    HW = H * W
    PAD = HW + W + 1  # max |linear tap offset|

    # Stage the instance into a flat-padded VMEM scratch (replaces jnp.pad).
    xpad_ref[:, PAD:PAD + N] = x_f32

    # Build the (27*C, N) im2col slab: each tap is a static lane-offset slice
    # of the padded scratch (an XLU lane shift), masked at volume boundaries.
    for kd in range(3):
        for kh in range(3):
            for kw in range(3):
                tap = (kd * 3 + kh) * 3 + kw
                off = (kd - 1) * HW + (kh - 1) * W + (kw - 1)
                m = mask_ref[tap:tap + 1, :] != 0.0              # (1, N) bool
                shifted = xpad_ref[:, PAD + off:PAD + off + N]    # (C, N)
                slab_ref[tap * C:(tap + 1) * C, :] = jnp.where(m, shifted, 0.0)

    # One MXU matmul: (C, 27C) @ (27C, N) -> lane-dense (C, N).
    return jnp.dot(w2d, slab_ref[...], preferred_element_type=jnp.float32)


# ----------------------------------------------------------------------------
# Kernel 1: conv3x3x3 + IN + ReLU, applied twice (proj/norm and proj2/norm2)
# ----------------------------------------------------------------------------
def double_conv3_kernel(mask_ref, x_ref, w_ref, o_ref, xpad_ref, slab_ref,
                        *, D, H, W, C):
    N = D * H * W
    inv_n = 1.0 / N
    cur = x_ref[0].astype(jnp.float32)  # (C, N)
    for stage in range(2):
        acc = _conv3_via_slab(mask_ref, xpad_ref, slab_ref, w_ref[stage], cur,
                              D=D, H=H, W=W, C=C)
        # Bias omitted: cancelled exactly by the affine-free InstanceNorm.
        cur = _in_relu(acc, inv_n)
    o_ref[0] = cur.astype(o_ref.dtype)


def double_conv3_in_relu(xf, w12, masks, D, H, W, *, out_dtype):
    B, C, N = xf.shape
    PAD = H * W + W + 1
    kern = functools.partial(double_conv3_kernel, D=D, H=H, W=W, C=C)
    return pl.pallas_call(
        kern,
        out_shape=jax.ShapeDtypeStruct((B, C, N), out_dtype),
        grid=(B,),
        in_specs=[
            pl.BlockSpec((27, N), lambda b: (0, 0)),            # tap masks
            pl.BlockSpec((1, C, N), lambda b: (b, 0, 0)),       # input instance
            pl.BlockSpec((2, C, 27 * C), lambda b: (0, 0, 0)),  # both weights
        ],
        out_specs=pl.BlockSpec((1, C, N), lambda b: (b, 0, 0)),
        scratch_shapes=[
            pltpu.VMEM((C, N + 2 * PAD), jnp.float32),   # flat-padded instance
            pltpu.VMEM((27 * C, N), jnp.float32),        # im2col slab
        ],
        compiler_params=pltpu.CompilerParams(
            dimension_semantics=("parallel",)),
    )(masks, xf, w12)


# ----------------------------------------------------------------------------
# Kernel 2 (fused final stage):
#   x2 = ReLU(IN(x @ w3));  y = ReLU(IN((x1 + x2) @ w4)) + x
# ----------------------------------------------------------------------------
def final_fused_kernel(x1_ref, x_ref, w3_ref, w4_ref, o_ref, *, inv_n):
    x = x_ref[0].astype(jnp.float32)    # (C, N) original input == residual
    x1 = x1_ref[0].astype(jnp.float32)  # (C, N) output of the conv3 chain
    # proj3 + norm3 + relu (1x1x1 conv == (C,C)@(C,N) matmul), bias cancelled.
    x2 = _in_relu(jnp.dot(w3_ref[...], x, preferred_element_type=jnp.float32),
                  inv_n)
    s = x1 + x2
    # proj4 + norm4 + relu + residual
    y = _in_relu(jnp.dot(w4_ref[...], s, preferred_element_type=jnp.float32),
                 inv_n)
    o_ref[0] = (y + x).astype(o_ref.dtype)


def final_fused(x1, xf, w3, w4):
    B, C, N = xf.shape
    kern = functools.partial(final_fused_kernel, inv_n=1.0 / N)
    return pl.pallas_call(
        kern,
        out_shape=jax.ShapeDtypeStruct((B, C, N), jnp.float32),
        grid=(B,),
        in_specs=[
            pl.BlockSpec((1, C, N), lambda b: (b, 0, 0)),  # x1 (bf16 ok)
            pl.BlockSpec((1, C, N), lambda b: (b, 0, 0)),  # x (residual)
            pl.BlockSpec((C, C), lambda b: (0, 0)),        # w3
            pl.BlockSpec((C, C), lambda b: (0, 0)),        # w4
        ],
        out_specs=pl.BlockSpec((1, C, N), lambda b: (b, 0, 0)),
        compiler_params=pltpu.CompilerParams(
            dimension_semantics=("parallel",)),
    )(x1, xf, w3, w4)


# ----------------------------------------------------------------------------
# Host-side helpers
# ----------------------------------------------------------------------------
def build_tap_masks(D, H, W):
    """(27, N) float32 validity masks for the 27 taps of a padded 3x3x3 conv."""
    d = np.arange(D)[:, None, None]
    h = np.arange(H)[None, :, None]
    w = np.arange(W)[None, None, :]
    rows = []
    for kd in range(3):
        for kh in range(3):
            for kw in range(3):
                dd, dh, dw = kd - 1, kh - 1, kw - 1
                ok = ((d + dd >= 0) & (d + dd < D) &
                      (h + dh >= 0) & (h + dh < H) &
                      (w + dw >= 0) & (w + dw < W))
                rows.append(ok.reshape(-1))
    return jnp.asarray(np.stack(rows, axis=0).astype(np.float32))


def _conv3_weight_to_2d(w_oidhw):
    """(O, I, 3, 3, 3) PyTorch conv weight -> (O, 27*I), tap-major, I-minor."""
    O, I = w_oidhw.shape[0], w_oidhw.shape[1]
    return jnp.transpose(w_oidhw, (0, 2, 3, 4, 1)).reshape(O, 27 * I)


# ----------------------------------------------------------------------------
# HGDC forward (native NCDHW; spatial volume flattened onto the lane axis)
# ----------------------------------------------------------------------------
def hgdc_forward(x_ncdhw, params, intermediate_dtype=jnp.bfloat16):
    B, C, D, H, W = x_ncdhw.shape
    N = D * H * W
    xf = x_ncdhw.reshape(B, C, N).astype(jnp.float32)
    masks = build_tap_masks(D, H, W)
    w12 = jnp.stack([_conv3_weight_to_2d(params["w1"]),
                     _conv3_weight_to_2d(params["w2"])], axis=0)
    # proj/norm/relu -> proj2/norm2/relu, fused in one kernel; x1 stored bf16.
    x1 = double_conv3_in_relu(xf, w12, masks, D, H, W,
                              out_dtype=intermediate_dtype)
    # proj3/norm3/relu branch + proj4/norm4/relu + residual, fused.
    out = final_fused(x1, xf, params["w3"], params["w4"])
    return out.reshape(B, C, D, H, W)


# ----------------------------------------------------------------------------
# Pure-JAX reference (mirrors the PyTorch module, biases included)
# ----------------------------------------------------------------------------
def hgdc_reference(x, params):
    B, C, D, H, W = x.shape

    def inorm_relu(y):
        m = jnp.mean(y, axis=(2, 3, 4), keepdims=True)
        v = jnp.mean((y - m) ** 2, axis=(2, 3, 4), keepdims=True)
        return jnp.maximum((y - m) * jax.lax.rsqrt(v + EPS), 0.0)

    def conv3(y, w, b):
        out = jax.lax.conv_general_dilated(
            y, w, window_strides=(1, 1, 1),
            padding=((1, 1), (1, 1), (1, 1)),
            dimension_numbers=("NCDHW", "OIDHW", "NCDHW"))
        return out + b.reshape(1, C, 1, 1, 1)

    def conv1(y, w, b):
        return jnp.einsum("oc,bcdhw->bodhw", w, y) + b.reshape(1, C, 1, 1, 1)

    x1 = inorm_relu(conv3(x, params["w1"], params["b1"]))
    x1 = inorm_relu(conv3(x1, params["w2"], params["b2"]))
    x2 = inorm_relu(conv1(x, params["w3"], params["b3"]))
    out = inorm_relu(conv1(x1 + x2, params["w4"], params["b4"]))
    return out + x


# ----------------------------------------------------------------------------
# Deterministic synthetic parameters (shapes follow nn.Conv3d in __init__)
# ----------------------------------------------------------------------------
def init_params(C, key):
    ks = jax.random.split(key, 8)
    s3, s1 = 0.1, 0.2  # stand-in for kaiming-uniform; deterministic synthetic
    return {
        "w1": s3 * jax.random.normal(ks[0], (C, C, 3, 3, 3), jnp.float32),
        "b1": 0.01 * jax.random.normal(ks[1], (C,), jnp.float32),
        "w2": s3 * jax.random.normal(ks[2], (C, C, 3, 3, 3), jnp.float32),
        "b2": 0.01 * jax.random.normal(ks[3], (C,), jnp.float32),
        "w3": s1 * jax.random.normal(ks[4], (C, C), jnp.float32),
        "b3": 0.01 * jax.random.normal(ks[5], (C,), jnp.float32),
        "w4": s1 * jax.random.normal(ks[6], (C, C), jnp.float32),
        "b4": 0.01 * jax.random.normal(ks[7], (C,), jnp.float32),
    }


if __name__ == "__main__":
    B, C, D, H, W = 2, 4, 8, 8, 8
    x = jax.random.normal(jax.random.PRNGKey(0), (B, C, D, H, W), jnp.float32)
    params = init_params(C, jax.random.PRNGKey(42))

    out = jax.block_until_ready(hgdc_forward(x, params))
    assert out.shape == (B, C, D, H, W), out.shape
    assert bool(jnp.all(jnp.isfinite(out)))

    ref = jax.block_until_ready(hgdc_reference(x, params))
    # Tolerance covers the bf16 storage of the x1 intermediate (all math f32).
    assert bool(jnp.allclose(out, ref, atol=5e-2, rtol=5e-2)), (
        float(jnp.max(jnp.abs(out - ref))))

    print("KERNEL_OK")
</pallas_src>

<mosaic_0001>
module attributes {stable_mosaic.version = 11 : i64} {
  func.func @double_conv3_kernel(%arg0: i32, %arg1: memref<27x512xf32, #tpu.memory_space<vmem>>, %arg2: memref<1x4x512xf32, #tpu.memory_space<vmem>>, %arg3: memref<2x4x108xf32, #tpu.memory_space<vmem>>, %arg4: memref<1x4x512xbf16, #tpu.memory_space<vmem>>, %arg5: memref<4x658xf32, #tpu.memory_space<vmem>>, %arg6: memref<108x512xf32, #tpu.memory_space<vmem>>) attributes {dimension_semantics = [#tpu.dimension_semantics<parallel>], iteration_bounds = array<i64: 2>, scalar_prefetch = 0 : i64, scratch_operands = 2 : i64, tpu.core_type = #tpu.core_type<tc>, window_params = [{pipeline_mode = #tpu.pipeline_mode<synchronous>, transform_indices = @transform_0, window_bounds = array<i64: 27, 512>}, {transform_indices = @transform_1, window_bounds = array<i64: 1, 4, 512>}, {pipeline_mode = #tpu.pipeline_mode<synchronous>, transform_indices = @transform_2, window_bounds = array<i64: 2, 4, 108>}, {transform_indices = @transform_3, window_bounds = array<i64: 1, 4, 512>}]} {
    %c0 = arith.constant 0 : index
    %c0_0 = arith.constant 0 : index
    %c0_1 = arith.constant 0 : index
    %0 = vector.load %arg2[%c0, %c0_0, %c0_1] : memref<1x4x512xf32, #tpu.memory_space<vmem>>, vector<1x4x512xf32>
    %1 = vector.shape_cast %0 : vector<1x4x512xf32> to vector<4x512xf32>
    %c0_2 = arith.constant 0 : index
    %c0_3 = arith.constant 0 : index
    %c0_4 = arith.constant 0 : index
    %2 = vector.load %arg3[%c0_2, %c0_3, %c0_4] : memref<2x4x108xf32, #tpu.memory_space<vmem>>, vector<1x4x108xf32>
    %3 = vector.shape_cast %2 : vector<1x4x108xf32> to vector<4x108xf32>
    %c0_5 = arith.constant 0 : index
    %c73 = arith.constant 73 : index
    %4 = vector.load %arg5[%c0_5, %c73] : memref<4x658xf32, #tpu.memory_space<vmem>>, vector<4x512xf32>
    tpu.vector_store %arg5[%c0_5, %c73], %1 {strides = array<i32>} : memref<4x658xf32, #tpu.memory_space<vmem>>, vector<4x512xf32>,
    %c0_6 = arith.constant 0 : index
    %c0_7 = arith.constant 0 : index
    %5 = vector.load %arg1[%c0_6, %c0_7] : memref<27x512xf32, #tpu.memory_space<vmem>>, vector<1x512xf32>
    %cst = arith.constant 0.000000e+00 : f32
    %6 = vector.broadcast %cst : f32 to vector<1x512xf32>
    %7 = arith.cmpf one, %5, %6 : vector<1x512xf32>
    %c0_8 = arith.constant 0 : index
    %c0_9 = arith.constant 0 : index
    %8 = vector.load %arg5[%c0_8, %c0_9] : memref<4x658xf32, #tpu.memory_space<vmem>>, vector<4x512xf32>
    %cst_10 = arith.constant 0.000000e+00 : f32
    %9 = vector.shape_cast %7 : vector<1x512xi1> to vector<1x512xi1>
    %10 = vector.broadcast %9 : vector<1x512xi1> to vector<4x512xi1>
    %11 = vector.broadcast %cst_10 : f32 to vector<4x512xf32>
    %12 = arith.select %10, %8, %11 : vector<4x512xi1>, vector<4x512xf32>
    %c0_11 = arith.constant 0 : index
    %c0_12 = arith.constant 0 : index
    %13 = vector.load %arg6[%c0_11, %c0_12] : memref<108x512xf32, #tpu.memory_space<vmem>>, vector<4x512xf32>
    tpu.vector_store %arg6[%c0_11, %c0_12], %12 {strides = array<i32>} : memref<108x512xf32, #tpu.memory_space<vmem>>, vector<4x512xf32>,
    %c1 = arith.constant 1 : index
    %c0_13 = arith.constant 0 : index
    %14 = vector.load %arg1[%c1, %c0_13] : memref<27x512xf32, #tpu.memory_space<vmem>>, vector<1x512xf32>
    %cst_14 = arith.constant 0.000000e+00 : f32
    %15 = vector.broadcast %cst_14 : f32 to vector<1x512xf32>
    %16 = arith.cmpf one, %14, %15 : vector<1x512xf32>
    %c0_15 = arith.constant 0 : index
    %c1_16 = arith.constant 1 : index
    %17 = vector.load %arg5[%c0_15, %c1_16] : memref<4x658xf32, #tpu.memory_space<vmem>>, vector<4x512xf32>
    %cst_17 = arith.constant 0.000000e+00 : f32
    %18 = vector.shape_cast %16 : vector<1x512xi1> to vector<1x512xi1>
    %19 = vector.broadcast %18 : vector<1x512xi1> to vector<4x512xi1>
    %20 = vector.broadcast %cst_17 : f32 to vector<4x512xf32>
    %21 = arith.select %19, %17, %20 : vector<4x512xi1>, vector<4x512xf32>
    %c4 = arith.constant 4 : index
    %c0_18 = arith.constant 0 : index
    %22 = vector.load %arg6[%c4, %c0_18] : memref<108x512xf32, #tpu.memory_space<vmem>>, vector<4x512xf32>
    tpu.vector_store %arg6[%c4, %c0_18], %21 {strides = array<i32>} : memref<108x512xf32, #tpu.memory_space<vmem>>, vector<4x512xf32>,
    %c2 = arith.constant 2 : index
    %c0_19 = arith.constant 0 : index
    %23 = vector.load %arg1[%c2, %c0_19] : memref<27x512xf32, #tpu.memory_space<vmem>>, vector<1x512xf32>
    %cst_20 = arith.constant 0.000000e+00 : f32
    %24 = vector.broadcast %cst_20 : f32 to vector<1x512xf32>
    %25 = arith.cmpf one, %23, %24 : vector<1x512xf32>
    %c0_21 = arith.constant 0 : index
    %c2_22 = arith.constant 2 : index
    %26 = vector.load %arg5[%c0_21, %c2_22] : memref<4x658xf32, #tpu.memory_space<vmem>>, vector<4x512xf32>
    %cst_23 = arith.constant 0.000000e+00 : f32
    %27 = vector.shape_cast %25 : vector<1x512xi1> to vector<1x512xi1>
    %28 = vector.broadcast %27 : vector<1x512xi1> to vector<4x512xi1>
    %29 = vector.broadcast %cst_23 : f32 to vector<4x512xf32>
    %30 = arith.select %28, %26, %29 : vector<4x512xi1>, vector<4x512xf32>
    %c8 = arith.constant 8 : index
    %c0_24 = arith.constant 0 : index
    %31 = vector.load %arg6[%c8, %c0_24] : memref<108x512xf32, #tpu.memory_space<vmem>>, vector<4x512xf32>
    tpu.vector_store %arg6[%c8, %c0_24], %30 {strides = array<i32>} : memref<108x512xf32, #tpu.memory_space<vmem>>, vector<4x512xf32>,
    %c3 = arith.constant 3 : index
    %c0_25 = arith.constant 0 : index
    %32 = vector.load %arg1[%c3, %c0_25] : memref<27x512xf32, #tpu.memory_space<vmem>>, vector<1x512xf32>
    %cst_26 = arith.constant 0.000000e+00 : f32
    %33 = vector.broadcast %cst_26 : f32 to vector<1x512xf32>
    %34 = arith.cmpf one, %32, %33 : vector<1x512xf32>
    %c0_27 = arith.constant 0 : index
    %c8_28 = arith.constant 8 : index
    %35 = vector.load %arg5[%c0_27, %c8_28] : memref<4x658xf32, #tpu.memory_space<vmem>>, vector<4x512xf32>
    %cst_29 = arith.constant 0.000000e+00 : f32
    %36 = vector.shape_cast %34 : vector<1x512xi1> to vector<1x512xi1>
    %37 = vector.broadcast %36 : vector<1x512xi1> to vector<4x512xi1>
    %38 = vector.broadcast %cst_29 : f32 to vector<4x512xf32>
    %39 = arith.select %37, %35, %38 : vector<4x512xi1>, vector<4x512xf32>
    %c12 = arith.constant 12 : index
    %c0_30 = arith.constant 0 : index
    %40 = vector.load %arg6[%c12, %c0_30] : memref<108x512xf32, #tpu.memory_space<vmem>>, vector<4x512xf32>
    tpu.vector_store %arg6[%c12, %c0_30], %39 {strides = array<i32>} : memref<108x512xf32, #tpu.memory_space<vmem>>, vector<4x512xf32>,
    %c4_31 = arith.constant 4 : index
    %c0_32 = arith.constant 0 : index
    %41 = vector.load %arg1[%c4_31, %c0_32] : memref<27x512xf32, #tpu.memory_space<vmem>>, vector<1x512xf32>
    %cst_33 = arith.constant 0.000000e+00 : f32
    %42 = vector.broadcast %cst_33 : f32 to vector<1x512xf32>
    %43 = arith.cmpf one, %41, %42 : vector<1x512xf32>
    %c0_34 = arith.constant 0 : index
    %c9 = arith.constant 9 : index
    %44 = vector.load %arg5[%c0_34, %c9] : memref<4x658xf32, #tpu.memory_space<vmem>>, vector<4x512xf32>
    %cst_35 = arith.constant 0.000000e+00 : f32
    %45 = vector.shape_cast %43 : vector<1x512xi1> to vector<1x512xi1>
    %46 = vector.broadcast %45 : vector<1x512xi1> to vector<4x512xi1>
    %47 = vector.broadcast %cst_35 : f32 to vector<4x512xf32>
    %48 = arith.select %46, %44, %47 : vector<4x512xi1>, vector<4x512xf32>
    %c16 = arith.constant 16 : index
    %c0_36 = arith.constant 0 : index
    %49 = vector.load %arg6[%c16, %c0_36] : memref<108x512xf32, #tpu.memory_space<vmem>>, vector<4x512xf32>
    tpu.vector_store %arg6[%c16, %c0_36], %48 {strides = array<i32>} : memref<108x512xf32, #tpu.memory_space<vmem>>, vector<4x512xf32>,
    %c5 = arith.constant 5 : index
    %c0_37 = arith.constant 0 : index
    %50 = vector.load %arg1[%c5, %c0_37] : memref<27x512xf32, #tpu.memory_space<vmem>>, vector<1x512xf32>
    %cst_38 = arith.constant 0.000000e+00 : f32
    %51 = vector.broadcast %cst_38 : f32 to vector<1x512xf32>
    %52 = arith.cmpf one, %50, %51 : vector<1x512xf32>
    %c0_39 = arith.constant 0 : index
    %c10 = arith.constant 10 : index
    %53 = vector.load %arg5[%c0_39, %c10] : memref<4x658xf32, #tpu.memory_space<vmem>>, vector<4x512xf32>
    %cst_40 = arith.constant 0.000000e+00 : f32
    %54 = vector.shape_cast %52 : vector<1x512xi1> to vector<1x512xi1>
    %55 = vector.broadcast %54 : vector<1x512xi1> to vector<4x512xi1>
    %56 = vector.broadcast %cst_40 : f32 to vector<4x512xf32>
    %57 = arith.select %55, %53, %56 : vector<4x512xi1>, vector<4x512xf32>
    %c20 = arith.constant 20 : index
    %c0_41 = arith.constant 0 : index
    %58 = vector.load %arg6[%c20, %c0_41] : memref<108x512xf32, #tpu.memory_space<vmem>>, vector<4x512xf32>
    tpu.vector_store %arg6[%c20, %c0_41], %57 {strides = array<i32>} : memref<108x512xf32, #tpu.memory_space<vmem>>, vector<4x512xf32>,
    %c6 = arith.constant 6 : index
    %c0_42 = arith.constant 0 : index
    %59 = vector.load %arg1[%c6, %c0_42] : memref<27x512xf32, #tpu.memory_space<vmem>>, vector<1x512xf32>
    %cst_43 = arith.constant 0.000000e+00 : f32
    %60 = vector.broadcast %cst_43 : f32 to vector<1x512xf32>
    %61 = arith.cmpf one, %59, %60 : vector<1x512xf32>
    %c0_44 = arith.constant 0 : index
    %c16_45 = arith.constant 16 : index
    %62 = vector.load %arg5[%c0_44, %c16_45] : memref<4x658xf32, #tpu.memory_space<vmem>>, vector<4x512xf32>
    %cst_46 = arith.constant 0.000000e+00 : f32
    %63 = vector.shape_cast %61 : vector<1x512xi1> to vector<1x512xi1>
    %64 = vector.broadcast %63 : vector<1x512xi1> to vector<4x512xi1>
    %65 = vector.broadcast %cst_46 : f32 to vector<4x512xf32>
    %66 = arith.select %64, %62, %65 : vector<4x512xi1>, vector<4x512xf32>
    %c24 = arith.constant 24 : index
    %c0_47 = arith.constant 0 : index
    %67 = vector.load %arg6[%c24, %c0_47] : memref<108x512xf32, #tpu.memory_space<vmem>>, vector<4x512xf32>
    tpu.vector_store %arg6[%c24, %c0_47], %66 {strides = array<i32>} : memref<108x512xf32, #tpu.memory_space<vmem>>, vector<4x512xf32>,
    %c7 = arith.constant 7 : index
    %c0_48 = arith.constant 0 : index
    %68 = vector.load %arg1[%c7, %c0_48] : memref<27x512xf32, #tpu.memory_space<vmem>>, vector<1x512xf32>
    %cst_49 = arith.constant 0.000000e+00 : f32
    %69 = vector.broadcast %cst_49 : f32 to vector<1x512xf32>
    %70 = arith.cmpf one, %68, %69 : vector<1x512xf32>
    %c0_50 = arith.constant 0 : index
    %c17 = arith.constant 17 : index
    %71 = vector.load %arg5[%c0_50, %c17] : memref<4x658xf32, #tpu.memory_space<vmem>>, vector<4x512xf32>
    %cst_51 = arith.constant 0.000000e+00 : f32
    %72 = vector.shape_cast %70 : vector<1x512xi1> to vector<1x512xi1>
    %73 = vector.broadcast %72 : vector<1x512xi1> to vector<4x512xi1>
    %74 = vector.broadcast %cst_51 : f32 to vector<4x512xf32>
    %75 = arith.select %73, %71, %74 : vector<4x512xi1>, vector<4x512xf32>
    %c28 = arith.constant 28 : index
    %c0_52 = arith.constant 0 : index
    %76 = vector.load %arg6[%c28, %c0_52] : memref<108x512xf32, #tpu.memory_space<vmem>>, vector<4x512xf32>
    tpu.vector_store %arg6[%c28, %c0_52], %75 {strides = array<i32>} : memref<108x512xf32, #tpu.memory_space<vmem>>, vector<4x512xf32>,
    %c8_53 = arith.constant 8 : index
    %c0_54 = arith.constant 0 : index
    %77 = vector.load %arg1[%c8_53, %c0_54] : memref<27x512xf32, #tpu.memory_space<vmem>>, vector<1x512xf32>
    %cst_55 = arith.constant 0.000000e+00 : f32
    %78 = vector.broadcast %cst_55 : f32 to vector<1x512xf32>
    %79 = arith.cmpf one, %77, %78 : vector<1x512xf32>
    %c0_56 = arith.constant 0 : index
    %c18 = arith.constant 18 : index
    %80 = vector.load %arg5[%c0_56, %c18] : memref<4x658xf32, #tpu.memory_space<vmem>>, vector<4x512xf32>
    %cst_57 = arith.constant 0.000000e+00 : f32
    %81 = vector.shape_cast %79 : vector<1x512xi1> to vector<1x512xi1>
    %82 = vector.broadcast %81 : vector<1x512xi1> to vector<4x512xi1>
    %83 = vector.broadcast %cst_57 : f32 to vector<4x512xf32>
    %84 = arith.select %82, %80, %83 : vector<4x512xi1>, vector<4x512xf32>
    %c32 = arith.constant 32 : index
    %c0_58 = arith.constant 0 : index
    %85 = vector.load %arg6[%c32, %c0_58] : memref<108x512xf32, #tpu.memory_space<vmem>>, vector<4x512xf32>
    tpu.vector_store %arg6[%c32, %c0_58], %84 {strides = array<i32>} : memref<108x512xf32, #tpu.memory_space<vmem>>, vector<4x512xf32>,
    %c9_59 = arith.constant 9 : index
    %c0_60 = arith.constant 0 : index
    %86 = vector.load %arg1[%c9_59, %c0_60] : memref<27x512xf32, #tpu.memory_space<vmem>>, vector<1x512xf32>
    %cst_61 = arith.constant 0.000000e+00 : f32
    %87 = vector.broadcast %cst_61 : f32 to vector<1x512xf32>
    %88 = arith.cmpf one, %86, %87 : vector<1x512xf32>
    %c0_62 = arith.constant 0 : index
    %c64 = arith.constant 64 : index
    %89 = vector.load %arg5[%c0_62, %c64] : memref<4x658xf32, #tpu.memory_space<vmem>>, vector<4x512xf32>
    %cst_63 = arith.constant 0.000000e+00 : f32
    %90 = vector.shape_cast %88 : vector<1x512xi1> to vector<1x512xi1>
    %91 = vector.broadcast %90 : vector<1x512xi1> to vector<4x512xi1>
    %92 = vector.broadcast %cst_63 : f32 to vector<4x512xf32>
    %93 = arith.select %91, %89, %92 : vector<4x512xi1>, vector<4x512xf32>
    %c36 = arith.constant 36 : index
    %c0_64 = arith.constant 0 : index
    %94 = vector.load %arg6[%c36, %c0_64] : memref<108x512xf32, #tpu.memory_space<vmem>>, vector<4x512xf32>
    tpu.vector_store %arg6[%c36, %c0_64], %93 {strides = array<i32>} : memref<108x512xf32, #tpu.memory_space<vmem>>, vector<4x512xf32>,
    %c10_65 = arith.constant 10 : index
    %c0_66 = arith.constant 0 : index
    %95 = vector.load %arg1[%c10_65, %c0_66] : memref<27x512xf32, #tpu.memory_space<vmem>>, vector<1x512xf32>
    %cst_67 = arith.constant 0.000000e+00 : f32
    %96 = vector.broadcast %cst_67 : f32 to vector<1x512xf32>
    %97 = arith.cmpf one, %95, %96 : vector<1x512xf32>
    %c0_68 = arith.constant 0 : index
    %c65 = arith.constant 65 : index
    %98 = vector.load %arg5[%c0_68, %c65] : memref<4x658xf32, #tpu.memory_space<vmem>>, vector<4x512xf32>
    %cst_69 = arith.constant 0.000000e+00 : f32
    %99 = vector.shape_cast %97 : vector<1x512xi1> to vector<1x512xi1>
    %100 = vector.broadcast %99 : vector<1x512xi1> to vector<4x512xi1>
    %101 = vector.broadcast %cst_69 : f32 to vector<4x512xf32>
    %102 = arith.select %100, %98, %101 : vector<4x512xi1>, vector<4x512xf32>
    %c40 = arith.constant 40 : index
    %c0_70 = arith.constant 0 : index
    %103 = vector.load %arg6[%c40, %c0_70] : memref<108x512xf32, #tpu.memory_space<vmem>>, vector<4x512xf32>
    tpu.vector_store %arg6[%c40, %c0_70], %102 {strides = array<i32>} : memref<108x512xf32, #tpu.memory_space<vmem>>, vector<4x512xf32>,
    %c11 = arith.constant 11 : index
    %c0_71 = arith.constant 0 : index
    %104 = vector.load %arg1[%c11, %c0_71] : memref<27x512xf32, #tpu.memory_space<vmem>>, vector<1x512xf32>
    %cst_72 = arith.constant 0.000000e+00 : f32
    %105 = vector.broadcast %cst_72 : f32 to vector<1x512xf32>
    %106 = arith.cmpf one, %104, %105 : vector<1x512xf32>
    %c0_73 = arith.constant 0 : index
    %c66 = arith.constant 66 : index
    %107 = vector.load %arg5[%c0_73, %c66] : memref<4x658xf32, #tpu.memory_space<vmem>>, vector<4x512xf32>
    %cst_74 = arith.constant 0.000000e+00 : f32
    %108 = vector.shape_cast %106 : vector<1x512xi1> to vector<1x512xi1>
    %109 = vector.broadcast %108 : vector<1x512xi1> to vector<4x512xi1>
    %110 = vector.broadcast %cst_74 : f32 to vector<4x512xf32>
    %111 = arith.select %109, %107, %110 : vector<4x512xi1>, vector<4x512xf32>
    %c44 = arith.constant 44 : index
    %c0_75 = arith.constant 0 : index
    %112 = vector.load %arg6[%c44, %c0_75] : memref<108x512xf32, #tpu.memory_space<vmem>>, vector<4x512xf32>
    tpu.vector_store %arg6[%c44, %c0_75], %111 {strides = array<i32>} : memref<108x512xf32, #tpu.memory_space<vmem>>, vector<4x512xf32>,
    %c12_76 = arith.constant 12 : index
    %c0_77 = arith.constant 0 : index
    %113 = vector.load %arg1[%c12_76, %c0_77] : memref<27x512xf32, #tpu.memory_space<vmem>>, vector<1x512xf32>
    %cst_78 = arith.constant 0.000000e+00 : f32
    %114 = vector.broadcast %cst_78 : f32 to vector<1x512xf32>
    %115 = arith.cmpf one, %113, %114 : vector<1x512xf32>
    %c0_79 = arith.constant 0 : index
    %c72 = arith.constant 72 : index
    %116 = vector.load %arg5[%c0_79, %c72] : memref<4x658xf32, #tpu.memory_space<vmem>>, vector<4x512xf32>
    %cst_80 = arith.constant 0.000000e+00 : f32
    %117 = vector.shape_cast %115 : vector<1x512xi1> to vector<1x512xi1>
    %118 = vector.broadcast %117 : vector<1x512xi1> to vector<4x512xi1>
    %119 = vector.broadcast %cst_80 : f32 to vector<4x512xf32>
    %120 = arith.select %118, %116, %119 : vector<4x512xi1>, vector<4x512xf32>
    %c48 = arith.constant 48 : index
    %c0_81 = arith.constant 0 : index
    %121 = vector.load %arg6[%c48, %c0_81] : memref<108x512xf32, #tpu.memory_space<vmem>>, vector<4x512xf32>
    tpu.vector_store %arg6[%c48, %c0_81], %120 {strides = array<i32>} : memref<108x512xf32, #tpu.memory_space<vmem>>, vector<4x512xf32>,
    %c13 = arith.constant 13 : index
    %c0_82 = arith.constant 0 : index
    %122 = vector.load %arg1[%c13, %c0_82] : memref<27x512xf32, #tpu.memory_space<vmem>>, vector<1x512xf32>
    %cst_83 = arith.constant 0.000000e+00 : f32
    %123 = vector.broadcast %cst_83 : f32 to vector<1x512xf32>
    %124 = arith.cmpf one, %122, %123 : vector<1x512xf32>
    %c0_84 = arith.constant 0 : index
    %c73_85 = arith.constant 73 : index
    %125 = vector.load %arg5[%c0_84, %c73_85] : memref<4x658xf32, #tpu.memory_space<vmem>>, vector<4x512xf32>
    %cst_86 = arith.constant 0.000000e+00 : f32
    %126 = vector.shape_cast %124 : vector<1x512xi1> to vector<1x512xi1>
    %127 = vector.broadcast %126 : vector<1x512xi1> to vector<4x512xi1>
    %128 = vector.broadcast %cst_86 : f32 to vector<4x512xf32>
    %129 = arith.select %127, %125, %128 : vector<4x512xi1>, vector<4x512xf32>
    %c52 = arith.constant 52 : index
    %c0_87 = arith.constant 0 : index
    %130 = vector.load %arg6[%c52, %c0_87] : memref<108x512xf32, #tpu.memory_space<vmem>>, vector<4x512xf32>
    tpu.vector_store %arg6[%c52, %c0_87], %129 {strides = array<i32>} : memref<108x512xf32, #tpu.memory_space<vmem>>, vector<4x512xf32>,
    %c14 = arith.constant 14 : index
    %c0_88 = arith.constant 0 : index
    %131 = vector.load %arg1[%c14, %c0_88] : memref<27x512xf32, #tpu.memory_space<vmem>>, vector<1x512xf32>
    %cst_89 = arith.constant 0.000000e+00 : f32
    %132 = vector.broadcast %cst_89 : f32 to vector<1x512xf32>
    %133 = arith.cmpf one, %131, %132 : vector<1x512xf32>
    %c0_90 = arith.constant 0 : index
    %c74 = arith.constant 74 : index
    %134 = vector.load %arg5[%c0_90, %c74] : memref<4x658xf32, #tpu.memory_space<vmem>>, vector<4x512xf32>
    %cst_91 = arith.constant 0.000000e+00 : f32
    %135 = vector.shape_cast %133 : vector<1x512xi1> to vector<1x512xi1>
    %136 = vector.broadcast %135 : vector<1x512xi1> to vector<4x512xi1>
    %137 = vector.broadcast %cst_91 : f32 to vector<4x512xf32>
    %138 = arith.select %136, %134, %137 : vector<4x512xi1>, vector<4x512xf32>
    %c56 = arith.constant 56 : index
    %c0_92 = arith.constant 0 : index
    %139 = vector.load %arg6[%c56, %c0_92] : memref<108x512xf32, #tpu.memory_space<vmem>>, vector<4x512xf32>
    tpu.vector_store %arg6[%c56, %c0_92], %138 {strides = array<i32>} : memref<108x512xf32, #tpu.memory_space<vmem>>, vector<4x512xf32>,
    %c15 = arith.constant 15 : index
    %c0_93 = arith.constant 0 : index
    %140 = vector.load %arg1[%c15, %c0_93] : memref<27x512xf32, #tpu.memory_space<vmem>>, vector<1x512xf32>
    %cst_94 = arith.constant 0.000000e+00 : f32
    %141 = vector.broadcast %cst_94 : f32 to vector<1x512xf32>
    %142 = arith.cmpf one, %140, %141 : vector<1x512xf32>
    %c0_95 = arith.constant 0 : index
    %c80 = arith.constant 80 : index
    %143 = vector.load %arg5[%c0_95, %c80] : memref<4x658xf32, #tpu.memory_space<vmem>>, vector<4x512xf32>
    %cst_96 = arith.constant 0.000000e+00 : f32
    %144 = vector.shape_cast %142 : vector<1x512xi1> to vector<1x512xi1>
    %145 = vector.broadcast %144 : vector<1x512xi1> to vector<4x512xi1>
    %146 = vector.broadcast %cst_96 : f32 to vector<4x512xf32>
    %147 = arith.select %145, %143, %146 : vector<4x512xi1>, vector<4x512xf32>
    %c60 = arith.constant 60 : index
    %c0_97 = arith.constant 0 : index
    %148 = vector.load %arg6[%c60, %c0_97] : memref<108x512xf32, #tpu.memory_space<vmem>>, vector<4x512xf32>
    tpu.vector_store %arg6[%c60, %c0_97], %147 {strides = array<i32>} : memref<108x512xf32, #tpu.memory_space<vmem>>, vector<4x512xf32>,
    %c16_98 = arith.constant 16 : index
    %c0_99 = arith.constant 0 : index
    %149 = vector.load %arg1[%c16_98, %c0_99] : memref<27x512xf32, #tpu.memory_space<vmem>>, vector<1x512xf32>
    %cst_100 = arith.constant 0.000000e+00 : f32
    %150 = vector.broadcast %cst_100 : f32 to vector<1x512xf32>
    %151 = arith.cmpf one, %149, %150 : vector<1x512xf32>
    %c0_101 = arith.constant 0 : index
    %c81 = arith.constant 81 : index
    %152 = vector.load %arg5[%c0_101, %c81] : memref<4x658xf32, #tpu.memory_space<vmem>>, vector<4x512xf32>
    %cst_102 = arith.constant 0.000000e+00 : f32
    %153 = vector.shape_cast %151 : vector<1x512xi1> to vector<1x512xi1>
    %154 = vector.broadcast %153 : vector<1x512xi1> to vector<4x512xi1>
    %155 = vector.broadcast %cst_102 : f32 to vector<4x512xf32>
    %156 = arith.select %154, %152, %155 : vector<4x512xi1>, vector<4x512xf32>
    %c64_103 = arith.constant 64 : index
    %c0_104 = arith.constant 0 : index
    %157 = vector.load %arg6[%c64_103, %c0_104] : memref<108x512xf32, #tpu.memory_space<vmem>>, vector<4x512xf32>
    tpu.vector_store %arg6[%c64_103, %c0_104], %156 {strides = array<i32>} : memref<108x512xf32, #tpu.memory_space<vmem>>, vector<4x512xf32>,
    %c17_105 = arith.constant 17 : index
    %c0_106 = arith.constant 0 : index
    %158 = vector.load %arg1[%c17_105, %c0_106] : memref<27x512xf32, #tpu.memory_space<vmem>>, vector<1x512xf32>
    %cst_107 = arith.constant 0.000000e+00 : f32
    %159 = vector.broadcast %cst_107 : f32 to vector<1x512xf32>
    %160 = arith.cmpf one, %158, %159 : vector<1x512xf32>
    %c0_108 = arith.constant 0 : index
    %c82 = arith.constant 82 : index
    %161 = vector.load %arg5[%c0_108, %c82] : memref<4x658xf32, #tpu.memory_space<vmem>>, vector<4x512xf32>
    %cst_109 = arith.constant 0.000000e+00 : f32
    %162 = vector.shape_cast %160 : vector<1x512xi1> to vector<1x512xi1>
    %163 = vector.broadcast %162 : vector<1x512xi1> to vector<4x512xi1>
    %164 = vector.broadcast %cst_109 : f32 to vector<4x512xf32>
    %165 = arith.select %163, %161, %164 : vector<4x512xi1>, vector<4x512xf32>
    %c68 = arith.constant 68 : index
    %c0_110 = arith.constant 0 : index
    %166 = vector.load %arg6[%c68, %c0_110] : memref<108x512xf32, #tpu.memory_space<vmem>>, vector<4x512xf32>
    tpu.vector_store %arg6[%c68, %c0_110], %165 {strides = array<i32>} : memref<108x512xf32, #tpu.memory_space<vmem>>, vector<4x512xf32>,
    %c18_111 = arith.constant 18 : index
    %c0_112 = arith.constant 0 : index
    %167 = vector.load %arg1[%c18_111, %c0_112] : memref<27x512xf32, #tpu.memory_space<vmem>>, vector<1x512xf32>
    %cst_113 = arith.constant 0.000000e+00 : f32
    %168 = vector.broadcast %cst_113 : f32 to vector<1x512xf32>
    %169 = arith.cmpf one, %167, %168 : vector<1x512xf32>
    %c0_114 = arith.constant 0 : index
    %c128 = arith.constant 128 : index
    %170 = vector.load %arg5[%c0_114, %c128] : memref<4x658xf32, #tpu.memory_space<vmem>>, vector<4x512xf32>
    %cst_115 = arith.constant 0.000000e+00 : f32
    %171 = vector.shape_cast %169 : vector<1x512xi1> to vector<1x512xi1>
    %172 = vector.broadcast %171 : vector<1x512xi1> to vector<4x512xi1>
    %173 = vector.broadcast %cst_115 : f32 to vector<4x512xf32>
    %174 = arith.select %172, %170, %173 : vector<4x512xi1>, vector<4x512xf32>
    %c72_116 = arith.constant 72 : index
    %c0_117 = arith.constant 0 : index
    %175 = vector.load %arg6[%c72_116, %c0_117] : memref<108x512xf32, #tpu.memory_space<vmem>>, vector<4x512xf32>
    tpu.vector_store %arg6[%c72_116, %c0_117], %174 {strides = array<i32>} : memref<108x512xf32, #tpu.memory_space<vmem>>, vector<4x512xf32>,
    %c19 = arith.constant 19 : index
    %c0_118 = arith.constant 0 : index
    %176 = vector.load %arg1[%c19, %c0_118] : memref<27x512xf32, #tpu.memory_space<vmem>>, vector<1x512xf32>
    %cst_119 = arith.constant 0.000000e+00 : f32
    %177 = vector.broadcast %cst_119 : f32 to vector<1x512xf32>
    %178 = arith.cmpf one, %176, %177 : vector<1x512xf32>
    %c0_120 = arith.constant 0 : index
    %c129 = arith.constant 129 : index
    %179 = vector.load %arg5[%c0_120, %c129] : memref<4x658xf32, #tpu.memory_space<vmem>>, vector<4x512xf32>
    %cst_121 = arith.constant 0.000000e+00 : f32
    %180 = vector.shape_cast %178 : vector<1x512xi1> to vector<1x512xi1>
    %181 = vector.broadcast %180 : vector<1x512xi1> to vector<4x512xi1>
    %182 = vector.broadcast %cst_121 : f32 to vector<4x512xf32>
    %183 = arith.select %181, %179, %182 : vector<4x512xi1>, vector<4x512xf32>
    %c76 = arith.constant 76 : index
    %c0_122 = arith.constant 0 : index
    %184 = vector.load %arg6[%c76, %c0_122] : memref<108x512xf32, #tpu.memory_space<vmem>>, vector<4x512xf32>
    tpu.vector_store %arg6[%c76, %c0_122], %183 {strides = array<i32>} : memref<108x512xf32, #tpu.memory_space<vmem>>, vector<4x512xf32>,
    %c20_123 = arith.constant 20 : index
    %c0_124 = arith.constant 0 : index
    %185 = vector.load %arg1[%c20_123, %c0_124] : memref<27x512xf32, #tpu.memory_space<vmem>>, vector<1x512xf32>
    %cst_125 = arith.constant 0.000000e+00 : f32
    %186 = vector.broadcast %cst_125 : f32 to vector<1x512xf32>
    %187 = arith.cmpf one, %185, %186 : vector<1x512xf32>
    %c0_126 = arith.constant 0 : index
    %c130 = arith.constant 130 : index
    %188 = vector.load %arg5[%c0_126, %c130] : memref<4x658xf32, #tpu.memory_space<vmem>>, vector<4x512xf32>
    %cst_127 = arith.constant 0.000000e+00 : f32
    %189 = vector.shape_cast %187 : vector<1x512xi1> to vector<1x512xi1>
    %190 = vector.broadcast %189 : vector<1x512xi1> to vector<4x512xi1>
    %191 = vector.broadcast %cst_127 : f32 to vector<4x512xf32>
    %192 = arith.select %190, %188, %191 : vector<4x512xi1>, vector<4x512xf32>
    %c80_128 = arith.constant 80 : index
    %c0_129 = arith.constant 0 : index
    %193 = vector.load %arg6[%c80_128, %c0_129] : memref<108x512xf32, #tpu.memory_space<vmem>>, vector<4x512xf32>
    tpu.vector_store %arg6[%c80_128, %c0_129], %192 {strides = array<i32>} : memref<108x512xf32, #tpu.memory_space<vmem>>, vector<4x512xf32>,
    %c21 = arith.constant 21 : index
    %c0_130 = arith.constant 0 : index
    %194 = vector.load %arg1[%c21, %c0_130] : memref<27x512xf32, #tpu.memory_space<vmem>>, vector<1x512xf32>
    %cst_131 = arith.constant 0.000000e+00 : f32
    %195 = vector.broadcast %cst_131 : f32 to vector<1x512xf32>
    %196 = arith.cmpf one, %194, %195 : vector<1x512xf32>
    %c0_132 = arith.constant 0 : index
    %c136 = arith.constant 136 : index
    %197 = vector.load %arg5[%c0_132, %c136] : memref<4x658xf32, #tpu.memory_space<vmem>>, vector<4x512xf32>
    %cst_133 = arith.constant 0.000000e+00 : f32
    %198 = vector.shape_cast %196 : vector<1x512xi1> to vector<1x512xi1>
    %199 = vector.broadcast %198 : vector<1x512xi1> to vector<4x512xi1>
    %200 = vector.broadcast %cst_133 : f32 to vector<4x512xf32>
    %201 = arith.select %199, %197, %200 : vector<4x512xi1>, vector<4x512xf32>
    %c84 = arith.constant 84 : index
    %c0_134 = arith.constant 0 : index
    %202 = vector.load %arg6[%c84, %c0_134] : memref<108x512xf32, #tpu.memory_space<vmem>>, vector<4x512xf32>
    tpu.vector_store %arg6[%c84, %c0_134], %201 {strides = array<i32>} : memref<108x512xf32, #tpu.memory_space<vmem>>, vector<4x512xf32>,
    %c22 = arith.constant 22 : index
    %c0_135 = arith.constant 0 : index
    %203 = vector.load %arg1[%c22, %c0_135] : memref<27x512xf32, #tpu.memory_space<vmem>>, vector<1x512xf32>
    %cst_136 = arith.constant 0.000000e+00 : f32
    %204 = vector.broadcast %cst_136 : f32 to vector<1x512xf32>
    %205 = arith.cmpf one, %203, %204 : vector<1x512xf32>
    %c0_137 = arith.constant 0 : index
    %c137 = arith.constant 137 : index
    %206 = vector.load %arg5[%c0_137, %c137] : memref<4x658xf32, #tpu.memory_space<vmem>>, vector<4x512xf32>
    %cst_138 = arith.constant 0.000000e+00 : f32
    %207 = vector.shape_cast %205 : vector<1x512xi1> to vector<1x512xi1>
    %208 = vector.broadcast %207 : vector<1x512xi1> to vector<4x512xi1>
    %209 = vector.broadcast %cst_138 : f32 to vector<4x512xf32>
    %210 = arith.select %208, %206, %209 : vector<4x512xi1>, vector<4x512xf32>
    %c88 = arith.constant 88 : index
    %c0_139 = arith.constant 0 : index
    %211 = vector.load %arg6[%c88, %c0_139] : memref<108x512xf32, #tpu.memory_space<vmem>>, vector<4x512xf32>
    tpu.vector_store %arg6[%c88, %c0_139], %210 {strides = array<i32>} : memref<108x512xf32, #tpu.memory_space<vmem>>, vector<4x512xf32>,
    %c23 = arith.constant 23 : index
    %c0_140 = arith.constant 0 : index
    %212 = vector.load %arg1[%c23, %c0_140] : memref<27x512xf32, #tpu.memory_space<vmem>>, vector<1x512xf32>
    %cst_141 = arith.constant 0.000000e+00 : f32
    %213 = vector.broadcast %cst_141 : f32 to vector<1x512xf32>
    %214 = arith.cmpf one, %212, %213 : vector<1x512xf32>
    %c0_142 = arith.constant 0 : index
    %c138 = arith.constant 138 : index
    %215 = vector.load %arg5[%c0_142, %c138] : memref<4x658xf32, #tpu.memory_space<vmem>>, vector<4x512xf32>
    %cst_143 = arith.constant 0.000000e+00 : f32
    %216 = vector.shape_cast %214 : vector<1x512xi1> to vector<1x512xi1>
    %217 = vector.broadcast %216 : vector<1x512xi1> to vector<4x512xi1>
    %218 = vector.broadcast %cst_143 : f32 to vector<4x512xf32>
    %219 = arith.select %217, %215, %218 : vector<4x512xi1>, vector<4x512xf32>
    %c92 = arith.constant 92 : index
    %c0_144 = arith.constant 0 : index
    %220 = vector.load %arg6[%c92, %c0_144] : memref<108x512xf32, #tpu.memory_space<vmem>>, vector<4x512xf32>
    tpu.vector_store %arg6[%c92, %c0_144], %219 {strides = array<i32>} : memref<108x512xf32, #tpu.memory_space<vmem>>, vector<4x512xf32>,
    %c24_145 = arith.constant 24 : index
    %c0_146 = arith.constant 0 : index
    %221 = vector.load %arg1[%c24_145, %c0_146] : memref<27x512xf32, #tpu.memory_space<vmem>>, vector<1x512xf32>
    %cst_147 = arith.constant 0.000000e+00 : f32
    %222 = vector.broadcast %cst_147 : f32 to vector<1x512xf32>
    %223 = arith.cmpf one, %221, %222 : vector<1x512xf32>
    %c0_148 = arith.constant 0 : index
    %c144 = arith.constant 144 : index
    %224 = vector.load %arg5[%c0_148, %c144] : memref<4x658xf32, #tpu.memory_space<vmem>>, vector<4x512xf32>
    %cst_149 = arith.constant 0.000000e+00 : f32
    %225 = vector.shape_cast %223 : vector<1x512xi1> to vector<1x512xi1>
    %226 = vector.broadcast %225 : vector<1x512xi1> to vector<4x512xi1>
    %227 = vector.broadcast %cst_149 : f32 to vector<4x512xf32>
    %228 = arith.select %226, %224, %227 : vector<4x512xi1>, vector<4x512xf32>
    %c96 = arith.constant 96 : index
    %c0_150 = arith.constant 0 : index
    %229 = vector.load %arg6[%c96, %c0_150] : memref<108x512xf32, #tpu.memory_space<vmem>>, vector<4x512xf32>
    tpu.vector_store %arg6[%c96, %c0_150], %228 {strides = array<i32>} : memref<108x512xf32, #tpu.memory_space<vmem>>, vector<4x512xf32>,
    %c25 = arith.constant 25 : index
    %c0_151 = arith.constant 0 : index
    %230 = vector.load %arg1[%c25, %c0_151] : memref<27x512xf32, #tpu.memory_space<vmem>>, vector<1x512xf32>
    %cst_152 = arith.constant 0.000000e+00 : f32
    %231 = vector.broadcast %cst_152 : f32 to vector<1x512xf32>
    %232 = arith.cmpf one, %230, %231 : vector<1x512xf32>
    %c0_153 = arith.constant 0 : index
    %c145 = arith.constant 145 : index
    %233 = vector.load %arg5[%c0_153, %c145] : memref<4x658xf32, #tpu.memory_space<vmem>>, vector<4x512xf32>
    %cst_154 = arith.constant 0.000000e+00 : f32
    %234 = vector.shape_cast %232 : vector<1x512xi1> to vector<1x512xi1>
    %235 = vector.broadcast %234 : vector<1x512xi1> to vector<4x512xi1>
    %236 = vector.broadcast %cst_154 : f32 to vector<4x512xf32>
    %237 = arith.select %235, %233, %236 : vector<4x512xi1>, vector<4x512xf32>
    %c100 = arith.constant 100 : index
    %c0_155 = arith.constant 0 : index
    %238 = vector.load %arg6[%c100, %c0_155] : memref<108x512xf32, #tpu.memory_space<vmem>>, vector<4x512xf32>
    tpu.vector_store %arg6[%c100, %c0_155], %237 {strides = array<i32>} : memref<108x512xf32, #tpu.memory_space<vmem>>, vector<4x512xf32>,
    %c26 = arith.constant 26 : index
    %c0_156 = arith.constant 0 : index
    %239 = vector.load %arg1[%c26, %c0_156] : memref<27x512xf32, #tpu.memory_space<vmem>>, vector<1x512xf32>
    %cst_157 = arith.constant 0.000000e+00 : f32
    %240 = vector.broadcast %cst_157 : f32 to vector<1x512xf32>
    %241 = arith.cmpf one, %239, %240 : vector<1x512xf32>
    %c0_158 = arith.constant 0 : index
    %c146 = arith.constant 146 : index
    %242 = vector.load %arg5[%c0_158, %c146] : memref<4x658xf32, #tpu.memory_space<vmem>>, vector<4x512xf32>
    %cst_159 = arith.constant 0.000000e+00 : f32
    %243 = vector.shape_cast %241 : vector<1x512xi1> to vector<1x512xi1>
    %244 = vector.broadcast %243 : vector<1x512xi1> to vector<4x512xi1>
    %245 = vector.broadcast %cst_159 : f32 to vector<4x512xf32>
    %246 = arith.select %244, %242, %245 : vector<4x512xi1>, vector<4x512xf32>
    %c104 = arith.constant 104 : index
    %c0_160 = arith.constant 0 : index
    %247 = vector.load %arg6[%c104, %c0_160] : memref<108x512xf32, #tpu.memory_space<vmem>>, vector<4x512xf32>
    tpu.vector_store %arg6[%c104, %c0_160], %246 {strides = array<i32>} : memref<108x512xf32, #tpu.memory_space<vmem>>, vector<4x512xf32>,
    %c0_161 = arith.constant 0 : index
    %c0_162 = arith.constant 0 : index
    %248 = vector.load %arg6[%c0_161, %c0_162] : memref<108x512xf32, #tpu.memory_space<vmem>>, vector<108x512xf32>
    %cst_163 = arith.constant dense<0.000000e+00> : vector<4x512xf32>
    %249 = tpu.matmul %3, %248, %cst_163 {dimension_numbers = #tpu.dot_dimension_numbers<[1], [0], [0], [1], [0, 0, 1, 1], [], []>} : vector<4x108xf32>, vector<108x512xf32>, vector<4x512xf32> -> vector<4x512xf32>
    %cst_164 = arith.constant dense<0.000000e+00> : vector<4xf32>
    %250 = vector.multi_reduction <add>, %249, %cst_164 [1] : vector<4x512xf32> to vector<4xf32>
    %251 = vector.shape_cast %250 : vector<4xf32> to vector<4x1xf32>
    %252 = arith.mulf %249, %249 : vector<4x512xf32>
    %cst_165 = arith.constant dense<0.000000e+00> : vector<4xf32>
    %253 = vector.multi_reduction <add>, %252, %cst_165 [1] : vector<4x512xf32> to vector<4xf32>
    %254 = vector.shape_cast %253 : vector<4xf32> to vector<4x1xf32>
    %cst_166 = arith.constant 0.001953125 : f32
    %255 = vector.broadcast %cst_166 : f32 to vector<4x1xf32>
    %256 = arith.mulf %251, %255 : vector<4x1xf32>
    %cst_167 = arith.constant 0.001953125 : f32
    %257 = vector.broadcast %cst_167 : f32 to vector<4x1xf32>
    %258 = arith.mulf %254, %257 : vector<4x1xf32>
    %259 = arith.mulf %256, %256 : vector<4x1xf32>
    %260 = arith.subf %258, %259 : vector<4x1xf32>
    %cst_168 = arith.constant 0.000000e+00 : f32
    %261 = vector.broadcast %cst_168 : f32 to vector<4x1xf32>
    %262 = arith.maximumf %260, %261 : vector<4x1xf32>
    %263 = vector.broadcast %256 : vector<4x1xf32> to vector<4x512xf32>
    %264 = arith.subf %249, %263 : vector<4x512xf32>
    %cst_169 = arith.constant 9.99999974E-6 : f32
    %265 = vector.broadcast %cst_169 : f32 to vector<4x1xf32>
    %266 = arith.addf %262, %265 : vector<4x1xf32>
    %267 = math.rsqrt %266 : vector<4x1xf32>
    %268 = vector.broadcast %267 : vector<4x1xf32> to vector<4x512xf32>
    %269 = arith.mulf %264, %268 : vector<4x512xf32>
    %cst_170 = arith.constant 0.000000e+00 : f32
    %270 = vector.broadcast %cst_170 : f32 to vector<4x512xf32>
    %271 = arith.maximumf %269, %270 : vector<4x512xf32>
    %c1_171 = arith.constant 1 : index
    %c0_172 = arith.constant 0 : index
    %c0_173 = arith.constant 0 : index
    %272 = vector.load %arg3[%c1_171, %c0_172, %c0_173] : memref<2x4x108xf32, #tpu.memory_space<vmem>>, vector<1x4x108xf32>
    %273 = vector.shape_cast %272 : vector<1x4x108xf32> to vector<4x108xf32>
    %c0_174 = arith.constant 0 : index
    %c73_175 = arith.constant 73 : index
    %274 = vector.load %arg5[%c0_174, %c73_175] : memref<4x658xf32, #tpu.memory_space<vmem>>, vector<4x512xf32>
    tpu.vector_store %arg5[%c0_174, %c73_175], %271 {strides = array<i32>} : memref<4x658xf32, #tpu.memory_space<vmem>>, vector<4x512xf32>,
    %c0_176 = arith.constant 0 : index
    %c0_177 = arith.constant 0 : index
    %275 = vector.load %arg1[%c0_176, %c0_177] : memref<27x512xf32, #tpu.memory_space<vmem>>, vector<1x512xf32>
    %cst_178 = arith.constant 0.000000e+00 : f32
    %276 = vector.broadcast %cst_178 : f32 to vector<1x512xf32>
    %277 = arith.cmpf one, %275, %276 : vector<1x512xf32>
    %c0_179 = arith.constant 0 : index
    %c0_180 = arith.constant 0 : index
    %278 = vector.load %arg5[%c0_179, %c0_180] : memref<4x658xf32, #tpu.memory_space<vmem>>, vector<4x512xf32>
    %cst_181 = arith.constant 0.000000e+00 : f32
    %279 = vector.shape_cast %277 : vector<1x512xi1> to vector<1x512xi1>
    %280 = vector.broadcast %279 : vector<1x512xi1> to vector<4x512xi1>
    %281 = vector.broadcast %cst_181 : f32 to vector<4x512xf32>
    %282 = arith.select %280, %278, %281 : vector<4x512xi1>, vector<4x512xf32>
    %c0_182 = arith.constant 0 : index
    %c0_183 = arith.constant 0 : index
    %283 = vector.load %arg6[%c0_182, %c0_183] : memref<108x512xf32, #tpu.memory_space<vmem>>, vector<4x512xf32>
    tpu.vector_store %arg6[%c0_182, %c0_183], %282 {strides = array<i32>} : memref<108x512xf32, #tpu.memory_space<vmem>>, vector<4x512xf32>,
    %c1_184 = arith.constant 1 : index
    %c0_185 = arith.constant 0 : index
    %284 = vector.load %arg1[%c1_184, %c0_185] : memref<27x512xf32, #tpu.memory_space<vmem>>, vector<1x512xf32>
    %cst_186 = arith.constant 0.000000e+00 : f32
    %285 = vector.broadcast %cst_186 : f32 to vector<1x512xf32>
    %286 = arith.cmpf one, %284, %285 : vector<1x512xf32>
    %c0_187 = arith.constant 0 : index
    %c1_188 = arith.constant 1 : index
    %287 = vector.load %arg5[%c0_187, %c1_188] : memref<4x658xf32, #tpu.memory_space<vmem>>, vector<4x512xf32>
    %cst_189 = arith.constant 0.000000e+00 : f32
    %288 = vector.shape_cast %286 : vector<1x512xi1> to vector<1x512xi1>
    %289 = vector.broadcast %288 : vector<1x512xi1> to vector<4x512xi1>
    %290 = vector.broadcast %cst_189 : f32 to vector<4x512xf32>
    %291 = arith.select %289, %287, %290 : vector<4x512xi1>, vector<4x512xf32>
    %c4_190 = arith.constant 4 : index
    %c0_191 = arith.constant 0 : index
    %292 = vector.load %arg6[%c4_190, %c0_191] : memref<108x512xf32, #tpu.memory_space<vmem>>, vector<4x512xf32>
    tpu.vector_store %arg6[%c4_190, %c0_191], %291 {strides = array<i32>} : memref<108x512xf32, #tpu.memory_space<vmem>>, vector<4x512xf32>,
    %c2_192 = arith.constant 2 : index
    %c0_193 = arith.constant 0 : index
    %293 = vector.load %arg1[%c2_192, %c0_193] : memref<27x512xf32, #tpu.memory_space<vmem>>, vector<1x512xf32>
    %cst_194 = arith.constant 0.000000e+00 : f32
    %294 = vector.broadcast %cst_194 : f32 to vector<1x512xf32>
    %295 = arith.cmpf one, %293, %294 : vector<1x512xf32>
    %c0_195 = arith.constant 0 : index
    %c2_196 = arith.constant 2 : index
    %296 = vector.load %arg5[%c0_195, %c2_196] : memref<4x658xf32, #tpu.memory_space<vmem>>, vector<4x512xf32>
    %cst_197 = arith.constant 0.000000e+00 : f32
    %297 = vector.shape_cast %295 : vector<1x512xi1> to vector<1x512xi1>
    %298 = vector.broadcast %297 : vector<1x512xi1> to vector<4x512xi1>
    %299 = vector.broadcast %cst_197 : f32 to vector<4x512xf32>
    %300 = arith.select %298, %296, %299 : vector<4x512xi1>, vector<4x512xf32>
    %c8_198 = arith.constant 8 : index
    %c0_199 = arith.constant 0 : index
    %301 = vector.load %arg6[%c8_198, %c0_199] : memref<108x512xf32, #tpu.memory_space<vmem>>, vector<4x512xf32>
    tpu.vector_store %arg6[%c8_198, %c0_199], %300 {strides = array<i32>} : memref<108x512xf32, #tpu.memory_space<vmem>>, vector<4x512xf32>,
    %c3_200 = arith.constant 3 : index
    %c0_201 = arith.constant 0 : index
    %302 = vector.load %arg1[%c3_200, %c0_201] : memref<27x512xf32, #tpu.memory_space<vmem>>, vector<1x512xf32>
    %cst_202 = arith.constant 0.000000e+00 : f32
    %303 = vector.broadcast %cst_202 : f32 to vector<1x512xf32>
    %304 = arith.cmpf one, %302, %303 : vector<1x512xf32>
    %c0_203 = arith.constant 0 : index
    %c8_204 = arith.constant 8 : index
    %305 = vector.load %arg5[%c0_203, %c8_204] : memref<4x658xf32, #tpu.memory_space<vmem>>, vector<4x512xf32>
    %cst_205 = arith.constant 0.000000e+00 : f32
    %306 = vector.shape_cast %304 : vector<1x512xi1> to vector<1x512xi1>
    %307 = vector.broadcast %306 : vector<1x512xi1> to vector<4x512xi1>
    %308 = vector.broadcast %cst_205 : f32 to vector<4x512xf32>
    %309 = arith.select %307, %305, %308 : vector<4x512xi1>, vector<4x512xf32>
    %c12_206 = arith.constant 12 : index
    %c0_207 = arith.constant 0 : index
    %310 = vector.load %arg6[%c12_206, %c0_207] : memref<108x512xf32, #tpu.memory_space<vmem>>, vector<4x512xf32>
    tpu.vector_store %arg6[%c12_206, %c0_207], %309 {strides = array<i32>} : memref<108x512xf32, #tpu.memory_space<vmem>>, vector<4x512xf32>,
    %c4_208 = arith.constant 4 : index
    %c0_209 = arith.constant 0 : index
    %311 = vector.load %arg1[%c4_208, %c0_209] : memref<27x512xf32, #tpu.memory_space<vmem>>, vector<1x512xf32>
    %cst_210 = arith.constant 0.000000e+00 : f32
    %312 = vector.broadcast %cst_210 : f32 to vector<1x512xf32>
    %313 = arith.cmpf one, %311, %312 : vector<1x512xf32>
    %c0_211 = arith.constant 0 : index
    %c9_212 = arith.constant 9 : index
    %314 = vector.load %arg5[%c0_211, %c9_212] : memref<4x658xf32, #tpu.memory_space<vmem>>, vector<4x512xf32>
    %cst_213 = arith.constant 0.000000e+00 : f32
    %315 = vector.shape_cast %313 : vector<1x512xi1> to vector<1x512xi1>
    %316 = vector.broadcast %315 : vector<1x512xi1> to vector<4x512xi1>
    %317 = vector.broadcast %cst_213 : f32 to vector<4x512xf32>
    %318 = arith.select %316, %314, %317 : vector<4x512xi1>, vector<4x512xf32>
    %c16_214 = arith.constant 16 : index
    %c0_215 = arith.constant 0 : index
    %319 = vector.load %arg6[%c16_214, %c0_215] : memref<108x512xf32, #tpu.memory_space<vmem>>, vector<4x512xf32>
    tpu.vector_store %arg6[%c16_214, %c0_215], %318 {strides = array<i32>} : memref<108x512xf32, #tpu.memory_space<vmem>>, vector<4x512xf32>,
    %c5_216 = arith.constant 5 : index
    %c0_217 = arith.constant 0 : index
    %320 = vector.load %arg1[%c5_216, %c0_217] : memref<27x512xf32, #tpu.memory_space<vmem>>, vector<1x512xf32>
    %cst_218 = arith.constant 0.000000e+00 : f32
    %321 = vector.broadcast %cst_218 : f32 to vector<1x512xf32>
    %322 = arith.cmpf one, %320, %321 : vector<1x512xf32>
    %c0_219 = arith.constant 0 : index
    %c10_220 = arith.constant 10 : index
    %323 = vector.load %arg5[%c0_219, %c10_220] : memref<4x658xf32, #tpu.memory_space<vmem>>, vector<4x512xf32>
    %cst_221 = arith.constant 0.000000e+00 : f32
    %324 = vector.shape_cast %322 : vector<1x512xi1> to vector<1x512xi1>
    %325 = vector.broadcast %324 : vector<1x512xi1> to vector<4x512xi1>
    %326 = vector.broadcast %cst_221 : f32 to vector<4x512xf32>
    %327 = arith.select %325, %323, %326 : vector<4x512xi1>, vector<4x512xf32>
    %c20_222 = arith.constant 20 : index
    %c0_223 = arith.constant 0 : index
    %328 = vector.load %arg6[%c20_222, %c0_223] : memref<108x512xf32, #tpu.memory_space<vmem>>, vector<4x512xf32>
    tpu.vector_store %arg6[%c20_222, %c0_223], %327 {strides = array<i32>} : memref<108x512xf32, #tpu.memory_space<vmem>>, vector<4x512xf32>,
    %c6_224 = arith.constant 6 : index
    %c0_225 = arith.constant 0 : index
    %329 = vector.load %arg1[%c6_224, %c0_225] : memref<27x512xf32, #tpu.memory_space<vmem>>, vector<1x512xf32>
    %cst_226 = arith.constant 0.000000e+00 : f32
    %330 = vector.broadcast %cst_226 : f32 to vector<1x512xf32>
    %331 = arith.cmpf one, %329, %330 : vector<1x512xf32>
    %c0_227 = arith.constant 0 : index
    %c16_228 = arith.constant 16 : index
    %332 = vector.load %arg5[%c0_227, %c16_228] : memref<4x658xf32, #tpu.memory_space<vmem>>, vector<4x512xf32>
    %cst_229 = arith.constant 0.000000e+00 : f32
    %333 = vector.shape_cast %331 : vector<1x512xi1> to vector<1x512xi1>
    %334 = vector.broadcast %333 : vector<1x512xi1> to vector<4x512xi1>
    %335 = vector.broadcast %cst_229 : f32 to vector<4x512xf32>
    %336 = arith.select %334, %332, %335 : vector<4x512xi1>, vector<4x512xf32>
    %c24_230 = arith.constant 24 : index
    %c0_231 = arith.constant 0 : index
    %337 = vector.load %arg6[%c24_230, %c0_231] : memref<108x512xf32, #tpu.memory_space<vmem>>, vector<4x512xf32>
    tpu.vector_store %arg6[%c24_230, %c0_231], %336 {strides = array<i32>} : memref<108x512xf32, #tpu.memory_space<vmem>>, vector<4x512xf32>,
    %c7_232 = arith.constant 7 : index
    %c0_233 = arith.constant 0 : index
    %338 = vector.load %arg1[%c7_232, %c0_233] : memref<27x512xf32, #tpu.memory_space<vmem>>, vector<1x512xf32>
    %cst_234 = arith.constant 0.000000e+00 : f32
    %339 = vector.broadcast %cst_234 : f32 to vector<1x512xf32>
    %340 = arith.cmpf one, %338, %339 : vector<1x512xf32>
    %c0_235 = arith.constant 0 : index
    %c17_236 = arith.constant 17 : index
    %341 = vector.load %arg5[%c0_235, %c17_236] : memref<4x658xf32, #tpu.memory_space<vmem>>, vector<4x512xf32>
    %cst_237 = arith.constant 0.000000e+00 : f32
    %342 = vector.shape_cast %340 : vector<1x512xi1> to vector<1x512xi1>
    %343 = vector.broadcast %342 : vector<1x512xi1> to vector<4x512xi1>
    %344 = vector.broadcast %cst_237 : f32 to vector<4x512xf32>
    %345 = arith.select %343, %341, %344 : vector<4x512xi1>, vector<4x512xf32>
    %c28_238 = arith.constant 28 : index
    %c0_239 = arith.constant 0 : index
    %346 = vector.load %arg6[%c28_238, %c0_239] : memref<108x512xf32, #tpu.memory_space<vmem>>, vector<4x512xf32>
    tpu.vector_store %arg6[%c28_238, %c0_239], %345 {strides = array<i32>} : memref<108x512xf32, #tpu.memory_space<vmem>>, vector<4x512xf32>,
    %c8_240 = arith.constant 8 : index
    %c0_241 = arith.constant 0 : index
    %347 = vector.load %arg1[%c8_240, %c0_241] : memref<27x512xf32, #tpu.memory_space<vmem>>, vector<1x512xf32>
    %cst_242 = arith.constant 0.000000e+00 : f32
    %348 = vector.broadcast %cst_242 : f32 to vector<1x512xf32>
    %349 = arith.cmpf one, %347, %348 : vector<1x512xf32>
    %c0_243 = arith.constant 0 : index
    %c18_244 = arith.constant 18 : index
    %350 = vector.load %arg5[%c0_243, %c18_244] : memref<4x658xf32, #tpu.memory_space<vmem>>, vector<4x512xf32>
    %cst_245 = arith.constant 0.000000e+00 : f32
    %351 = vector.shape_cast %349 : vector<1x512xi1> to vector<1x512xi1>
    %352 = vector.broadcast %351 : vector<1x512xi1> to vector<4x512xi1>
    %353 = vector.broadcast %cst_245 : f32 to vector<4x512xf32>
    %354 = arith.select %352, %350, %353 : vector<4x512xi1>, vector<4x512xf32>
    %c32_246 = arith.constant 32 : index
    %c0_247 = arith.constant 0 : index
    %355 = vector.load %arg6[%c32_246, %c0_247] : memref<108x512xf32, #tpu.memory_space<vmem>>, vector<4x512xf32>
    tpu.vector_store %arg6[%c32_246, %c0_247], %354 {strides = array<i32>} : memref<108x512xf32, #tpu.memory_space<vmem>>, vector<4x512xf32>,
    %c9_248 = arith.constant 9 : index
    %c0_249 = arith.constant 0 : index
    %356 = vector.load %arg1[%c9_248, %c0_249] : memref<27x512xf32, #tpu.memory_space<vmem>>, vector<1x512xf32>
    %cst_250 = arith.constant 0.000000e+00 : f32
    %357 = vector.broadcast %cst_250 : f32 to vector<1x512xf32>
    %358 = arith.cmpf one, %356, %357 : vector<1x512xf32>
    %c0_251 = arith.constant 0 : index
    %c64_252 = arith.constant 64 : index
    %359 = vector.load %arg5[%c0_251, %c64_252] : memref<4x658xf32, #tpu.memory_space<vmem>>, vector<4x512xf32>
    %cst_253 = arith.constant 0.000000e+00 : f32
    %360 = vector.shape_cast %358 : vector<1x512xi1> to vector<1x512xi1>
    %361 = vector.broadcast %360 : vector<1x512xi1> to vector<4x512xi1>
    %362 = vector.broadcast %cst_253 : f32 to vector<4x512xf32>
    %363 = arith.select %361, %359, %362 : vector<4x512xi1>, vector<4x512xf32>
    %c36_254 = arith.constant 36 : index
    %c0_255 = arith.constant 0 : index
    %364 = vector.load %arg6[%c36_254, %c0_255] : memref<108x512xf32, #tpu.memory_space<vmem>>, vector<4x512xf32>
    tpu.vector_store %arg6[%c36_254, %c0_255], %363 {strides = array<i32>} : memref<108x512xf32, #tpu.memory_space<vmem>>, vector<4x512xf32>,
    %c10_256 = arith.constant 10 : index
    %c0_257 = arith.constant 0 : index
    %365 = vector.load %arg1[%c10_256, %c0_257] : memref<27x512xf32, #tpu.memory_space<vmem>>, vector<1x512xf32>
    %cst_258 = arith.constant 0.000000e+00 : f32
    %366 = vector.broadcast %cst_258 : f32 to vector<1x512xf32>
    %367 = arith.cmpf one, %365, %366 : vector<1x512xf32>
    %c0_259 = arith.constant 0 : index
    %c65_260 = arith.constant 65 : index
    %368 = vector.load %arg5[%c0_259, %c65_260] : memref<4x658xf32, #tpu.memory_space<vmem>>, vector<4x512xf32>
    %cst_261 = arith.constant 0.000000e+00 : f32
    %369 = vector.shape_cast %367 : vector<1x512xi1> to vector<1x512xi1>
    %370 = vector.broadcast %369 : vector<1x512xi1> to vector<4x512xi1>
    %371 = vector.broadcast %cst_261 : f32 to vector<4x512xf32>
    %372 = arith.select %370, %368, %371 : vector<4x512xi1>, vector<4x512xf32>
    %c40_262 = arith.constant 40 : index
    %c0_263 = arith.constant 0 : index
    %373 = vector.load %arg6[%c40_262, %c0_263] : memref<108x512xf32, #tpu.memory_space<vmem>>, vector<4x512xf32>
    tpu.vector_store %arg6[%c40_262, %c0_263], %372 {strides = array<i32>} : memref<108x512xf32, #tpu.memory_space<vmem>>, vector<4x512xf32>,
    %c11_264 = arith.constant 11 : index
    %c0_265 = arith.constant 0 : index
    %374 = vector.load %arg1[%c11_264, %c0_265] : memref<27x512xf32, #tpu.memory_space<vmem>>, vector<1x512xf32>
    %cst_266 = arith.constant 0.000000e+00 : f32
    %375 = vector.broadcast %cst_266 : f32 to vector<1x512xf32>
    %376 = arith.cmpf one, %374, %375 : vector<1x512xf32>
    %c0_267 = arith.constant 0 : index
    %c66_268 = arith.constant 66 : index
    %377 = vector.load %arg5[%c0_267, %c66_268] : memref<4x658xf32, #tpu.memory_space<vmem>>, vector<4x512xf32>
    %cst_269 = arith.constant 0.000000e+00 : f32
    %378 = vector.shape_cast %376 : vector<1x512xi1> to vector<1x512xi1>
    %379 = vector.broadcast %378 : vector<1x512xi1> to vector<4x512xi1>
    %380 = vector.broadcast %cst_269 : f32 to vector<4x512xf32>
    %381 = arith.select %379, %377, %380 : vector<4x512xi1>, vector<4x512xf32>
    %c44_270 = arith.constant 44 : index
    %c0_271 = arith.constant 0 : index
    %382 = vector.load %arg6[%c44_270, %c0_271] : memref<108x512xf32, #tpu.memory_space<vmem>>, vector<4x512xf32>
    tpu.vector_store %arg6[%c44_270, %c0_271], %381 {strides = array<i32>} : memref<108x512xf32, #tpu.memory_space<vmem>>, vector<4x512xf32>,
    %c12_272 = arith.constant 12 : index
    %c0_273 = arith.constant 0 : index
    %383 = vector.load %arg1[%c12_272, %c0_273] : memref<27x512xf32, #tpu.memory_space<vmem>>, vector<1x512xf32>
    %cst_274 = arith.constant 0.000000e+00 : f32
    %384 = vector.broadcast %cst_274 : f32 to vector<1x512xf32>
    %385 = arith.cmpf one, %383, %384 : vector<1x512xf32>
    %c0_275 = arith.constant 0 : index
    %c72_276 = arith.constant 72 : index
    %386 = vector.load %arg5[%c0_275, %c72_276] : memref<4x658xf32, #tpu.memory_space<vmem>>, vector<4x512xf32>
    %cst_277 = arith.constant 0.000000e+00 : f32
    %387 = vector.shape_cast %385 : vector<1x512xi1> to vector<1x512xi1>
    %388 = vector.broadcast %387 : vector<1x512xi1> to vector<4x512xi1>
    %389 = vector.broadcast %cst_277 : f32 to vector<4x512xf32>
    %390 = arith.select %388, %386, %389 : vector<4x512xi1>, vector<4x512xf32>
    %c48_278 = arith.constant 48 : index
    %c0_279 = arith.constant 0 : index
    %391 = vector.load %arg6[%c48_278, %c0_279] : memref<108x512xf32, #tpu.memory_space<vmem>>, vector<4x512xf32>
    tpu.vector_store %arg6[%c48_278, %c0_279], %390 {strides = array<i32>} : memref<108x512xf32, #tpu.memory_space<vmem>>, vector<4x512xf32>,
    %c13_280 = arith.constant 13 : index
    %c0_281 = arith.constant 0 : index
    %392 = vector.load %arg1[%c13_280, %c0_281] : memref<27x512xf32, #tpu.memory_space<vmem>>, vector<1x512xf32>
    %cst_282 = arith.constant 0.000000e+00 : f32
    %393 = vector.broadcast %cst_282 : f32 to vector<1x512xf32>
    %394 = arith.cmpf one, %392, %393 : vector<1x512xf32>
    %c0_283 = arith.constant 0 : index
    %c73_284 = arith.constant 73 : index
    %395 = vector.load %arg5[%c0_283, %c73_284] : memref<4x658xf32, #tpu.memory_space<vmem>>, vector<4x512xf32>
    %cst_285 = arith.constant 0.000000e+00 : f32
    %396 = vector.shape_cast %394 : vector<1x512xi1> to vector<1x512xi1>
    %397 = vector.broadcast %396 : vector<1x512xi1> to vector<4x512xi1>
    %398 = vector.broadcast %cst_285 : f32 to vector<4x512xf32>
    %399 = arith.select %397, %395, %398 : vector<4x512xi1>, vector<4x512xf32>
    %c52_286 = arith.constant 52 : index
    %c0_287 = arith.constant 0 : index
    %400 = vector.load %arg6[%c52_286, %c0_287] : memref<108x512xf32, #tpu.memory_space<vmem>>, vector<4x512xf32>
    tpu.vector_store %arg6[%c52_286, %c0_287], %399 {strides = array<i32>} : memref<108x512xf32, #tpu.memory_space<vmem>>, vector<4x512xf32>,
    %c14_288 = arith.constant 14 : index
    %c0_289 = arith.constant 0 : index
    %401 = vector.load %arg1[%c14_288, %c0_289] : memref<27x512xf32, #tpu.memory_space<vmem>>, vector<1x512xf32>
    %cst_290 = arith.constant 0.000000e+00 : f32
    %402 = vector.broadcast %cst_290 : f32 to vector<1x512xf32>
    %403 = arith.cmpf one, %401, %402 : vector<1x512xf32>
    %c0_291 = arith.constant 0 : index
    %c74_292 = arith.constant 74 : index
    %404 = vector.load %arg5[%c0_291, %c74_292] : memref<4x658xf32, #tpu.memory_space<vmem>>, vector<4x512xf32>
    %cst_293 = arith.constant 0.000000e+00 : f32
    %405 = vector.shape_cast %403 : vector<1x512xi1> to vector<1x512xi1>
    %406 = vector.broadcast %405 : vector<1x512xi1> to vector<4x512xi1>
    %407 = vector.broadcast %cst_293 : f32 to vector<4x512xf32>
    %408 = arith.select %406, %404, %407 : vector<4x512xi1>, vector<4x512xf32>
    %c56_294 = arith.constant 56 : index
    %c0_295 = arith.constant 0 : index
    %409 = vector.load %arg6[%c56_294, %c0_295] : memref<108x512xf32, #tpu.memory_space<vmem>>, vector<4x512xf32>
    tpu.vector_store %arg6[%c56_294, %c0_295], %408 {strides = array<i32>} : memref<108x512xf32, #tpu.memory_space<vmem>>, vector<4x512xf32>,
    %c15_296 = arith.constant 15 : index
    %c0_297 = arith.constant 0 : index
    %410 = vector.load %arg1[%c15_296, %c0_297] : memref<27x512xf32, #tpu.memory_space<vmem>>, vector<1x512xf32>
    %cst_298 = arith.constant 0.000000e+00 : f32
    %411 = vector.broadcast %cst_298 : f32 to vector<1x512xf32>
    %412 = arith.cmpf one, %410, %411 : vector<1x512xf32>
    %c0_299 = arith.constant 0 : index
    %c80_300 = arith.constant 80 : index
    %413 = vector.load %arg5[%c0_299, %c80_300] : memref<4x658xf32, #tpu.memory_space<vmem>>, vector<4x512xf32>
    %cst_301 = arith.constant 0.000000e+00 : f32
    %414 = vector.shape_cast %412 : vector<1x512xi1> to vector<1x512xi1>
    %415 = vector.broadcast %414 : vector<1x512xi1> to vector<4x512xi1>
    %416 = vector.broadcast %cst_301 : f32 to vector<4x512xf32>
    %417 = arith.select %415, %413, %416 : vector<4x512xi1>, vector<4x512xf32>
    %c60_302 = arith.constant 60 : index
    %c0_303 = arith.constant 0 : index
    %418 = vector.load %arg6[%c60_302, %c0_303] : memref<108x512xf32, #tpu.memory_space<vmem>>, vector<4x512xf32>
    tpu.vector_store %arg6[%c60_302, %c0_303], %417 {strides = array<i32>} : memref<108x512xf32, #tpu.memory_space<vmem>>, vector<4x512xf32>,
    %c16_304 = arith.constant 16 : index
    %c0_305 = arith.constant 0 : index
    %419 = vector.load %arg1[%c16_304, %c0_305] : memref<27x512xf32, #tpu.memory_space<vmem>>, vector<1x512xf32>
    %cst_306 = arith.constant 0.000000e+00 : f32
    %420 = vector.broadcast %cst_306 : f32 to vector<1x512xf32>
    %421 = arith.cmpf one, %419, %420 : vector<1x512xf32>
    %c0_307 = arith.constant 0 : index
    %c81_308 = arith.constant 81 : index
    %422 = vector.load %arg5[%c0_307, %c81_308] : memref<4x658xf32, #tpu.memory_space<vmem>>, vector<4x512xf32>
    %cst_309 = arith.constant 0.000000e+00 : f32
    %423 = vector.shape_cast %421 : vector<1x512xi1> to vector<1x512xi1>
    %424 = vector.broadcast %423 : vector<1x512xi1> to vector<4x512xi1>
    %425 = vector.broadcast %cst_309 : f32 to vector<4x512xf32>
    %426 = arith.select %424, %422, %425 : vector<4x512xi1>, vector<4x512xf32>
    %c64_310 = arith.constant 64 : index
    %c0_311 = arith.constant 0 : index
    %427 = vector.load %arg6[%c64_310, %c0_311] : memref<108x512xf32, #tpu.memory_space<vmem>>, vector<4x512xf32>
    tpu.vector_store %arg6[%c64_310, %c0_311], %426 {strides = array<i32>} : memref<108x512xf32, #tpu.memory_space<vmem>>, vector<4x512xf32>,
    %c17_312 = arith.constant 17 : index
    %c0_313 = arith.constant 0 : index
    %428 = vector.load %arg1[%c17_312, %c0_313] : memref<27x512xf32, #tpu.memory_space<vmem>>, vector<1x512xf32>
    %cst_314 = arith.constant 0.000000e+00 : f32
    %429 = vector.broadcast %cst_314 : f32 to vector<1x512xf32>
    %430 = arith.cmpf one, %428, %429 : vector<1x512xf32>
    %c0_315 = arith.constant 0 : index
    %c82_316 = arith.constant 82 : index
    %431 = vector.load %arg5[%c0_315, %c82_316] : memref<4x658xf32, #tpu.memory_space<vmem>>, vector<4x512xf32>
    %cst_317 = arith.constant 0.000000e+00 : f32
    %432 = vector.shape_cast %430 : vector<1x512xi1> to vector<1x512xi1>
    %433 = vector.broadcast %432 : vector<1x512xi1> to vector<4x512xi1>
    %434 = vector.broadcast %cst_317 : f32 to vector<4x512xf32>
    %435 = arith.select %433, %431, %434 : vector<4x512xi1>, vector<4x512xf32>
    %c68_318 = arith.constant 68 : index
    %c0_319 = arith.constant 0 : index
    %436 = vector.load %arg6[%c68_318, %c0_319] : memref<108x512xf32, #tpu.memory_space<vmem>>, vector<4x512xf32>
    tpu.vector_store %arg6[%c68_318, %c0_319], %435 {strides = array<i32>} : memref<108x512xf32, #tpu.memory_space<vmem>>, vector<4x512xf32>,
    %c18_320 = arith.constant 18 : index
    %c0_321 = arith.constant 0 : index
    %437 = vector.load %arg1[%c18_320, %c0_321] : memref<27x512xf32, #tpu.memory_space<vmem>>, vector<1x512xf32>
    %cst_322 = arith.constant 0.000000e+00 : f32
    %438 = vector.broadcast %cst_322 : f32 to vector<1x512xf32>
    %439 = arith.cmpf one, %437, %438 : vector<1x512xf32>
    %c0_323 = arith.constant 0 : index
    %c128_324 = arith.constant 128 : index
    %440 = vector.load %arg5[%c0_323, %c128_324] : memref<4x658xf32, #tpu.memory_space<vmem>>, vector<4x512xf32>
    %cst_325 = arith.constant 0.000000e+00 : f32
    %441 = vector.shape_cast %439 : vector<1x512xi1> to vector<1x512xi1>
    %442 = vector.broadcast %441 : vector<1x512xi1> to vector<4x512xi1>
    %443 = vector.broadcast %cst_325 : f32 to vector<4x512xf32>
    %444 = arith.select %442, %440, %443 : vector<4x512xi1>, vector<4x512xf32>
    %c72_326 = arith.constant 72 : index
    %c0_327 = arith.constant 0 : index
    %445 = vector.load %arg6[%c72_326, %c0_327] : memref<108x512xf32, #tpu.memory_space<vmem>>, vector<4x512xf32>
    tpu.vector_store %arg6[%c72_326, %c0_327], %444 {strides = array<i32>} : memref<108x512xf32, #tpu.memory_space<vmem>>, vector<4x512xf32>,
    %c19_328 = arith.constant 19 : index
    %c0_329 = arith.constant 0 : index
    %446 = vector.load %arg1[%c19_328, %c0_329] : memref<27x512xf32, #tpu.memory_space<vmem>>, vector<1x512xf32>
    %cst_330 = arith.constant 0.000000e+00 : f32
    %447 = vector.broadcast %cst_330 : f32 to vector<1x512xf32>
    %448 = arith.cmpf one, %446, %447 : vector<1x512xf32>
    %c0_331 = arith.constant 0 : index
    %c129_332 = arith.constant 129 : index
    %449 = vector.load %arg5[%c0_331, %c129_332] : memref<4x658xf32, #tpu.memory_space<vmem>>, vector<4x512xf32>
    %cst_333 = arith.constant 0.000000e+00 : f32
    %450 = vector.shape_cast %448 : vector<1x512xi1> to vector<1x512xi1>
    %451 = vector.broadcast %450 : vector<1x512xi1> to vector<4x512xi1>
    %452 = vector.broadcast %cst_333 : f32 to vector<4x512xf32>
    %453 = arith.select %451, %449, %452 : vector<4x512xi1>, vector<4x512xf32>
    %c76_334 = arith.constant 76 : index
    %c0_335 = arith.constant 0 : index
    %454 = vector.load %arg6[%c76_334, %c0_335] : memref<108x512xf32, #tpu.memory_space<vmem>>, vector<4x512xf32>
    tpu.vector_store %arg6[%c76_334, %c0_335], %453 {strides = array<i32>} : memref<108x512xf32, #tpu.memory_space<vmem>>, vector<4x512xf32>,
    %c20_336 = arith.constant 20 : index
    %c0_337 = arith.constant 0 : index
    %455 = vector.load %arg1[%c20_336, %c0_337] : memref<27x512xf32, #tpu.memory_space<vmem>>, vector<1x512xf32>
    %cst_338 = arith.constant 0.000000e+00 : f32
    %456 = vector.broadcast %cst_338 : f32 to vector<1x512xf32>
    %457 = arith.cmpf one, %455, %456 : vector<1x512xf32>
    %c0_339 = arith.constant 0 : index
    %c130_340 = arith.constant 130 : index
    %458 = vector.load %arg5[%c0_339, %c130_340] : memref<4x658xf32, #tpu.memory_space<vmem>>, vector<4x512xf32>
    %cst_341 = arith.constant 0.000000e+00 : f32
    %459 = vector.shape_cast %457 : vector<1x512xi1> to vector<1x512xi1>
    %460 = vector.broadcast %459 : vector<1x512xi1> to vector<4x512xi1>
    %461 = vector.broadcast %cst_341 : f32 to vector<4x512xf32>
    %462 = arith.select %460, %458, %461 : vector<4x512xi1>, vector<4x512xf32>
    %c80_342 = arith.constant 80 : index
    %c0_343 = arith.constant 0 : index
    %463 = vector.load %arg6[%c80_342, %c0_343] : memref<108x512xf32, #tpu.memory_space<vmem>>, vector<4x512xf32>
    tpu.vector_store %arg6[%c80_342, %c0_343], %462 {strides = array<i32>} : memref<108x512xf32, #tpu.memory_space<vmem>>, vector<4x512xf32>,
    %c21_344 = arith.constant 21 : index
    %c0_345 = arith.constant 0 : index
    %464 = vector.load %arg1[%c21_344, %c0_345] : memref<27x512xf32, #tpu.memory_space<vmem>>, vector<1x512xf32>
    %cst_346 = arith.constant 0.000000e+00 : f32
    %465 = vector.broadcast %cst_346 : f32 to vector<1x512xf32>
    %466 = arith.cmpf one, %464, %465 : vector<1x512xf32>
    %c0_347 = arith.constant 0 : index
    %c136_348 = arith.constant 136 : index
    %467 = vector.load %arg5[%c0_347, %c136_348] : memref<4x658xf32, #tpu.memory_space<vmem>>, vector<4x512xf32>
    %cst_349 = arith.constant 0.000000e+00 : f32
    %468 = vector.shape_cast %466 : vector<1x512xi1> to vector<1x512xi1>
    %469 = vector.broadcast %468 : vector<1x512xi1> to vector<4x512xi1>
    %470 = vector.broadcast %cst_349 : f32 to vector<4x512xf32>
    %471 = arith.select %469, %467, %470 : vector<4x512xi1>, vector<4x512xf32>
    %c84_350 = arith.constant 84 : index
    %c0_351 = arith.constant 0 : index
    %472 = vector.load %arg6[%c84_350, %c0_351] : memref<108x512xf32, #tpu.memory_space<vmem>>, vector<4x512xf32>
    tpu.vector_store %arg6[%c84_350, %c0_351], %471 {strides = array<i32>} : memref<108x512xf32, #tpu.memory_space<vmem>>, vector<4x512xf32>,
    %c22_352 = arith.constant 22 : index
    %c0_353 = arith.constant 0 : index
    %473 = vector.load %arg1[%c22_352, %c0_353] : memref<27x512xf32, #tpu.memory_space<vmem>>, vector<1x512xf32>
    %cst_354 = arith.constant 0.000000e+00 : f32
    %474 = vector.broadcast %cst_354 : f32 to vector<1x512xf32>
    %475 = arith.cmpf one, %473, %474 : vector<1x512xf32>
    %c0_355 = arith.constant 0 : index
    %c137_356 = arith.constant 137 : index
    %476 = vector.load %arg5[%c0_355, %c137_356] : memref<4x658xf32, #tpu.memory_space<vmem>>, vector<4x512xf32>
    %cst_357 = arith.constant 0.000000e+00 : f32
    %477 = vector.shape_cast %475 : vector<1x512xi1> to vector<1x512xi1>
    %478 = vector.broadcast %477 : vector<1x512xi1> to vector<4x512xi1>
    %479 = vector.broadcast %cst_357 : f32 to vector<4x512xf32>
    %480 = arith.select %478, %476, %479 : vector<4x512xi1>, vector<4x512xf32>
    %c88_358 = arith.constant 88 : index
    %c0_359 = arith.constant 0 : index
    %481 = vector.load %arg6[%c88_358, %c0_359] : memref<108x512xf32, #tpu.memory_space<vmem>>, vector<4x512xf32>
    tpu.vector_store %arg6[%c88_358, %c0_359], %480 {strides = array<i32>} : memref<108x512xf32, #tpu.memory_space<vmem>>, vector<4x512xf32>,
    %c23_360 = arith.constant 23 : index
    %c0_361 = arith.constant 0 : index
    %482 = vector.load %arg1[%c23_360, %c0_361] : memref<27x512xf32, #tpu.memory_space<vmem>>, vector<1x512xf32>
    %cst_362 = arith.constant 0.000000e+00 : f32
    %483 = vector.broadcast %cst_362 : f32 to vector<1x512xf32>
    %484 = arith.cmpf one, %482, %483 : vector<1x512xf32>
    %c0_363 = arith.constant 0 : index
    %c138_364 = arith.constant 138 : index
    %485 = vector.load %arg5[%c0_363, %c138_364] : memref<4x658xf32, #tpu.memory_space<vmem>>, vector<4x512xf32>
    %cst_365 = arith.constant 0.000000e+00 : f32
    %486 = vector.shape_cast %484 : vector<1x512xi1> to vector<1x512xi1>
    %487 = vector.broadcast %486 : vector<1x512xi1> to vector<4x512xi1>
    %488 = vector.broadcast %cst_365 : f32 to vector<4x512xf32>
    %489 = arith.select %487, %485, %488 : vector<4x512xi1>, vector<4x512xf32>
    %c92_366 = arith.constant 92 : index
    %c0_367 = arith.constant 0 : index
    %490 = vector.load %arg6[%c92_366, %c0_367] : memref<108x512xf32, #tpu.memory_space<vmem>>, vector<4x512xf32>
    tpu.vector_store %arg6[%c92_366, %c0_367], %489 {strides = array<i32>} : memref<108x512xf32, #tpu.memory_space<vmem>>, vector<4x512xf32>,
    %c24_368 = arith.constant 24 : index
    %c0_369 = arith.constant 0 : index
    %491 = vector.load %arg1[%c24_368, %c0_369] : memref<27x512xf32, #tpu.memory_space<vmem>>, vector<1x512xf32>
    %cst_370 = arith.constant 0.000000e+00 : f32
    %492 = vector.broadcast %cst_370 : f32 to vector<1x512xf32>
    %493 = arith.cmpf one, %491, %492 : vector<1x512xf32>
    %c0_371 = arith.constant 0 : index
    %c144_372 = arith.constant 144 : index
    %494 = vector.load %arg5[%c0_371, %c144_372] : memref<4x658xf32, #tpu.memory_space<vmem>>, vector<4x512xf32>
    %cst_373 = arith.constant 0.000000e+00 : f32
    %495 = vector.shape_cast %493 : vector<1x512xi1> to vector<1x512xi1>
    %496 = vector.broadcast %495 : vector<1x512xi1> to vector<4x512xi1>
    %497 = vector.broadcast %cst_373 : f32 to vector<4x512xf32>
    %498 = arith.select %496, %494, %497 : vector<4x512xi1>, vector<4x512xf32>
    %c96_374 = arith.constant 96 : index
    %c0_375 = arith.constant 0 : index
    %499 = vector.load %arg6[%c96_374, %c0_375] : memref<108x512xf32, #tpu.memory_space<vmem>>, vector<4x512xf32>
    tpu.vector_store %arg6[%c96_374, %c0_375], %498 {strides = array<i32>} : memref<108x512xf32, #tpu.memory_space<vmem>>, vector<4x512xf32>,
    %c25_376 = arith.constant 25 : index
    %c0_377 = arith.constant 0 : index
    %500 = vector.load %arg1[%c25_376, %c0_377] : memref<27x512xf32, #tpu.memory_space<vmem>>, vector<1x512xf32>
    %cst_378 = arith.constant 0.000000e+00 : f32
    %501 = vector.broadcast %cst_378 : f32 to vector<1x512xf32>
    %502 = arith.cmpf one, %500, %501 : vector<1x512xf32>
    %c0_379 = arith.constant 0 : index
    %c145_380 = arith.constant 145 : index
    %503 = vector.load %arg5[%c0_379, %c145_380] : memref<4x658xf32, #tpu.memory_space<vmem>>, vector<4x512xf32>
    %cst_381 = arith.constant 0.000000e+00 : f32
    %504 = vector.shape_cast %502 : vector<1x512xi1> to vector<1x512xi1>
    %505 = vector.broadcast %504 : vector<1x512xi1> to vector<4x512xi1>
    %506 = vector.broadcast %cst_381 : f32 to vector<4x512xf32>
    %507 = arith.select %505, %503, %506 : vector<4x512xi1>, vector<4x512xf32>
    %c100_382 = arith.constant 100 : index
    %c0_383 = arith.constant 0 : index
    %508 = vector.load %arg6[%c100_382, %c0_383] : memref<108x512xf32, #tpu.memory_space<vmem>>, vector<4x512xf32>
    tpu.vector_store %arg6[%c100_382, %c0_383], %507 {strides = array<i32>} : memref<108x512xf32, #tpu.memory_space<vmem>>, vector<4x512xf32>,
    %c26_384 = arith.constant 26 : index
    %c0_385 = arith.constant 0 : index
    %509 = vector.load %arg1[%c26_384, %c0_385] : memref<27x512xf32, #tpu.memory_space<vmem>>, vector<1x512xf32>
    %cst_386 = arith.constant 0.000000e+00 : f32
    %510 = vector.broadcast %cst_386 : f32 to vector<1x512xf32>
    %511 = arith.cmpf one, %509, %510 : vector<1x512xf32>
    %c0_387 = arith.constant 0 : index
    %c146_388 = arith.constant 146 : index
    %512 = vector.load %arg5[%c0_387, %c146_388] : memref<4x658xf32, #tpu.memory_space<vmem>>, vector<4x512xf32>
    %cst_389 = arith.constant 0.000000e+00 : f32
    %513 = vector.shape_cast %511 : vector<1x512xi1> to vector<1x512xi1>
    %514 = vector.broadcast %513 : vector<1x512xi1> to vector<4x512xi1>
    %515 = vector.broadcast %cst_389 : f32 to vector<4x512xf32>
    %516 = arith.select %514, %512, %515 : vector<4x512xi1>, vector<4x512xf32>
    %c104_390 = arith.constant 104 : index
    %c0_391 = arith.constant 0 : index
    %517 = vector.load %arg6[%c104_390, %c0_391] : memref<108x512xf32, #tpu.memory_space<vmem>>, vector<4x512xf32>
    tpu.vector_store %arg6[%c104_390, %c0_391], %516 {strides = array<i32>} : memref<108x512xf32, #tpu.memory_space<vmem>>, vector<4x512xf32>,
    %c0_392 = arith.constant 0 : index
    %c0_393 = arith.constant 0 : index
    %518 = vector.load %arg6[%c0_392, %c0_393] : memref<108x512xf32, #tpu.memory_space<vmem>>, vector<108x512xf32>
    %cst_394 = arith.constant dense<0.000000e+00> : vector<4x512xf32>
    %519 = tpu.matmul %273, %518, %cst_394 {dimension_numbers = #tpu.dot_dimension_numbers<[1], [0], [0], [1], [0, 0, 1, 1], [], []>} : vector<4x108xf32>, vector<108x512xf32>, vector<4x512xf32> -> vector<4x512xf32>
    %cst_395 = arith.constant dense<0.000000e+00> : vector<4xf32>
    %520 = vector.multi_reduction <add>, %519, %cst_395 [1] : vector<4x512xf32> to vector<4xf32>
    %521 = vector.shape_cast %520 : vector<4xf32> to vector<4x1xf32>
    %522 = arith.mulf %519, %519 : vector<4x512xf32>
    %cst_396 = arith.constant dense<0.000000e+00> : vector<4xf32>
    %523 = vector.multi_reduction <add>, %522, %cst_396 [1] : vector<4x512xf32> to vector<4xf32>
    %524 = vector.shape_cast %523 : vector<4xf32> to vector<4x1xf32>
    %cst_397 = arith.constant 0.001953125 : f32
    %525 = vector.broadcast %cst_397 : f32 to vector<4x1xf32>
    %526 = arith.mulf %521, %525 : vector<4x1xf32>
    %cst_398 = arith.constant 0.001953125 : f32
    %527 = vector.broadcast %cst_398 : f32 to vector<4x1xf32>
    %528 = arith.mulf %524, %527 : vector<4x1xf32>
    %529 = arith.mulf %526, %526 : vector<4x1xf32>
    %530 = arith.subf %528, %529 : vector<4x1xf32>
    %cst_399 = arith.constant 0.000000e+00 : f32
    %531 = vector.broadcast %cst_399 : f32 to vector<4x1xf32>
    %532 = arith.maximumf %530, %531 : vector<4x1xf32>
    %533 = vector.broadcast %526 : vector<4x1xf32> to vector<4x512xf32>
    %534 = arith.subf %519, %533 : vector<4x512xf32>
    %cst_400 = arith.constant 9.99999974E-6 : f32
    %535 = vector.broadcast %cst_400 : f32 to vector<4x1xf32>
    %536 = arith.addf %532, %535 : vector<4x1xf32>
    %537 = math.rsqrt %536 : vector<4x1xf32>
    %538 = vector.broadcast %537 : vector<4x1xf32> to vector<4x512xf32>
    %539 = arith.mulf %534, %538 : vector<4x512xf32>
    %cst_401 = arith.constant 0.000000e+00 : f32
    %540 = vector.broadcast %cst_401 : f32 to vector<4x512xf32>
    %541 = arith.maximumf %539, %540 : vector<4x512xf32>
    %542 = arith.truncf %541 : vector<4x512xf32> to vector<4x512xbf16>
    %c0_402 = arith.constant 0 : index
    %c0_403 = arith.constant 0 : index
    %c0_404 = arith.constant 0 : index
    %543 = vector.load %arg4[%c0_402, %c0_403, %c0_404] : memref<1x4x512xbf16, #tpu.memory_space<vmem>>, vector<1x4x512xbf16>
    %544 = vector.shape_cast %543 : vector<1x4x512xbf16> to vector<4x512xbf16>
    %545 = vector.shape_cast %542 : vector<4x512xbf16> to vector<1x4x512xbf16>
    tpu.vector_store %arg4[%c0_402, %c0_403, %c0_404], %545 {strides = array<i32>} : memref<1x4x512xbf16, #tpu.memory_space<vmem>>, vector<1x4x512xbf16>,
    return
  }
  func.func @transform_0(%arg0: i32) -> (i32, i32) {
    %c0_i32 = arith.constant 0 : i32
    %c0_i32_0 = arith.constant 0 : i32
    %c0_i32_1 = arith.constant 0 : i32
    return %c0_i32, %c0_i32_0 : i32, i32
  }
  func.func @transform_1(%arg0: i32) -> (i32, i32, i32) {
    %c0_i32 = arith.constant 0 : i32
    %c0_i32_0 = arith.constant 0 : i32
    %c0_i32_1 = arith.constant 0 : i32
    return %arg0, %c0_i32, %c0_i32_0 : i32, i32, i32
  }
  func.func @transform_2(%arg0: i32) -> (i32, i32, i32) {
    %c0_i32 = arith.constant 0 : i32
    %c0_i32_0 = arith.constant 0 : i32
    %c0_i32_1 = arith.constant 0 : i32
    %c0_i32_2 = arith.constant 0 : i32
    return %c0_i32, %c0_i32_0, %c0_i32_1 : i32, i32, i32
  }
  func.func @transform_3(%arg0: i32) -> (i32, i32, i32) {
    %c0_i32 = arith.constant 0 : i32
    %c0_i32_0 = arith.constant 0 : i32
    %c0_i32_1 = arith.constant 0 : i32
    return %arg0, %c0_i32, %c0_i32_0 : i32, i32, i32
  }
}

</mosaic_0001>

<bundles_post_ra>
// kernel: tpu_custom_call.1
= control target key start
LH: loop header
LB: loop body
LE: loop exit
PB: predicated region body
PF: predicated region fallthrough
CT: control target
= control target key end

     0   :  { %8 = vsyncpa [#allocation5], 0  ;;  %s7512_s0 = inlined_call_operand.hbm [shape: f32[27,512], index: 0, kind: input, shape index: {}]   ;;  %s7513_s1 = inlined_call_operand.hbm [shape: f32[2,4,512], index: 1, kind: input, shape index: {}]   ;;  %s7514_s2 = inlined_call_operand.hbm [shape: f32[2,4,108], index: 2, kind: input, shape index: {}]   ;;  %s7515_s3 = inlined_call_operand.hbm [shape: bf16[2,4,512], index: 3, kind: output, shape index: {}]  }
   0x1   :  { %9 = vsyncpa [#allocation8], 0 }
   0x2   :  { %11 = vsyncpa [#allocation8 + $0x1], 0 }
   0x3   :  { %12 = vsyncpa [#allocation6], 0 }
   0x4   :  { %14 = vsyncpa [#allocation6 + $0x1], 0  ;;  %s4614_s12 = smov 0   ;;  %s4616_s13 = smov 0  }
   0x5   :  { %s4618_s14 = smov 0   ;;  %s4620_s15 = smov 0  }
   0x6 LB: > { %s4635_s16 = sadd.s32 4294967295, %s4563_s15   ;;  %s4268_s17 = sadd.s32 4294967294, %s4563_s15   ;;  %s4563_s15 = sphi %s4620_s15, %s8204_s15   ;;  %s4559_s14 = sphi %s4618_s14, %s8203_s14   ;;  %s4555_s13 = sphi %s4616_s13, %s8202_s13   ;;  %s4551_s12 = sphi %s4614_s12, %s8201_s12  }
   0x7   : > { %p61_p0 = scmp.ne.s32.totalorder %s4555_s13, %s4551_s12  ;;  %p7516_p1 = scmp.eq.s32.totalorder %s4635_s16, 0 }
   0x8   : > { %p112_p3 = scmp.eq.s32.totalorder %s4268_s17, 1  ;;  %p4269_p5 = scmp.ge.s32.totalorder %s4563_s15, 1 }
   0x9   : > { %p4644_p4 = por %p7516_p1, %p61_p0  ;;  %p119_p7 = scmp.lt.s32.totalorder %s4563_s15, 3 }
   0xa   : > { %p4649_p6 = por %p112_p3, %p61_p0  ;;  %s4565_s21 = smov [#allocation9]  }
   0xb   : > { %s7589_s18 = scalar_select %p4644_p4, 1, 0 }
   0xc   : > { %s7590_s19 = scalar_select %p4649_p6, 1, 0 }
   0xd   : > { %p4654_p8 = pnand %p4269_p5, %p119_p7  ;;  %s144_s22 = sshll.u32 %s4565_s21, 4  ;;  %s145_s22 = int_to_ptr.vmem [resolvable:$true] %s144_s22 }
   0xe   : > { %s4566_s24 = smov [#allocation4]   ;;  %s4422_s26 = scalar_lea.vmem %s145_s22, 128 }
   0xf   : > { %s7591_s20 = scalar_select %p4654_p8, 1, 0 }
  0x10   : > { %p4314_p9 = pneg %p4654_p8  ;;  %s131_s25 = sshll.u32 %s4566_s24, 4  ;;  %s132_s25 = int_to_ptr.vmem [resolvable:$true] %s131_s25 }
  0x11   : > { %p4423_p13 = scmp.ne.s32.totalorder %s145_s22, %s4422_s26  ;;  %p4430_p5 = scmp.lt.s32.totalorder %s145_s22, %s145_s22 }
  0x12   : > { %p4663_p11 = pnand %p4314_p9, %p7516_p1  ;;  %p4431_p7 = scmp.lt.s32.totalorder %s4422_s26, %s4422_s26 }
  0x14   : > { %p4413_p12 = pneg %p4663_p11  ;;  %p4432_p10 = por %p4431_p7, %p4430_p5 }
  0x16   : > { %p4425_p0 = pnand %p4423_p13, %p4413_p12 }
  0x18   : > { %p4426_p3 = pneg %p4425_p0 }
  0x1a   : > { %p4433_p9 = pnand %p4432_p10, %p4426_p3 }
  0x1c   : > { %4436 = shalt.err (!%p4433_p9)
}
  0x1d   : > { %s4567_s27 = smov 64   ;;  %s4568_s28 = smov 4  }
  0x1e   : > { %4320 = dma.hbm_to_vmem [thread:$0]  (!%p4663_p11), %s7514_s2, 128, %s145_s22, [#allocation8], %s4567_s27, %s4567_s27, %s4568_s28  }
  0x1f   : > { %s4448_s4 = scalar_lea.vmem %s132_s25, 2048  ;;  %p4456_p2 = scmp.lt.s32.totalorder %s132_s25, %s132_s25 }
  0x20   : > { %p4449_p1 = scmp.ne.s32.totalorder %s132_s25, %s4448_s4  ;;  %p4457_p6 = scmp.lt.s32.totalorder %s4448_s4, %s4448_s4 }
  0x22   : > { %p4451_p13 = pnand %p4449_p1, %p4413_p12  ;;  %p4458_p5 = por %p4457_p6, %p4456_p2 }
  0x24   : > { %p4452_p0 = pneg %p4451_p13 }
  0x26   : > { %p4459_p10 = pnand %p4458_p5, %p4452_p0 }
  0x28   : > { %4462 = shalt.err (!%p4459_p10)
}
  0x29   : > { %s4569_s5 = smov 512   ;;  %s4570_s6 = smov 32  }
  0x2a   : > { %4317 = dma.hbm_to_vmem [thread:$0]  (!%p4663_p11), %s7512_s0, 2048, %s132_s25, [#allocation5], %s4569_s5, %s4569_s5, %s4570_s6  }
  0x2b   : > { %s4686_s9 = sadd.s32 1, %s4563_s15   ;;  %s48_s11 = sadd.s32 1, %s4559_s14 }
  0x2c   : > { %s45_s10 = ssub.s32 %s4563_s15, %s4686_s9  ;;  %p55_p2 = scmp.ne.s32.totalorder %s4559_s14, %s4555_s13 }
  0x2d   : > { %p46_p1 = scmp.eq.s32.totalorder %s45_s10, 0  ;;  %p56_p6 = scmp.eq.s32.totalorder %s4563_s15, 0 }
  0x2e   : > { %p7593_p3 = scmp.eq.s32.totalorder %s4635_s16, 1  ;;  %p4331_p9 = scmp.lt.s32.totalorder %s4563_s15, 2 }
  0x2f   : > { %s4695_s17 = scalar_select %p46_p1, %s4559_s14, %s48_s11  }
  0x30   : > { %p57_p12 = por %p56_p6, %p55_p2  ;;  %p4699_p7 = por %p7593_p3, %p55_p2 }
  0x31   : > { %s158_s22 = sand.u32 1, %s4563_s15   ;;  %s160_s23 = sand.u32 1, %s4559_s14  }
  0x32   : > { %s7594_s21 = scalar_select %p4699_p7, 1, 0 }
  0x33   : > { %s4273_s24 = sshll.u32 %s160_s23, 4  ;;  %s4300_s25 = sshll.u32 %s4563_s15, 8 }
  0x34   : > { %s4710_s28 = scalar_lea.hbm %s7513_s1, %s4300_s25  ;;  %s162_s29 = scalar_lea.vmem [#allocation7], %s4273_s24 }
  0x35   : > { %s170_s30 = sshll.u32 %s162_s29, 4  ;;  %p4712_p11 = pnand %p4331_p9, %p57_p12  ;;  %s171_s30 = int_to_ptr.vmem [resolvable:$true] %s170_s30 }
  0x36   : > { %s159_s5 = scalar_lea.sflag [#allocation8], %s158_s22  ;;  %s4463_s6 = scalar_lea.hbm %s4710_s28, 256 }
  0x37   : > { %p4464_p13 = scmp.ne.s32.totalorder %s4710_s28, %s4463_s6  ;;  %p4465_p0 = pneg %p4712_p11 }
  0x38   : > { %s4468_s10 = scalar_lea.hbm %s7513_s1, 512  ;;  %p4469_p1 = scmp.lt.s32.totalorder %s4710_s28, %s7513_s1 }
  0x39   : > { %p4466_p5 = pnand %p4465_p0, %p4464_p13  ;;  %p4470_p2 = scmp.lt.s32.totalorder %s4468_s10, %s4463_s6 }
  0x3b   : > { %p4467_p10 = pneg %p4466_p5  ;;  %p4471_p6 = por %p4470_p2, %p4469_p1 }
  0x3d   : > { %p4472_p12 = pnand %p4471_p6, %p4467_p10 }
  0x3f   : > { %4475 = shalt.err (!%p4472_p12)
}
  0x40   : > { %s4476_s24 = scalar_lea.vmem %s171_s30, 256  ;;  %s4571_s22 = smov [#allocation7]  }
  0x41   : > { %p4477_p3 = scmp.ne.s32.totalorder %s171_s30, %s4476_s24  ;;  %s4481_s25 = sshll.u32 %s4571_s22, 4  ;;  %s4482_s25 = int_to_ptr.vmem [resolvable:$false] %s4481_s25 }
  0x42   : > { %s4483_s26 = scalar_lea.vmem %s4482_s25, 512  ;;  %p4484_p13 = scmp.lt.s32.totalorder %s171_s30, %s4482_s25 }
  0x43   : > { %p4479_p9 = pnand %p4477_p3, %p4465_p0  ;;  %p4485_p5 = scmp.lt.s32.totalorder %s4483_s26, %s4476_s24 }
  0x45   : > { %p4480_p7 = pneg %p4479_p9  ;;  %p4486_p4 = por %p4485_p5, %p4484_p13 }
  0x47   : > { %p4487_p8 = pnand %p4486_p4, %p4480_p7 }
  0x49   : > { %4490 = shalt.err (!%p4487_p8)
}
  0x4a   : > { %4324 = dma.hbm_to_vmem [thread:$0]  (!%p4712_p11), %s4710_s28, 256, %s171_s30, %s159_s5  }
  0x4b   : > { %p7596_p10 = scmp.ne.s32.totalorder %s7591_s20, 0 }
  0x4d   : > { %179 = sbr.rel (%p7596_p10) target bundleno = 1846 (0x736), region = 32 }
  0x52   : > { %p7597_p1 = scmp.eq.s32.totalorder %s4635_s16, 0 }
  0x54   : > { %4534 = dma.done.wait (%p7597_p1), [#allocation5], 2048   ;;  %p7598_p0 = pmov %p7597_p1 }
  0x55   : > { %s185_s27 = sand.u32 1, %s4635_s16   ;;  %s4738_s29 = sand.u32 1, %s4555_s13  }
  0x56   : > { %4536 = vsyncadd (%p7598_p0), [#allocation5], 4294965248  ;;  %s4278_s6 = sshll.u32 %s4738_s29, 4  ;;  %s186_s4 = scalar_lea.sflag [#allocation8], %s185_s27 }
  0x57   : > { %s189_s7 = scalar_lea.vmem [#allocation7], %s4278_s6  ;;  %p7599_p4 = scmp.ne.s32.totalorder %s7589_s18, 0 }
  0x59   : > { %4538 = dma.done.wait (%p7599_p4), %s186_s4, 256  }
  0x5a   : > { %4540 = vsyncadd (%p7599_p4), %s186_s4, 4294967040  ;;  %p7600_p8 = pmov %p7598_p0 }
  0x5b   : > { %p7601_p7 = pmov %p7598_p0 }
  0x5c   : > { %4542 = dma.done.wait (%p7600_p8), [#allocation8], 128  }
  0x5d   : > { %4544 = vsyncadd (%p7601_p7), [#allocation8], 4294967168  ;;  %v216_v0 = vld [vmem:[%s189_s7] sm:$0xff]  ;;  %v1821_v1 = vld [vmem:[#allocation2 + $0x14] sm:$0xf]  ;;  %s4572_s20 = smov 73   ;;  %v247_v10 = vlaneseq }
  0x5e   : > { %221 = vrot.lane.b32.xlu0 %v216_v0, %s4572_s20  ;;  %s4573_s28 = smov 111   ;;  %v217_v2 = vld [vmem:[%s189_s7 + $0x8] sm:$0xff]  ;;  %s4574_s18 = smov 110   ;;  %vm235_vm0 = vcmask 1044040   ;;  %vm236_vm1 = vcmask 1047556   ;;  %vm7528_vm3 = vcmask 596992  }
  0x5f   : > { %1856 = vrot.lane.b32.xlu1 %v1821_v1, %s4573_s28  ;;  %v1891_v3 = vld [vmem:[#allocation2 + $0x14] sm:$0xf]  ;;  %s4575_s30 = smov 118   ;;  %s4576_s5 = smov 127   ;;  %v4759_v12 = vshrl.u32 %v247_v10, 7  ;;  %vm4761_vm4 = vmor %vm236_vm1, %vm235_vm0  ;;  %v7603_v14 = vmov 0 }
  0x60   : > { %v1693_v4 = vld [vmem:[#allocation2 + $0x14] sm:$0xf]  ;;  %s4577_s8 = smov 112   ;;  %s4578_s10 = smov 126   ;;  %v7604_v14 = vsel %vm4761_vm4, 4294967295, %v7603_v14  ;;  %v7522_v18 = vmov 0  }
  0x61   : > { %v1437_v5 = vld [vmem:[#allocation2 + $0x14] sm:$0xf]  ;;  %s4579_s11 = smov 120   ;;  %s4580_s23 = smov 119   ;;  %7602 = vst [vmem:[#allocation15_spill] sm:$0xff] %v4759_v12  ;;  %7605 = vst [vmem:[#allocation16_spill] sm:$0xff] %v7604_v14 }
  0x62   : > { %223 = vrot.lane.b32.xlu0 %v217_v2, %s4572_s20  ;;  %v1763_v6 = vld [vmem:[#allocation2 + $0x14] sm:$0xf]  ;;  %v242_v11 = vld [vmem:[#allocation4] ss:$8 sm:$0xf]  ;;  %v4766_v16 = vsub.s32 0, %v4759_v12 }
  0x63   : > { %1926 = vrot.lane.b32.xlu1 %v1891_v3, %s4574_s18  ;;  %v1507_v7 = vld [vmem:[#allocation2 + $0x14] sm:$0xf]  ;;  %vm243_vm2 = vcmp.ne.f32.partialorder %v242_v11, 0.0  ;;  %v1393_v17 = vld [vmem:[#allocation4 + $0x42] ss:$8 sm:$0xf] }
  0x64   : > { %v1565_v8 = vld [vmem:[#allocation2 + $0x14] sm:$0xf]  ;;  %v246_v19 = vsel %vm243_vm2, 1, %v7522_v18  ;;  %vm7533_vm5 = vcmask 1043456   ;;  %vm7532_vm6 = vcmask 592896   ;;  %v4773_v23 = vsub.s32 1, %v4759_v12 }
  0x65   : > { %v1635_v9 = vld [vmem:[#allocation2 + $0x14] sm:$0xf]  ;;  %vm1394_vm7 = vcmp.ne.f32.partialorder %v1393_v17, 0.0  ;;  %v250_v24 = vrot.slane %v246_v19, %v4766_v16  ;;  %v4784_v28 = vsub.s32 3, %v4759_v12  ;;  %v4788_v30 = vsub.s32 2, %v4759_v12  ;;  %s4582_s24 = smov 48  }
  0x66   : > { %1472 = vrot.lane.b32.xlu0 %v1437_v5, %s4576_s5  ;;  %v1397_v27 = vsel %vm1394_vm7, 1, %v7522_v18  ;;  %v254_v29 = vrot.slane %v246_v19, %v4773_v23  ;;  %s7520_s22 = smov 46   ;;  %s4584_s25 = smov 55   ;;  %v1263_v44 = vld [vmem:[#allocation4 + $0x40] ss:$8 sm:$0xf] }
  0x67   : > { %1728 = vrot.lane.b32.xlu1 %v1693_v4, %s4575_s30  ;;  %vm263_vm8 = vcmp.eq.s32.totalorder %v250_v24, 1  ;;  %v1401_v32 = vrot.slane %v1397_v27, %v4766_v16  ;;  %v1405_v33 = vrot.slane %v1397_v27, %v4773_v23  ;;  %v1413_v36 = vrot.slane %v1397_v27, %v4784_v28  ;;  %s4585_s26 = smov 62   ;;  %s4586_s27 = smov 47  }
  0x68   : > { %vm4802_vm9 = vcmp.eq.s32.totalorder %v254_v29, 1  ;;  %v1409_v39 = vrot.slane %v1397_v27, %v4788_v30  ;;  %v258_v41 = vrot.slane %v246_v19, %v4788_v30  ;;  %v262_v48 = vrot.slane %v246_v19, %v4784_v28  ;;  %s4587_s6 = smov 54   ;;  %s4588_s4 = smov 56  }
  0x69   : > { %vm4808_vm10 = vcmp.eq.s32.totalorder %v1401_v32, 1  ;;  %vm4815_vm11 = vcmp.eq.s32.totalorder %v1405_v33, 1  ;;  %vm1417_vm12 = vcmp.eq.s32.totalorder %v1413_v36, 1  ;;  %s4589_s7 = smov 64   ;;  %vm1264_vm1 = vcmp.ne.f32.partialorder %v1263_v44, 0.0  ;;  %p8198_p2 = scmp.ne.s32.totalorder %s7594_s21, 0 }
  0x6a   : > { %1542 = vrot.lane.b32.xlu0 %v1507_v7, %s4578_s10  ;;  %vm1416_vm13 = vcmp.eq.s32.totalorder %v1409_v39, 1  ;;  %vm4830_vm14 = vcmp.eq.s32.totalorder %v258_v41, 1  ;;  %vm266_vm15 = vcmp.eq.s32.totalorder %v262_v48, 1  ;;  %v5057_v51 = vsel %vm1264_vm1, 1, %v7522_v18 }
  0x6b   : > { %1798 = vrot.lane.b32.xlu1 %v1763_v6, %s4577_s8  ;;  %7629 = vst [vmem:[#allocation32_spill] sm:$0xff] %v5057_v51  ;;  %v7634_v12 = vmov 0  }
  0x6f   : > { %1600 = vrot.lane.b32.xlu1 %v1565_v8, %s4579_s11 }
  0x73   : > { %1670 = vrot.lane.b32.xlu1 %v1635_v9, %s4580_s23 }
  0xd0   : > { %v222_v13 = vpop.permute.xlu0 %221 }
  0xd1   : > { %v225_v15 = vrot.slane %v222_v13, 4  ;;  %v4893_v60 = vpop.permute.xlu1 %1856 }
  0xd3   : > { %v228_v20 = vsel %vm7528_vm3, %v225_v15, %v222_v13 }
  0xd4   : > { %238 = vst.msk [vmem:[#allocation2] sm:$0xff] %vm4761_vm4, %v228_v20  ;;  %v224_v21 = vpop.permute.xlu0 %223 }
  0xd5   : > { %v226_v22 = vrot.slane %v224_v21, 4  ;;  %v4903_v61 = vpop.permute.xlu1 %1926 }
  0xd6   : > { %7614 = vst [vmem:[#allocation17_spill] sm:$0xff] %v4903_v61 }
  0xd7   : > { %v230_v25 = vsel %vm7533_vm5, %v225_v15, %v226_v22  ;;  %241 = vst.msk [vmem:[#allocation2 + $0x10] sm:$0xf] %vm7532_vm6, %v226_v22 }
  0xd8   : > { %v4779_v26 = vsel %vm7528_vm3, %v230_v25, %v224_v21  ;;  %v4935_v2 = vpop.permute.xlu0 %1472 }
  0xd9   : > { %239 = vst [vmem:[#allocation2 + $0x8] sm:$0xff] %v4779_v26  ;;  %v4909_v62 = vpop.permute.xlu1 %1728  ;;  %v4927_v0 = vcombine.high %v4779_v26, %v4779_v26  ;;  %7618 = vst [vmem:[#allocation21_spill] sm:$0xff] %v4935_v2 }
  0xda   : > { %7615 = vst [vmem:[#allocation18_spill] sm:$0xff] %v4909_v62 }
  0xdb   : > { %v4790_v31 = vld [vmem:[#allocation2] sm:$0xff] }
  0xdc   : > { %1223 = vrot.lane.b32.xlu1 %v4790_v31, %s4582_s24  ;;  %v4798_v34 = vcombine.high %v4790_v31, %v4790_v31  ;;  %v273_v35 = vsel %vm263_vm8, %v4790_v31, 0.0  ;;  %v4945_v4 = vpop.permute.xlu0 %1542 }
  0xdd   : > { %277 = vst [vmem:[#allocation3 + $0xb0] sm:$0xf] %v273_v35  ;;  %v4919_v63 = vpop.permute.xlu1 %1798  ;;  %7620 = vst [vmem:[#allocation23_spill] sm:$0xff] %v4945_v4 }
  0xde   : > { %v1326_v38 = vld [vmem:[#allocation2 + $0x10] sm:$0xf]  ;;  %v274_v45 = vsel %vm4802_vm9, %v4798_v34, 0.0  ;;  %7616 = vst [vmem:[#allocation19_spill] sm:$0xff] %v4919_v63  ;;  %vm7538_vm9 = vcmask 392192  }
  0xdf   : > { %1361 = vrot.lane.b32.xlu0 %v1326_v38, %s7520_s22  ;;  %278 = vst [vmem:[#allocation3 + $0x1b0] sm:$0xf] %v274_v45  ;;  %v1196_v49 = vld [vmem:[#allocation2 + $0x10] sm:$0xf] }
  0xe0   : > { %v1396_v42 = vld [vmem:[#allocation2 + $0xc] sm:$0xff]  ;;  %v1395_v43 = vld [vmem:[#allocation2 + $0x4] sm:$0xff]  ;;  %1093 = vrot.lane.b32.xlu1 %v4790_v31, %s4584_s25 }
  0xe1   : > { %v4822_v46 = vcombine.high %v1395_v43, %v1395_v43  ;;  %v4824_v47 = vcombine.high %v1396_v42, %v1396_v42  ;;  %v1424_v50 = vsel %vm4808_vm10, %v1395_v43, 0.0  ;;  %v1426_v54 = vsel %vm1416_vm13, %v1396_v42, 0.0  ;;  %v245_v55 = vld [vmem:[#allocation2 + $0x8] sm:$0xff]  ;;  %v1267_v56 = vld [vmem:[#allocation2 + $0x10] sm:$0xf]  ;;  %v4929_v1 = vpop.permute.xlu1 %1600 }
  0xe2   : > { %1428 = vst [vmem:[#allocation3 + $0x40] sm:$0xf] %v1424_v50  ;;  %1430 = vst [vmem:[#allocation3 + $0xd0] sm:$0xf] %v1426_v54  ;;  %v270_v57 = vcombine.high %v245_v55, %v245_v55  ;;  %v275_v58 = vsel %vm4830_vm14, %v245_v55, 0.0  ;;  %v5180_v63 = vld [vmem:[#allocation2 + $0x8] sm:$0xff] }
  0xe3   : > { %1231 = vrot.lane.b32.xlu0 %v1196_v49, %s4582_s24  ;;  %v1425_v52 = vsel %vm4815_vm11, %v4822_v46, 0.0  ;;  %v1427_v53 = vsel %vm1417_vm12, %v4824_v47, 0.0  ;;  %279 = vst [vmem:[#allocation3 + $0xd8] sm:$0xf] %v275_v58  ;;  %7617 = vst [vmem:[#allocation20_spill] sm:$0xff] %v4929_v1 }
  0xe4   : > { %963 = vrot.lane.b32.xlu1 %v4790_v31, %s4585_s26  ;;  %1429 = vst [vmem:[#allocation3 + $0xa8] sm:$0xf] %v1425_v52  ;;  %1431 = vst [vmem:[#allocation3 + $0x1a0] sm:$0xf] %v1427_v53  ;;  %v276_v59 = vsel %vm266_vm15, %v270_v57, 0.0 }
  0xe5   : > { %280 = vst [vmem:[#allocation3 + $0x18] sm:$0xf] %v276_v59  ;;  %v4941_v3 = vpop.permute.xlu1 %1670  ;;  %v1066_v20 = vld [vmem:[#allocation2 + $0x10] sm:$0xf] }
  0xe6   : > { %7619 = vst [vmem:[#allocation22_spill] sm:$0xff] %v4941_v3  ;;  %v1137_v24 = vld [vmem:[#allocation2 + $0x10] sm:$0xf]  ;;  %v1689_v57 = vld [vmem:[#allocation4 + $0x47] ss:$8 sm:$0xf] }
  0xe7   : > { %1302 = vrot.lane.b32.xlu0 %v1267_v56, %s4586_s27  ;;  %v936_v38 = vld [vmem:[#allocation2 + $0x10] sm:$0xf]  ;;  %v1133_v56 = vld [vmem:[#allocation4 + $0x26] ss:$8 sm:$0xf]  ;;  %vm1690_vm11 = vcmp.ne.f32.partialorder %v1689_v57, 0.0 }
  0xe8   : > { %1852 = vrot.lane.b32.xlu1 %v1396_v42, %s4573_s28  ;;  %v1007_v41 = vld [vmem:[#allocation2 + $0x10] sm:$0xf]  ;;  %vm1134_vm10 = vcmp.ne.f32.partialorder %v1133_v56, 0.0 }
  0xe9   : > { %v1887_v52 = vld [vmem:[#allocation4 + $0x62] ss:$8 sm:$0xf] }
  0xea   : > { %vm1888_vm8 = vcmp.ne.f32.partialorder %v1887_v52, 0.0  ;;  %v806_v1 = vld [vmem:[#allocation2 + $0x10] sm:$0xf] }
  0xeb   : > { %1353 = vrot.lane.b32.xlu0 %v4790_v31, %s7520_s22  ;;  %v5098_v14 = vsel %vm1888_vm8, 1, %v7634_v12 }
  0xec   : > { %1922 = vrot.lane.b32.xlu1 %v1396_v42, %s4574_s18  ;;  %v1896_v56 = vrot.slane %v5098_v14, %v4766_v16  ;;  %v1900_v57 = vrot.slane %v5098_v14, %v4773_v23 }
  0xee   : > { %vm5172_vm15 = vcmp.eq.s32.totalorder %v1900_v57, 1 }
  0xef   : > { %1294 = vrot.lane.b32.xlu0 %v4790_v31, %s4586_s27 }
  0xf0   : > { %1918 = vrot.lane.b32.xlu1 %v1395_v43, %s4574_s18 }
  0xf3   : > { %1164 = vrot.lane.b32.xlu0 %v4790_v31, %s4587_s6 }
  0xf4   : > { %1724 = vrot.lane.b32.xlu1 %v1396_v42, %s4575_s30 }
  0xf7   : > { %1034 = vrot.lane.b32.xlu0 %v4790_v31, %s4588_s4 }
  0xf8   : > { %1794 = vrot.lane.b32.xlu1 %v1396_v42, %s4577_s8 }
  0xfb   : > { %1848 = vrot.lane.b32.xlu0 %v1395_v43, %s4573_s28 }
  0xfc   : > { %1790 = vrot.lane.b32.xlu1 %v1395_v43, %s4577_s8 }
  0xff   : > { %1720 = vrot.lane.b32.xlu0 %v1395_v43, %s4575_s30 }
 0x100   : > { %1596 = vrot.lane.b32.xlu1 %v1396_v42, %s4579_s11 }
 0x103   : > { %1592 = vrot.lane.b32.xlu0 %v1395_v43, %s4579_s11 }
 0x104   : > { %1666 = vrot.lane.b32.xlu1 %v1396_v42, %s4580_s23 }
 0x107   : > { %1464 = vrot.lane.b32.xlu0 %v1395_v43, %s4576_s5 }
 0x108   : > { %1662 = vrot.lane.b32.xlu1 %v1395_v43, %s4580_s23 }
 0x10b   : > { %1227 = vrot.lane.b32.xlu0 %v4779_v26, %s4582_s24 }
 0x10c   : > { %1468 = vrot.lane.b32.xlu1 %v1396_v42, %s4576_s5 }
 0x10f   : > { %1298 = vrot.lane.b32.xlu0 %v4779_v26, %s4586_s27 }
 0x110   : > { %1538 = vrot.lane.b32.xlu1 %v1396_v42, %s4578_s10  ;;  %v1192_v42 = vld [vmem:[#allocation4 + $0x27] ss:$8 sm:$0xf] }
 0x111   : > { %vm1193_vm0 = vcmp.ne.f32.partialorder %v1192_v42, 0.0 }
 0x112   : > { %v5052_v50 = vsel %vm1193_vm0, 1, %v7522_v18 }
 0x113   : > { %1097 = vrot.lane.b32.xlu0 %v4779_v26, %s4584_s25  ;;  %7628 = vst [vmem:[#allocation31_spill] sm:$0xff] %v5052_v50  ;;  %v1201_v55 = vrot.slane %v5052_v50, %v4766_v16  ;;  %v1205_v59 = vrot.slane %v5052_v50, %v4773_v23 }
 0x114   : > { %1534 = vrot.lane.b32.xlu1 %v1395_v43, %s4578_s10 }
 0x115   : > { %vm5089_vm12 = vcmp.eq.s32.totalorder %v1201_v55, 1  ;;  %vm5102_vm13 = vcmp.eq.s32.totalorder %v1205_v59, 1  ;;  %v5121_v59 = vsel %vm1690_vm11, 1, %v7634_v12 }
 0x116   : > { %7643 = vst [vmem:[#allocation37_spill] sm:$0xff] %v5121_v59 }
 0x117   : > { %1168 = vrot.lane.b32.xlu0 %v4779_v26, %s4587_s6 }
 0x118   : > { %1357 = vrot.lane.b32.xlu1 %v4779_v26, %s7520_s22 }
 0x11b   : > { %967 = vrot.lane.b32.xlu0 %v4779_v26, %s4585_s26 }
 0x11c   : > { %1225 = vrot.lane.b32.xlu1 %v4798_v34, %s4582_s24 }
 0x11f   : > { %1038 = vrot.lane.b32.xlu0 %v4779_v26, %s4588_s4 }
 0x120   : > { %1296 = vrot.lane.b32.xlu1 %v4798_v34, %s4586_s27 }
 0x123   : > { %1355 = vrot.lane.b32.xlu0 %v4798_v34, %s7520_s22 }
 0x124   : > { %1095 = vrot.lane.b32.xlu1 %v4798_v34, %s4584_s25 }
 0x127   : > { %1920 = vrot.lane.b32.xlu0 %v4822_v46, %s4574_s18 }
 0x128   : > { %1166 = vrot.lane.b32.xlu1 %v4798_v34, %s4587_s6 }
 0x12b   : > { %1722 = vrot.lane.b32.xlu0 %v4822_v46, %s4575_s30 }
 0x12c   : > { %965 = vrot.lane.b32.xlu1 %v4798_v34, %s4585_s26 }
 0x12f   : > { %1792 = vrot.lane.b32.xlu0 %v4822_v46, %s4577_s8 }
 0x130   : > { %1036 = vrot.lane.b32.xlu1 %v4798_v34, %s4588_s4 }
 0x133   : > { %1594 = vrot.lane.b32.xlu0 %v4822_v46, %s4579_s11 }
 0x134   : > { %835 = vrot.lane.b32.xlu1 %v4798_v34, %s4589_s7 }
 0x137   : > { %1664 = vrot.lane.b32.xlu0 %v4822_v46, %s4580_s23 }
 0x138   : > { %1850 = vrot.lane.b32.xlu1 %v4822_v46, %s4573_s28 }
 0x13b   : > { %1854 = vrot.lane.b32.xlu0 %v4824_v47, %s4573_s28 }
 0x13c   : > { %1470 = vrot.lane.b32.xlu1 %v4824_v47, %s4576_s5 }
 0x13f   : > { %1924 = vrot.lane.b32.xlu0 %v4824_v47, %s4574_s18 }
 0x140   : > { %1540 = vrot.lane.b32.xlu1 %v4824_v47, %s4578_s10 }
 0x143   : > { %1466 = vrot.lane.b32.xlu0 %v4822_v46, %s4576_s5 }
 0x144   : > { %1359 = vrot.lane.b32.xlu1 %v4927_v0, %s7520_s22  ;;  %s4590_s22 = smov 63  }
 0x147   : > { %1536 = vrot.lane.b32.xlu0 %v4822_v46, %s4578_s10  ;;  %v1322_v46 = vld [vmem:[#allocation4 + $0x41] ss:$8 sm:$0xf] }
 0x148   : > { %1229 = vrot.lane.b32.xlu1 %v4927_v0, %s4582_s24  ;;  %vm1323_vm2 = vcmp.ne.f32.partialorder %v1322_v46, 0.0 }
 0x149   : > { %v5062_v53 = vsel %vm1323_vm2, 1, %v7522_v18  ;;  %vm5168_vm2 = vcmp.eq.s32.totalorder %v1896_v56, 1 }
 0x14a   : > { %v1331_v42 = vrot.slane %v5062_v53, %v4766_v16  ;;  %v1335_v44 = vrot.slane %v5062_v53, %v4773_v23 }
 0x14b   : > { %1726 = vrot.lane.b32.xlu0 %v4824_v47, %s4575_s30 }
 0x14c   : > { %1300 = vrot.lane.b32.xlu1 %v4927_v0, %s4586_s27  ;;  %vm5129_vm8 = vcmp.eq.s32.totalorder %v1335_v44, 1 }
 0x14e   : > { %v4949_v5 = vpop.permute.xlu1 %1223 }
 0x14f   : > { %1796 = vrot.lane.b32.xlu0 %v4824_v47, %s4577_s8 }
 0x150   : > { %906 = vrot.lane.b32.xlu1 %v4798_v34, %s4590_s22 }
 0x151   : > { %v4955_v6 = vpop.permute.xlu0 %1361 }
 0x152   : > { %7621 = vst [vmem:[#allocation24_spill] sm:$0xff] %v4955_v6  ;;  %v4957_v7 = vpop.permute.xlu1 %1093 }
 0x153   : > { %1598 = vrot.lane.b32.xlu0 %v4824_v47, %s4579_s11 }
 0x154   : > { %1099 = vrot.lane.b32.xlu1 %v4927_v0, %s4584_s25 }
 0x155   : > { %v4963_v8 = vpop.permute.xlu0 %1231 }
 0x156   : > { %7622 = vst [vmem:[#allocation25_spill] sm:$0xff] %v4963_v8  ;;  %v4965_v9 = vpop.permute.xlu1 %963  ;;  %v1561_v8 = vld [vmem:[#allocation4 + $0x45] ss:$8 sm:$0xf] }
 0x157   : > { %1668 = vrot.lane.b32.xlu0 %v4824_v47, %s4580_s23  ;;  %v1062_v47 = vld [vmem:[#allocation4 + $0x25] ss:$8 sm:$0xf]  ;;  %vm1562_vm3 = vcmp.ne.f32.partialorder %v1561_v8, 0.0 }
 0x158   : > { %1170 = vrot.lane.b32.xlu1 %v4927_v0, %s4587_s6  ;;  %vm1063_vm7 = vcmp.ne.f32.partialorder %v1062_v47, 0.0 }
 0x159   : > { %v4971_v10 = vpop.permute.xlu0 %1302 }
 0x15a   : > { %7623 = vst [vmem:[#allocation26_spill] sm:$0xff] %v4971_v10  ;;  %v4973_v11 = vpop.permute.xlu1 %1852  ;;  %v5117_v10 = vsel %vm1134_vm10, 1, %v7634_v12 }
 0x15b   : > { %837 = vrot.lane.b32.xlu0 %v4779_v26, %s4589_s7  ;;  %7642 = vst [vmem:[#allocation36_spill] sm:$0xff] %v5117_v10  ;;  %v1142_v4 = vrot.slane %v5117_v10, %v4766_v16 }
 0x15c   : > { %833 = vrot.lane.b32.xlu1 %v4790_v31, %s4589_s7 }
 0x15d   : > { %v4979_v13 = vpop.permute.xlu0 %1353 }
 0x15e   : > { %v4981_v15 = vpop.permute.xlu1 %1922 }
 0x15f   : > { %908 = vrot.lane.b32.xlu0 %v4779_v26, %s4590_s22 }
 0x160   : > { %705 = vrot.lane.b32.xlu1 %v4798_v34, %s4573_s28 }
 0x161   : > { %v4987_v17 = vpop.permute.xlu0 %1294 }
 0x162   : > { %v4989_v19 = vpop.permute.xlu1 %1918 }
 0x163   : > { %1101 = vrot.lane.b32.xlu0 %v1066_v20, %s4584_s25  ;;  %v1272_v20 = vrot.slane %v5057_v51, %v4766_v16 }
 0x164   : > { %776 = vrot.lane.b32.xlu1 %v4798_v34, %s4574_s18 }
 0x165   : > { %v4994_v21 = vpop.permute.xlu0 %1164  ;;  %vm5106_vm14 = vcmp.eq.s32.totalorder %v1272_v20, 1  ;;  %v1759_v20 = vld [vmem:[#allocation4 + $0x60] ss:$8 sm:$0xf] }
 0x166   : > { %v4996_v22 = vpop.permute.xlu1 %1724  ;;  %vm1760_vm6 = vcmp.ne.f32.partialorder %v1759_v20, 0.0 }
 0x167   : > { %1172 = vrot.lane.b32.xlu0 %v1137_v24, %s4587_s6  ;;  %v5075_v24 = vsel %vm1063_vm7, 1, %v7522_v18  ;;  %vm5125_vm7 = vcmp.eq.s32.totalorder %v1331_v42, 1  ;;  %v5188_v57 = vsel %vm1760_vm6, 1, %v7634_v12  ;;  %vm7663_vm6 = vcmask 384000  }
 0x168   : > { %969 = vrot.lane.b32.xlu1 %v4927_v0, %s4585_s26  ;;  %7631 = vst [vmem:[#allocation34_spill] sm:$0xff] %v5075_v24  ;;  %v1071_v52 = vrot.slane %v5075_v24, %v4766_v16  ;;  %v1075_v18 = vrot.slane %v5075_v24, %v4773_v23  ;;  %7657 = vst [vmem:[#allocation39_spill] sm:$0xff] %v5188_v57  ;;  %v1772_v55 = vrot.slane %v5188_v57, %v4773_v23 }
 0x169   : > { %v5001_v25 = vpop.permute.xlu0 %1034 }
 0x16a   : > { %v5003_v27 = vpop.permute.xlu1 %1794  ;;  %vm5139_vm10 = vcmp.eq.s32.totalorder %v1071_v52, 1  ;;  %vm5143_vm11 = vcmp.eq.s32.totalorder %v1075_v18, 1  ;;  %v1146_v52 = vrot.slane %v5117_v10, %v4773_v23 }
 0x16b   : > { %904 = vrot.lane.b32.xlu0 %v4790_v31, %s4590_s22 }
 0x16c   : > { %1040 = vrot.lane.b32.xlu1 %v4927_v0, %s4588_s4 }
 0x16d   : > { %v5009_v29 = vpop.permute.xlu0 %1848 }
 0x16e   : > { %v5011_v32 = vpop.permute.xlu1 %1790 }
 0x16f   : > { %707 = vrot.lane.b32.xlu0 %v4779_v26, %s4573_s28 }
 0x170   : > { %703 = vrot.lane.b32.xlu1 %v4790_v31, %s4573_s28 }
 0x171   : > { %v5017_v33 = vpop.permute.xlu0 %1720 }
 0x172   : > { %v5019_v35 = vpop.permute.xlu1 %1596 }
 0x173   : > { %778 = vrot.lane.b32.xlu0 %v4779_v26, %s4574_s18 }
 0x174   : > { %575 = vrot.lane.b32.xlu1 %v4798_v34, %s4575_s30 }
 0x175   : > { %v5025_v36 = vpop.permute.xlu0 %1592 }
 0x176   : > { %v5027_v37 = vpop.permute.xlu1 %1666 }
 0x177   : > { %971 = vrot.lane.b32.xlu0 %v936_v38, %s4585_s26  ;;  %v1276_v38 = vrot.slane %v5057_v51, %v4773_v23 }
 0x178   : > { %646 = vrot.lane.b32.xlu1 %v4798_v34, %s4577_s8 }
 0x179   : > { %v5032_v39 = vpop.permute.xlu0 %1464  ;;  %vm5111_vm1 = vcmp.eq.s32.totalorder %v1276_v38, 1  ;;  %v1003_v38 = vld [vmem:[#allocation4 + $0x24] ss:$8 sm:$0xf] }
 0x17a   : > { %7624 = vst [vmem:[#allocation27_spill] sm:$0xff] %v5032_v39  ;;  %v5034_v40 = vpop.permute.xlu1 %1662  ;;  %v877_v39 = vld [vmem:[#allocation2 + $0x10] sm:$0xf]  ;;  %vm1004_vm5 = vcmp.ne.f32.partialorder %v1003_v38, 0.0 }
 0x17b   : > { %1042 = vrot.lane.b32.xlu0 %v1007_v41, %s4588_s4  ;;  %v932_v41 = vld [vmem:[#allocation4 + $0x23] ss:$8 sm:$0xf]  ;;  %v1817_v38 = vld [vmem:[#allocation4 + $0x61] ss:$8 sm:$0xf] }
 0x17c   : > { %839 = vrot.lane.b32.xlu1 %v4927_v0, %s4589_s7  ;;  %vm933_vm0 = vcmp.ne.f32.partialorder %v932_v41, 0.0  ;;  %vm1818_vm4 = vcmp.ne.f32.partialorder %v1817_v38, 0.0  ;;  %v1503_v38 = vld [vmem:[#allocation4 + $0x44] ss:$8 sm:$0xf] }
 0x17d   : > { %v5039_v43 = vpop.permute.xlu0 %1227  ;;  %v5149_v44 = vsel %vm933_vm0, 1, %v7634_v12 }
 0x17e   : > { %7625 = vst [vmem:[#allocation28_spill] sm:$0xff] %v5039_v43  ;;  %v5041_v45 = vpop.permute.xlu1 %1468  ;;  %7652 = vst [vmem:[#allocation38_spill] sm:$0xff] %v5149_v44  ;;  %v945_v56 = vrot.slane %v5149_v44, %v4773_v23 }
 0x17f   : > { %774 = vrot.lane.b32.xlu0 %v4790_v31, %s4574_s18 }
 0x180   : > { %910 = vrot.lane.b32.xlu1 %v4927_v0, %s4590_s22 }
 0x181   : > { %v5047_v48 = vpop.permute.xlu0 %1298 }
 0x182   : > { %7626 = vst [vmem:[#allocation29_spill] sm:$0xff] %v5047_v48  ;;  %v5049_v49 = vpop.permute.xlu1 %1538 }
 0x183   : > { %7627 = vst [vmem:[#allocation30_spill] sm:$0xff] %v5049_v49  ;;  %577 = vrot.lane.b32.xlu0 %v4779_v26, %s4575_s30  ;;  %v1698_v49 = vrot.slane %v5121_v59, %v4766_v16 }
 0x184   : > { %573 = vrot.lane.b32.xlu1 %v4790_v31, %s4575_s30 }
 0x185   : > { %v5064_v54 = vpop.permute.xlu0 %1097 }
 0x186   : > { %v5068_v58 = vpop.permute.xlu1 %1534 }
 0x187   : > { %7630 = vst [vmem:[#allocation33_spill] sm:$0xff] %v5068_v58  ;;  %648 = vrot.lane.b32.xlu0 %v4779_v26, %s4577_s8 }
 0x188   : > { %445 = vrot.lane.b32.xlu1 %v4798_v34, %s4579_s11 }
 0x189   : > { %v5087_v46 = vpop.permute.xlu0 %1168 }
 0x18a   : > { %v5100_v3 = vpop.permute.xlu1 %1357 }
 0x18b   : > { %7635 = vst [vmem:[#allocation35_spill] sm:$0xff] %v5100_v3  ;;  %841 = vrot.lane.b32.xlu0 %v806_v1, %s4589_s7 }
 0x18c   : > { %516 = vrot.lane.b32.xlu1 %v4798_v34, %s4580_s23 }
 0x18d   : > { %v5137_v58 = vpop.permute.xlu0 %967 }
 0x18e   : > { %v1226_v51 = vpop.permute.xlu1 %1225 }
 0x18f   : > { %v1234_v18 = vsel %vm7538_vm9, %v4949_v5, %v1226_v51  ;;  %v1235_v41 = vsel %vm7538_vm9, %v1226_v51, %v5039_v43  ;;  %912 = vrot.lane.b32.xlu0 %v877_v39, %s4590_s22  ;;  %v1702_v39 = vrot.slane %v5121_v59, %v4773_v23  ;;  %v941_v51 = vrot.slane %v5149_v44, %v4766_v16  ;;  %vm7664_vm9 = vmmov %vm7663_vm6 }
 0x190   : > { %v1242_v61 = vsel %vm5089_vm12, %v1234_v18, 0.0  ;;  %v1243_v10 = vsel %vm5102_vm13, %v1235_v41, 0.0  ;;  %709 = vrot.lane.b32.xlu1 %v4927_v0, %s4573_s28  ;;  %vm5190_vm12 = vcmp.eq.s32.totalorder %v1142_v4, 1  ;;  %vm5194_vm13 = vcmp.eq.s32.totalorder %v1146_v52, 1 }
 0x191   : > { %v1250_v47 = vrot.slane %v1242_v61, 4  ;;  %v1251_v18 = vrot.slane %v1243_v10, 4  ;;  %v5182_v41 = vpop.permute.xlu0 %1038  ;;  %v5200_v61 = vsel %vm1004_vm5, 1, %v7634_v12  ;;  %v5204_v10 = vsel %vm1562_vm3, 1, %v7634_v12 }
 0x192   : > { %v1297_v43 = vpop.permute.xlu1 %1296  ;;  %7662 = vst [vmem:[#allocation40_spill] sm:$0xff] %v5200_v61  ;;  %v1631_v52 = vld [vmem:[#allocation4 + $0x46] ss:$8 sm:$0xf]  ;;  %vm5220_vm3 = vcmp.eq.s32.totalorder %v1698_v49, 1  ;;  %vm5224_vm5 = vcmp.eq.s32.totalorder %v1702_v39, 1  ;;  %v1012_v39 = vrot.slane %v5200_v61, %v4766_v16  ;;  %v1570_v44 = vrot.slane %v5204_v10, %v4766_v16 }
 0x193   : > { %1258 = vst [vmem:[#allocation3 + $0x90] sm:$0xf0] %v1250_v47  ;;  %1259 = vst [vmem:[#allocation3 + $0xc0] sm:$0xf0] %v1251_v18  ;;  %v1305_v4 = vsel %vm7663_vm6, %v4987_v17, %v1297_v43  ;;  %v1306_v20 = vsel %vm7664_vm9, %v1297_v43, %v5047_v48  ;;  %644 = vrot.lane.b32.xlu0 %v4790_v31, %s4577_s8  ;;  %v1768_v18 = vrot.slane %v5188_v57, %v4766_v16  ;;  %v7671_v49 = vmov 0 }
 0x194   : > { %v1313_v8 = vsel %vm5106_vm14, %v1305_v4, 0.0  ;;  %v1314_v47 = vsel %vm5111_vm1, %v1306_v20, 0.0  ;;  %780 = vrot.lane.b32.xlu1 %v4927_v0, %s4574_s18  ;;  %vm5232_vm14 = vcmp.eq.s32.totalorder %v941_v51, 1  ;;  %v7669_v4 = vmov 0 }
 0x195   : > { %1317 = vst [vmem:[#allocation3] sm:$0xf] %v1313_v8  ;;  %1318 = vst [vmem:[#allocation3 + $0x68] sm:$0xf] %v1314_v47  ;;  %v1356_v24 = vpop.permute.xlu0 %1355  ;;  %v7670_v4 = vsel %vm5232_vm14, 4294967295, %v7669_v4  ;;  %vm5236_vm1 = vcmp.eq.s32.totalorder %v945_v56, 1  ;;  %v1016_v20 = vrot.slane %v5200_v61, %v4773_v23  ;;  %v1574_v42 = vrot.slane %v5204_v10, %v4773_v23 }
 0x196   : > { %v7672_v49 = vsel %vm5236_vm1, 4294967295, %v7671_v49  ;;  %vm7673_vm6 = vcmask 375808   ;;  %v1096_v47 = vpop.permute.xlu1 %1095  ;;  %vm1632_vm0 = vcmp.ne.f32.partialorder %v1631_v52, 0.0  ;;  %vm7675_vm1 = vcmask 449536  }
 0x197   : > { %v1364_v8 = vsel %vm7673_vm6, %v4979_v13, %v1356_v24  ;;  %vm7674_vm9 = vmmov %vm7673_vm6  ;;  %v1104_v61 = vsel %vm7675_vm1, %v4957_v7, %v1096_v47  ;;  %447 = vrot.lane.b32.xlu0 %v4779_v26, %s4579_s11  ;;  %vm7585_vm6 = vcmask 916480   ;;  %v1433_v52 = vld [vmem:[#allocation4 + $0x43] ss:$8 sm:$0xf] }
 0x198   : > { %v1365_v51 = vsel %vm7674_vm9, %v1356_v24, %v5100_v3  ;;  %v1372_v56 = vsel %vm5125_vm7, %v1364_v8, 0.0  ;;  %vm7676_vm14 = vmmov %vm7675_vm1  ;;  %v1112_v3 = vsel %vm5139_vm10, %v1104_v61, 0.0  ;;  %443 = vrot.lane.b32.xlu1 %v4790_v31, %s4579_s11  ;;  %vm5266_vm7 = vcmp.eq.s32.totalorder %v1768_v18, 1 }
 0x199   : > { %v1373_v48 = vsel %vm5129_vm8, %v1365_v51, 0.0  ;;  %v1105_v57 = vsel %vm7676_vm14, %v1096_v47, %v5064_v54  ;;  %v1380_v13 = vrot.slane %v1372_v56, 4  ;;  %vm5270_vm8 = vcmp.eq.s32.totalorder %v1772_v55, 1  ;;  %v1921_v51 = vpop.permute.xlu0 %1920 }
 0x19a   : > { %v1381_v24 = vrot.slane %v1373_v48, 4  ;;  %v1113_v62 = vsel %vm5143_vm11, %v1105_v57, 0.0  ;;  %v1120_v8 = vrot.slane %v1112_v3, 4  ;;  %vm5274_vm14 = vcmp.eq.s32.totalorder %v1012_v39, 1  ;;  %v1167_v18 = vpop.permute.xlu1 %1166 }
 0x19b   : > { %v1121_v48 = vrot.slane %v1113_v62, 4  ;;  %v5282_v57 = vsel %vm1632_vm0, 1, %v7634_v12  ;;  %1388 = vst [vmem:[#allocation3] sm:$0xf0] %v1380_v13  ;;  %vm7683_vm10 = vcmask 900096   ;;  %vm5288_vm1 = vcmp.eq.s32.totalorder %v1016_v20, 1  ;;  %518 = vrot.lane.b32.xlu0 %v4779_v26, %s4580_s23 }
 0x19c   : > { %1389 = vst [vmem:[#allocation3 + $0x68] sm:$0xf0] %v1381_v24  ;;  %v1928_v61 = vsel %vm7683_vm10, %v4989_v19, %v1921_v51  ;;  %vm7684_vm11 = vmmov %vm7683_vm10  ;;  %v5294_v39 = vsel %vm1818_vm4, 1, %v7634_v12  ;;  %vm7687_vm0 = vcmask 441344   ;;  %315 = vrot.lane.b32.xlu1 %v4798_v34, %s4576_s5  ;;  %v1640_v13 = vrot.slane %v5282_v57, %v4766_v16 }
 0x19d   : > { %v1929_v3 = vsel %vm7684_vm11, %v1921_v51, %v4981_v15  ;;  %1128 = vst [vmem:[#allocation3 + $0xe8] sm:$0xf0] %v1120_v8  ;;  %1129 = vst [vmem:[#allocation3 + $0xf8] sm:$0xf0] %v1121_v48  ;;  %v1936_v47 = vsel %vm5168_vm2, %v1928_v61, 0.0  ;;  %v1175_v56 = vsel %vm7687_vm0, %v4994_v21, %v1167_v18  ;;  %v1644_v24 = vrot.slane %v5282_v57, %v4773_v23  ;;  %v1723_v2 = vpop.permute.xlu0 %1722 }
 0x19e   : > { %v1937_v19 = vsel %vm5172_vm15, %v1929_v3, 0.0  ;;  %vm7688_vm10 = vmmov %vm7687_vm0  ;;  %1940 = vst [vmem:[#allocation3 + $0x58] sm:$0xf] %v1936_v47  ;;  %v1183_v50 = vsel %vm5190_vm12, %v1175_v56, 0.0  ;;  %vm5312_vm15 = vcmp.eq.s32.totalorder %v1570_v44, 1  ;;  %vm5320_vm2 = vcmp.eq.s32.totalorder %v1574_v42, 1  ;;  %v966_v61 = vpop.permute.xlu1 %965 }
 0x19f   : > { %v1176_v20 = vsel %vm7688_vm10, %v1167_v18, %v5087_v46  ;;  %1941 = vst [vmem:[#allocation3 + $0xf0] sm:$0xf] %v1937_v19  ;;  %1187 = vst [vmem:[#allocation3 + $0x90] sm:$0xf] %v1183_v50  ;;  %v1826_v59 = vrot.slane %v5294_v39, %v4766_v16  ;;  %v1830_v44 = vrot.slane %v5294_v39, %v4773_v23  ;;  %vm7693_vm12 = vcmask 965632  }
 0x1a0   : > { %v1184_v5 = vsel %vm5194_vm13, %v1176_v20, 0.0  ;;  %v1834_v8 = vrot.slane %v5294_v39, %v4788_v30  ;;  %v1730_v48 = vsel %vm7693_vm12, %v5017_v33, %v1723_v2  ;;  %vm7694_vm13 = vmmov %vm7693_vm12  ;;  %v676_v42 = vld [vmem:[#allocation2 + $0x10] sm:$0xf]  ;;  %vm1434_vm11 = vcmp.ne.f32.partialorder %v1433_v52, 0.0  ;;  %386 = vrot.lane.b32.xlu1 %v4798_v34, %s4578_s10 }
 0x1a1   : > { %1188 = vst [vmem:[#allocation3 + $0xc0] sm:$0xf] %v1184_v5  ;;  %v1731_v51 = vsel %vm7694_vm13, %v1723_v2, %v4996_v22  ;;  %vm1504_vm0 = vcmp.ne.f32.partialorder %v1503_v38, 0.0  ;;  %v1738_v3 = vsel %vm5220_vm3, %v1730_v48, 0.0  ;;  %vm7695_vm10 = vcmask 506880   ;;  %711 = vrot.lane.b32.xlu0 %v676_v42, %s4573_s28  ;;  %v1793_v2 = vpop.permute.xlu0 %1792 }
 0x1a2   : > { %v1739_v18 = vsel %vm5224_vm5, %v1731_v51, 0.0  ;;  %v974_v47 = vsel %vm7695_vm10, %v4965_v9, %v966_v61  ;;  %vm7696_vm4 = vmmov %vm7695_vm10  ;;  %vm7551_vm12 = vcmask 973824   ;;  %v1746_v33 = vrot.slane %v1738_v3, 4  ;;  %v747_v48 = vld [vmem:[#allocation2 + $0x10] sm:$0xf] }
 0x1a3   : > { %v975_v19 = vsel %vm7696_vm4, %v966_v61, %v5137_v58  ;;  %v1747_v56 = vrot.slane %v1739_v18, 4  ;;  %vm7697_vm13 = vnez %v7670_v4  ;;  %vm7698_vm9 = vnez %v7672_v49 }
 0x1a4   : > { %v982_v20 = vsel %vm7697_vm13, %v974_v47, 0.0  ;;  %v983_v17 = vsel %vm7698_vm9, %v975_v19, 0.0  ;;  %vm5349_vm3 = vcmp.eq.s32.totalorder %v1640_v13, 1  ;;  %vm5353_vm5 = vcmp.eq.s32.totalorder %v1644_v24, 1  ;;  %1754 = vst [vmem:[#allocation3 + $0x70] sm:$0xf0] %v1746_v33  ;;  %v1037_v24 = vpop.permute.xlu1 %1036  ;;  %579 = vrot.lane.b32.xlu1 %v4927_v0, %s4575_s30 }
 0x1a5   : > { %vm7588_vm4 = vcmask 908288   ;;  %v990_v50 = vrot.slane %v982_v20, 4  ;;  %v991_v5 = vrot.slane %v983_v17, 4  ;;  %vm5357_vm10 = vcmp.eq.s32.totalorder %v1826_v59, 1  ;;  %1755 = vst [vmem:[#allocation3 + $0x78] sm:$0xf0] %v1747_v56  ;;  %782 = vrot.lane.b32.xlu0 %v747_v48, %s4574_s18  ;;  %v1595_v6 = vpop.permute.xlu0 %1594 }
 0x1a6   : > { %v1838_v49 = vrot.slane %v5294_v39, %v4784_v28  ;;  %v1800_v34 = vsel %vm7585_vm6, %v5011_v32, %v1793_v2  ;;  %v1801_v13 = vsel %vm7585_vm6, %v1793_v2, %v5003_v27  ;;  %v5369_v51 = vsel %vm1434_vm11, 1, %v7634_v12  ;;  %v1997_v42 = vld [vmem:[#allocation3 + $0xf0] sm:$0xf]  ;;  %v1996_v38 = vld [vmem:[#allocation3 + $0x58] sm:$0xf] }
 0x1a7   : > { %v5373_v59 = vsel %vm1504_vm0, 1, %v7634_v12  ;;  %998 = vst [vmem:[#allocation3 + $0x80] sm:$0xf0] %v990_v50  ;;  %999 = vst [vmem:[#allocation3 + $0x1a8] sm:$0xf0] %v991_v5  ;;  %v1808_v39 = vsel %vm5266_vm7, %v1800_v34, 0.0  ;;  %v1450_v18 = vrot.slane %v5369_v51, %v4788_v30  ;;  %v1908_v56 = vrot.slane %v5098_v14, %v4784_v28 }
 0x1a8   : > { %v1809_v32 = vsel %vm5270_vm8, %v1801_v13, 0.0  ;;  %vm7705_vm9 = vcmask 457728   ;;  %1812 = vst [vmem:[#allocation3 + $0x128] sm:$0xf] %v1808_v39  ;;  %vm7707_vm7 = vcmask 1043456   ;;  %vm5391_vm8 = vcmp.eq.s32.totalorder %v1830_v44, 1  ;;  %v5414_v33 = vpop.permute.xlu1 %835  ;;  %650 = vrot.lane.b32.xlu1 %v4927_v0, %s4577_s8 }
 0x1a9   : > { %v1045_v61 = vsel %vm7705_vm9, %v5001_v25, %v1037_v24  ;;  %vm7706_vm13 = vmmov %vm7705_vm9  ;;  %1813 = vst [vmem:[#allocation3 + $0x38] sm:$0xf] %v1809_v32  ;;  %4281 = vmatprep.subr.msk.mxu0 %vm7707_vm7, %v1997_v42  ;;  %vm5395_vm11 = vcmp.eq.s32.totalorder %v1834_v8, 1  ;;  %v1454_v44 = vrot.slane %v5369_v51, %v4784_v28  ;;  %v1904_v8 = vrot.slane %v5098_v14, %v4788_v30  ;;  %v1665_v62 = vpop.permute.xlu0 %1664 }
 0x1aa   : > { %v1046_v52 = vsel %vm7706_vm13, %v1037_v24, %v5182_v41  ;;  %v1053_v3 = vsel %vm5274_vm14, %v1045_v61, 0.0  ;;  %vm7712_vm0 = vmmov %vm7707_vm7  ;;  %vm5400_vm14 = vcmp.eq.s32.totalorder %v1838_v49, 1  ;;  %v1520_v20 = vrot.slane %v5373_v59, %v4788_v30  ;;  %514 = vrot.lane.b32.xlu0 %v4790_v31, %s4580_s23 }
 0x1ab   : > { %v1054_v7 = vsel %vm5288_vm1, %v1046_v52, 0.0  ;;  %1057 = vst [vmem:[#allocation3 + $0xe8] sm:$0xf] %v1053_v3  ;;  %4282 = vmatpush1.msk.msra.mxu0 %vm7712_vm0, %v1996_v38  ;;  %vm7715_vm1 = vcmask 982016   ;;  %vm7586_vm13 = vcmask 1039360   ;;  %v1524_v14 = vrot.slane %v5373_v59, %v4784_v28 }
 0x1ac   : > { %1058 = vst [vmem:[#allocation3 + $0xf8] sm:$0xf] %v1054_v7  ;;  %v1602_v47 = vsel %vm7715_vm1, %v5025_v36, %v1595_v6  ;;  %vm7716_vm9 = vmmov %vm7715_vm1  ;;  %v1442_v36 = vrot.slane %v5369_v51, %v4766_v16  ;;  %v1446_v21 = vrot.slane %v5369_v51, %v4773_v23  ;;  %vm5442_vm7 = vcmp.eq.s32.totalorder %v1904_v8, 1  ;;  %v1851_v51 = vpop.permute.xlu1 %1850  ;;  %313 = vrot.lane.b32.xlu1 %v4790_v31, %s4576_s5 }
 0x1ad   : > { %v1603_v19 = vsel %vm7716_vm9, %v1595_v6, %v5019_v35  ;;  %v1610_v17 = vsel %vm5312_vm15, %v1602_v47, 0.0  ;;  %vm5434_vm15 = vcmp.eq.s32.totalorder %v1450_v18, 1  ;;  %vm7587_vm0 = vcmask 1031168   ;;  %v1855_v7 = vpop.permute.xlu0 %1854 }
 0x1ae   : > { %v1611_v50 = vsel %vm5320_vm2, %v1603_v19, 0.0  ;;  %v1618_v5 = vrot.slane %v1610_v17, 4  ;;  %vm5438_vm2 = vcmp.eq.s32.totalorder %v1454_v44, 1  ;;  %v1672_v24 = vsel %vm7551_vm12, %v5034_v40, %v1665_v62  ;;  %317 = vrot.lane.b32.xlu0 %v4779_v26, %s4576_s5 }
 0x1af   : > { %v1619_v2 = vrot.slane %v1611_v50, 4  ;;  %v1673_v48 = vsel %vm7551_vm12, %v1665_v62, %v5027_v37  ;;  %vm5450_vm1 = vcmp.eq.s32.totalorder %v1908_v56, 1  ;;  %vm5454_vm9 = vcmp.eq.s32.totalorder %v1520_v20, 1  ;;  %v7733_v56 = vld [vmem:[#allocation21_spill] sm:$0xff] }
 0x1b0   : > { %1626 = vst [vmem:[#allocation3 + $0x10] sm:$0xf0] %v1618_v5  ;;  %v1680_v61 = vsel %vm5349_vm3, %v1672_v24, 0.0  ;;  %v1681_v52 = vsel %vm5353_vm5, %v1673_v48, 0.0  ;;  %v1858_v40 = vsel %vm7588_vm4, %v5009_v29, %v1851_v51  ;;  %v1859_v42 = vsel %vm7588_vm4, %v1851_v51, %v4973_v11  ;;  %v1471_v44 = vpop.permute.xlu1 %1470  ;;  %449 = vrot.lane.b32.xlu1 %v4927_v0, %s4579_s11  ;;  %v7734_v5 = vld [vmem:[#allocation31_spill] sm:$0xff]  ;;  %v7736_v62 = vld [vmem:[#allocation17_spill] sm:$0xff] }
 0x1b1   : > { %1627 = vst [vmem:[#allocation3 + $0x100] sm:$0xf0] %v1619_v2  ;;  %1684 = vst [vmem:[#allocation3 + $0x70] sm:$0xf] %v1680_v61  ;;  %v1866_v38 = vsel %vm5357_vm10, %v1858_v40, 0.0  ;;  %v1867_v43 = vsel %vm5391_vm8, %v1859_v42, 0.0  ;;  %v1339_v25 = vrot.slane %v5062_v53, %v4788_v30  ;;  %v1343_v31 = vrot.slane %v5062_v53, %v4784_v28 }
 0x1b2   : > { %1685 = vst [vmem:[#allocation3 + $0x78] sm:$0xf] %v1681_v52  ;;  %vm5474_vm3 = vcmp.eq.s32.totalorder %v1524_v14, 1  ;;  %vm5478_vm5 = vcmp.eq.s32.totalorder %v1442_v36, 1  ;;  %vm5482_vm12 = vcmp.eq.s32.totalorder %v1446_v21, 1  ;;  %v1874_v4 = vrot.slane %v1866_v38, 4  ;;  %388 = vrot.lane.b32.xlu0 %v5180_v63, %s4578_s10  ;;  %v1925_v36 = vpop.permute.xlu0 %1924 }
 0x1b3   : > { %v1875_v3 = vrot.slane %v1867_v43, 4  ;;  %v1860_v6 = vsel %vm7588_vm4, %v4973_v11, %v1855_v7  ;;  %v1861_v18 = vsel %vm7588_vm4, %v1855_v7, %v4893_v60  ;;  %v1512_v8 = vrot.slane %v5373_v59, %v4766_v16  ;;  %v546_v24 = vld [vmem:[#allocation2 + $0x10] sm:$0xf]  ;;  %v7742_v52 = vld [vmem:[#allocation30_spill] sm:$0xff]  ;;  %v7752_v7 = vld [vmem:[#allocation37_spill] sm:$0xff] }
 0x1b4   : > { %v1516_v47 = vrot.slane %v5373_v59, %v4773_v23  ;;  %1882 = vst [vmem:[#allocation3 + $0x128] sm:$0xf0] %v1874_v4  ;;  %v1868_v19 = vsel %vm5395_vm11, %v1860_v6, 0.0  ;;  %v1869_v53 = vsel %vm5400_vm14, %v1861_v18, 0.0  ;;  %v1476_v11 = vsel %vm7586_vm13, %v5041_v45, %v1471_v44  ;;  %v1541_v34 = vpop.permute.xlu1 %1540  ;;  %v7743_v42 = vld [vmem:[#allocation23_spill] sm:$0xff]  ;;  %520 = vrot.lane.b32.xlu1 %v4927_v0, %s4580_s23  ;;  %v7760_v48 = vld [vmem:[#allocation33_spill] sm:$0xff] }
 0x1b5   : > { %1883 = vst [vmem:[#allocation3 + $0x38] sm:$0xf0] %v1875_v3  ;;  %v1477_v60 = vsel %vm7586_vm13, %v1471_v44, %v7733_v56  ;;  %v1876_v20 = vrot.slane %v1868_v19, 4  ;;  %v1877_v17 = vrot.slane %v1869_v53, 4  ;;  %v1484_v59 = vsel %vm5434_vm15, %v1476_v11, 0.0  ;;  %v7753_v6 = vld [vmem:[#allocation27_spill] sm:$0xff] }
 0x1b6   : > { %v1485_v1 = vsel %vm5438_vm2, %v1477_v60, 0.0  ;;  %v1492_v55 = vrot.slane %v1484_v59, 4  ;;  %v1209_v2 = vrot.slane %v7734_v5, %v4788_v30  ;;  %v1213_v14 = vrot.slane %v7734_v5, %v4784_v28  ;;  %581 = vrot.lane.b32.xlu0 %v546_v24, %s4575_s30  ;;  %v1467_v3 = vpop.permute.xlu0 %1466  ;;  %v7754_v11 = vld [vmem:[#allocation32_spill] sm:$0xff]  ;;  %v7755_v59 = vld [vmem:[#allocation35_spill] sm:$0xff] }
 0x1b7   : > { %v1493_v50 = vrot.slane %v1485_v1, 4  ;;  %1884 = vst [vmem:[#allocation3 + $0x88] sm:$0xf0] %v1876_v20  ;;  %1885 = vst [vmem:[#allocation3 + $0x170] sm:$0xf0] %v1877_v17  ;;  %vm7735_vm10 = vcmask 900096   ;;  %v1546_v40 = vsel %vm7587_vm0, %v7742_v52, %v1541_v34  ;;  %v1547_v38 = vsel %vm7587_vm0, %v1541_v34, %v7743_v42 }
 0x1b8   : > { %v1930_v21 = vsel %vm7735_vm10, %v4981_v15, %v1925_v36  ;;  %vm7737_vm8 = vmmov %vm7735_vm10  ;;  %vm5522_vm11 = vcmp.eq.s32.totalorder %v1339_v25, 1  ;;  %vm5526_vm14 = vcmp.eq.s32.totalorder %v1343_v31, 1  ;;  %1500 = vst [vmem:[#allocation3 + $0xd0] sm:$0xf0] %v1492_v55  ;;  %v1554_v43 = vsel %vm5454_vm9, %v1546_v40, 0.0  ;;  %319 = vrot.lane.b32.xlu1 %v4927_v0, %s4576_s5 }
 0x1b9   : > { %v1931_v49 = vsel %vm7737_vm8, %v1925_v36, %v7736_v62  ;;  %1501 = vst [vmem:[#allocation3 + $0x1a0] sm:$0xf0] %v1493_v50  ;;  %v1938_v61 = vsel %vm5442_vm7, %v1930_v21, 0.0  ;;  %v1555_v13 = vsel %vm5474_vm3, %v1547_v38, 0.0  ;;  %vm5545_vm15 = vcmp.eq.s32.totalorder %v1512_v8, 1  ;;  %v1360_v8 = vpop.permute.xlu1 %1359  ;;  %v1989_v26 = vld [vmem:[#allocation3 + $0x78] sm:$0xff] }
 0x1ba   : > { %v1939_v15 = vsel %vm5450_vm1, %v1931_v49, 0.0  ;;  %1942 = vst [vmem:[#allocation3 + $0x30] sm:$0xf] %v1938_v61  ;;  %vm5549_vm2 = vcmp.eq.s32.totalorder %v1516_v47, 1  ;;  %1558 = vst [vmem:[#allocation3 + $0x160] sm:$0xf] %v1554_v43  ;;  %v1706_v25 = vrot.slane %v7752_v7, %v4788_v30  ;;  %v1710_v31 = vrot.slane %v7752_v7, %v4784_v28  ;;  %v1537_v21 = vpop.permute.xlu0 %1536 }
 0x1bb   : > { %1943 = vst [vmem:[#allocation3 + $0x198] sm:$0xf] %v1939_v15  ;;  %1559 = vst [vmem:[#allocation3 + $0x20] sm:$0xf] %v1555_v13  ;;  %vm5553_vm7 = vcmp.eq.s32.totalorder %v1209_v2, 1  ;;  %vm5557_vm1 = vcmp.eq.s32.totalorder %v1213_v14, 1  ;;  %v1474_v18 = vsel %vm7586_vm13, %v7753_v6, %v1467_v3  ;;  %v1475_v44 = vsel %vm7586_vm13, %v1467_v3, %v5041_v45 }
 0x1bc   : > { %v617_v47 = vld [vmem:[#allocation2 + $0x10] sm:$0xf]  ;;  %v1992_v53 = vld [vmem:[#allocation3 + $0x128] sm:$0xff]  ;;  %v1280_v56 = vrot.slane %v7754_v11, %v4788_v30  ;;  %v1284_v60 = vrot.slane %v7754_v11, %v4784_v28  ;;  %v1482_v20 = vsel %vm5478_vm5, %v1474_v18, 0.0  ;;  %v1483_v17 = vsel %vm5482_vm12, %v1475_v44, 0.0  ;;  %v7757_v45 = vld [vmem:[#allocation24_spill] sm:$0xff] }
 0x1bd   : > { %v1993_v19 = vld [vmem:[#allocation3 + $0x38] sm:$0xff]  ;;  %vm7756_vm9 = vcmask 375808   ;;  %652 = vrot.lane.b32.xlu0 %v617_v47, %s4577_s8  ;;  %v1490_v50 = vrot.slane %v1482_v20, 4  ;;  %v1491_v36 = vrot.slane %v1483_v17, 4  ;;  %v1988_v62 = vld [vmem:[#allocation3 + $0x70] sm:$0xff]  ;;  %v1544_v51 = vsel %vm7587_vm0, %v7760_v48, %v1537_v21  ;;  %v1230_v61 = vpop.permute.xlu1 %1229  ;;  %v7765_v43 = vld [vmem:[#allocation28_spill] sm:$0xff] }
 0x1be   : > { %v1366_v1 = vsel %vm7756_vm9, %v7755_v59, %v1360_v8  ;;  %vm7758_vm3 = vmmov %vm7756_vm9  ;;  %2022 = vmatprep.subr.mxu0 %v1993_v19  ;;  %v7759_v49 = vld [vmem:[#allocation39_spill] sm:$0xff]  ;;  %v1545_v0 = vsel %vm7587_vm0, %v1537_v21, %v7742_v52  ;;  %vm5596_vm12 = vcmp.eq.s32.totalorder %v1706_v25, 1  ;;  %vm5600_vm5 = vcmp.eq.s32.totalorder %v1710_v31, 1  ;;  %v7767_v13 = vld [vmem:[#allocation25_spill] sm:$0xff]  ;;  %v1727_v9 = vpop.permute.xlu0 %1726 }
 0x1bf   : > { %v1367_v55 = vsel %vm7758_vm3, %v1360_v8, %v7757_v45  ;;  %v1374_v5 = vsel %vm5522_vm11, %v1366_v1, 0.0  ;;  %2023 = vmatpush1.msra.mxu0 %v1992_v53  ;;  %v1776_v34 = vrot.slane %v7759_v49, %v4788_v30  ;;  %v1780_v24 = vrot.slane %v7759_v49, %v4784_v28  ;;  %1498 = vst [vmem:[#allocation3 + $0x40] sm:$0xf0] %v1490_v50  ;;  %v4410_v7 = vld [vmem:[#allocation2] sm:$0xff]  ;;  %v7781_v53 = vld [vmem:[#allocation18_spill] sm:$0xff]  ;;  %v7788_v49 = vld [vmem:[#allocation19_spill] sm:$0xff] }
 0x1c0   : > { %v1375_v29 = vsel %vm5526_vm14, %v1367_v55, 0.0  ;;  %v1382_v2 = vrot.slane %v1374_v5, 4  ;;  %2024 = vmatprep.subr.mxu0 %v1989_v26  ;;  %1499 = vst [vmem:[#allocation3 + $0xa8] sm:$0xf0] %v1491_v36  ;;  %v1552_v42 = vsel %vm5545_vm15, %v1544_v51, 0.0  ;;  %v1553_v38 = vsel %vm5549_vm2, %v1545_v0, 0.0 }
 0x1c1   : > { %v1383_v14 = vrot.slane %v1375_v29, 4  ;;  %2025 = vmatpush1.msra.mxu0 %v1988_v62  ;;  %vm7766_vm10 = vcmask 392192   ;;  %384 = vrot.lane.b32.xlu0 %v4410_v7, %s4578_s10  ;;  %v1998_v31 = vld [vmem:[#allocation3 + $0x30] sm:$0xf]  ;;  %1556 = vst [vmem:[#allocation3 + $0x10] sm:$0xf] %v1552_v42  ;;  %v7769_v6 = vcombine.high %v5180_v63, %v5180_v63  ;;  %v1578_v20 = vrot.slane %v5204_v10, %v4788_v30 }
 0x1c2   : > { %1390 = vst [vmem:[#allocation3 + $0x148] sm:$0xf0] %v1382_v2  ;;  %v1236_v52 = vsel %vm7766_vm10, %v7765_v43, %v1230_v61  ;;  %vm7768_vm8 = vmmov %vm7766_vm10  ;;  %v1999_v25 = vld [vmem:[#allocation3 + $0x198] sm:$0xf]  ;;  %vm7770_vm11 = vcmask 1043456   ;;  %vm5622_vm14 = vcmp.eq.s32.totalorder %v1280_v56, 1  ;;  %v1301_v56 = vpop.permute.xlu1 %1300  ;;  %v1582_v17 = vrot.slane %v5204_v10, %v4784_v28  ;;  %v1797_v2 = vpop.permute.xlu0 %1796 }
 0x1c3   : > { %1391 = vst [vmem:[#allocation3 + $0x8] sm:$0xf0] %v1383_v14  ;;  %v1237_v3 = vsel %vm7768_vm8, %v1230_v61, %v7767_v13  ;;  %1557 = vst [vmem:[#allocation3 + $0x100] sm:$0xf] %v1553_v38  ;;  %v1244_v39 = vsel %vm5553_vm7, %v1236_v52, 0.0  ;;  %390 = vrot.lane.b32.xlu1 %v7769_v6, %s4578_s10  ;;  %4284 = vmatprep.subr.msk.mxu1 %vm7770_vm11, %v1999_v25  ;;  %vm5626_vm15 = vcmp.eq.s32.totalorder %v1284_v60, 1 }
 0x1c4   : > { %v1245_v4 = vsel %vm5557_vm1, %v1237_v3, 0.0  ;;  %v1252_v32 = vrot.slane %v1244_v39, 4  ;;  %vm7775_vm2 = vmmov %vm7770_vm11  ;;  %vm5631_vm7 = vcmp.eq.s32.totalorder %v1776_v34, 1  ;;  %vm5635_vm1 = vcmp.eq.s32.totalorder %v1780_v24, 1  ;;  %v416_v60 = vld [vmem:[#allocation2 + $0x10] sm:$0xf] }
 0x1c5   : > { %v1253_v8 = vrot.slane %v1245_v4, 4  ;;  %4285 = vmatpush1.msk.msra.mxu1 %vm7775_vm2, %v1998_v31  ;;  %vm7780_vm9 = vcmask 965632   ;;  %vm7784_vm10 = vcmask 384000   ;;  %v7785_v55 = vld [vmem:[#allocation26_spill] sm:$0xff]  ;;  %451 = vrot.lane.b32.xlu0 %v416_v60, %s4579_s11  ;;  %v1802_v62 = vsel %vm7585_vm6, %v5003_v27, %v1797_v2  ;;  %v487_v48 = vld [vmem:[#allocation2 + $0x10] sm:$0xf] }
 0x1c6   : > { %v1732_v19 = vsel %vm7780_vm9, %v4996_v22, %v1727_v9  ;;  %vm7782_vm3 = vmmov %vm7780_vm9  ;;  %1260 = vst [vmem:[#allocation3 + $0x178] sm:$0xf0] %v1252_v32  ;;  %v7783_v22 = vld [vmem:[#allocation29_spill] sm:$0xff]  ;;  %v7787_v14 = vld [vmem:[#allocation34_spill] sm:$0xff]  ;;  %v1803_v34 = vsel %vm7585_vm6, %v1797_v2, %v7788_v49  ;;  %v5666_v24 = vpop.permute.xlu1 %906  ;;  %v1648_v51 = vrot.slane %v5282_v57, %v4788_v30  ;;  %v4591_v61 = vmov 0.0   ;;  %v1599_v13 = vpop.permute.xlu0 %1598 }
 0x1c7   : > { %v1733_v11 = vsel %vm7782_vm3, %v1727_v9, %v7781_v53  ;;  %1261 = vst [vmem:[#allocation3 + $0xc8] sm:$0xf0] %v1253_v8  ;;  %v1740_v59 = vsel %vm5596_vm12, %v1732_v19, 0.0  ;;  %v1307_v45 = vsel %vm7784_vm10, %v7783_v22, %v1301_v56  ;;  %vm7786_vm8 = vmmov %vm7784_vm10  ;;  %v802_v36 = vld [vmem:[#allocation4 + $0x21] ss:$8 sm:$0xf]  ;;  %v1079_v21 = vrot.slane %v7787_v14, %v4788_v30  ;;  %2080 = vmatprep.mubr.f32.mxu0 %v4591_v61 }
 0x1c8   : > { %v1741_v1 = vsel %vm5600_vm5, %v1733_v11, 0.0  ;;  %v1308_v50 = vsel %vm7786_vm8, %v1301_v56, %v7785_v55  ;;  %v1748_v5 = vrot.slane %v1740_v59, 4  ;;  %v1315_v10 = vsel %vm5622_vm14, %v1307_v45, 0.0  ;;  %v873_v0 = vld [vmem:[#allocation4 + $0x22] ss:$8 sm:$0xf]  ;;  %2151 = vmatprep.mubr.f32.mxu1 %v4591_v61 }
 0x1c9   : > { %v1749_v29 = vrot.slane %v1741_v1, 4  ;;  %v1316_v26 = vsel %vm5626_vm15, %v1308_v50, 0.0  ;;  %1319 = vst [vmem:[#allocation3 + $0x148] sm:$0xf] %v1315_v10  ;;  %vm803_vm12 = vcmp.ne.f32.partialorder %v802_v36, 0.0  ;;  %v1810_v15 = vsel %vm5631_vm7, %v1802_v62, 0.0  ;;  %522 = vrot.lane.b32.xlu0 %v487_v48, %s4580_s23 }
 0x1ca   : > { %1320 = vst [vmem:[#allocation3 + $0x8] sm:$0xf] %v1316_v26  ;;  %1756 = vst [vmem:[#allocation3 + $0xa0] sm:$0xf0] %v1748_v5  ;;  %v1811_v27 = vsel %vm5635_vm1, %v1803_v34, 0.0  ;;  %v1985_v40 = vld [vmem:[#allocation3 + $0x100] sm:$0xff]  ;;  %v1652_v38 = vrot.slane %v5282_v57, %v4784_v28  ;;  %v5701_v18 = vpop.permute.xlu1 %1099 }
 0x1cb   : > { %1757 = vst [vmem:[#allocation3 + $0x158] sm:$0xf0] %v1749_v29  ;;  %v1984_v42 = vld [vmem:[#allocation3 + $0x10] sm:$0xff]  ;;  %1814 = vst [vmem:[#allocation3 + $0x88] sm:$0xf] %v1810_v15  ;;  %2026 = vmatprep.subr.mxu0 %v1985_v40  ;;  %vm5679_vm5 = vcmp.eq.s32.totalorder %v1578_v20, 1 }
 0x1cc   : > { %1815 = vst [vmem:[#allocation3 + $0x170] sm:$0xf] %v1811_v27  ;;  %vm5683_vm11 = vcmp.eq.s32.totalorder %v1582_v17, 1  ;;  %2027 = vmatpush1.msra.mxu0 %v1984_v42  ;;  %vm5687_vm14 = vcmp.eq.s32.totalorder %v1079_v21, 1  ;;  %v1981_v7 = vld [vmem:[#allocation3 + $0xa8] sm:$0xff]  ;;  %v7795_v57 = vld [vmem:[#allocation36_spill] sm:$0xff] }
 0x1cd   : > { %v1150_v25 = vrot.slane %v7795_v57, %v4788_v30  ;;  %v5695_v31 = vsel %vm803_vm12, 1, %v7634_v12  ;;  %vm7796_vm15 = vcmask 982016   ;;  %v7797_v4 = vld [vmem:[#allocation20_spill] sm:$0xff]  ;;  %2028 = vmatprep.subr.mxu0 %v1981_v7  ;;  %v286_v44 = vld [vmem:[#allocation2 + $0x10] sm:$0xf]  ;;  %vm5703_vm7 = vcmp.eq.s32.totalorder %v1648_v51, 1 }
 0x1ce   : > { %v1604_v39 = vsel %vm7796_vm15, %v5019_v35, %v1599_v13  ;;  %vm7798_vm2 = vmmov %vm7796_vm15  ;;  %v1980_v32 = vld [vmem:[#allocation3 + $0x40] sm:$0xff]  ;;  %vm874_vm1 = vcmp.ne.f32.partialorder %v873_v0, 0.0  ;;  %vm7801_vm9 = vcmask 449536   ;;  %321 = vrot.lane.b32.xlu0 %v286_v44, %s4576_s5  ;;  %v1977_v63 = vld [vmem:[#allocation3 + $0x68] sm:$0xff]  ;;  %vm5715_vm3 = vcmp.eq.s32.totalorder %v1652_v38, 1  ;;  %v5737_v5 = vpop.permute.xlu1 %1170 }
 0x1cf   : > { %v1605_v6 = vsel %vm7798_vm2, %v1599_v13, %v7797_v4  ;;  %v1612_v9 = vsel %vm5679_vm5, %v1604_v39, 0.0  ;;  %v1106_v35 = vsel %vm7801_vm9, %v5064_v54, %v5701_v18  ;;  %2029 = vmatpush1.msra.mxu0 %v1980_v32  ;;  %v1976_v60 = vld [vmem:[#allocation3] sm:$0xff]  ;;  %v815_v20 = vrot.slane %v5695_v31, %v4773_v23  ;;  %v1669_v54 = vpop.permute.xlu0 %1668  ;;  %v7807_v50 = vld [vmem:[#allocation22_spill] sm:$0xff]  ;;  %v357_v29 = vld [vmem:[#allocation2 + $0x10] sm:$0xf] }
 0x1d0   : > { %v1613_v47 = vsel %vm5683_vm11, %v1605_v6, 0.0  ;;  %v1620_v53 = vrot.slane %v1612_v9, 4  ;;  %v1114_v56 = vsel %vm5687_vm14, %v1106_v35, 0.0  ;;  %2030 = vmatprep.subr.mxu0 %v1977_v63  ;;  %vm5723_vm10 = vcmp.eq.s32.totalorder %v1150_v25, 1  ;;  %v1973_v1 = vld [vmem:[#allocation3 + $0xc0] sm:$0xff]  ;;  %v1972_v10 = vld [vmem:[#allocation3 + $0x90] sm:$0xff] }
 0x1d1   : > { %v1621_v11 = vrot.slane %v1613_v47, 4  ;;  %v1122_v17 = vrot.slane %v1114_v56, 4  ;;  %2031 = vmatpush1.msra.mxu0 %v1976_v60  ;;  %v811_v22 = vrot.slane %v5695_v31, %v4766_v16  ;;  %v5731_v45 = vsel %vm874_vm1, 1, %v7634_v12  ;;  %v1968_v48 = vld [vmem:[#allocation3 + $0xe8] sm:$0xff]  ;;  %v3759_v0 = vld [vmem:[#allocation2 + $0x14] sm:$0xf] }
 0x1d2   : > { %1628 = vst [vmem:[#allocation3 + $0x160] sm:$0xf0] %v1620_v53  ;;  %vm7806_vm8 = vcmask 973824   ;;  %2032 = vmatprep.subr.mxu0 %v1973_v1  ;;  %vm7809_vm5 = vcmask 441344   ;;  %392 = vrot.lane.b32.xlu0 %v357_v29, %s4578_s10  ;;  %v1994_v49 = vld [vmem:[#allocation3 + $0x88] sm:$0xff]  ;;  %vm7584_vm11 = vcmask 523264   ;;  %v834_v42 = vpop.permute.xlu1 %833  ;;  %v1083_v7 = vrot.slane %v7787_v14, %v4784_v28 }
 0x1d3   : > { %1629 = vst [vmem:[#allocation3 + $0x20] sm:$0xf0] %v1621_v11  ;;  %v1674_v55 = vsel %vm7806_vm8, %v5027_v37, %v1669_v54  ;;  %vm7808_vm12 = vmmov %vm7806_vm8  ;;  %v1177_v21 = vsel %vm7809_vm5, %v5087_v46, %v5737_v5  ;;  %2033 = vmatpush1.msra.mxu0 %v1972_v10  ;;  %v1969_v37 = vld [vmem:[#allocation3 + $0xf8] sm:$0xff]  ;;  %v1995_v62 = vld [vmem:[#allocation3 + $0x170] sm:$0xff]  ;;  %vm5749_vm14 = vcmp.eq.s32.totalorder %v815_v20, 1  ;;  %v886_v46 = vrot.slane %v5731_v45, %v4773_v23  ;;  %v5755_v15 = vpop.permute.xlu0 %837 }
 0x1d4   : > { %v1675_v36 = vsel %vm7808_vm12, %v1669_v54, %v7807_v50  ;;  %1130 = vst [vmem:[#allocation3 + $0x190] sm:$0xf0] %v1122_v17  ;;  %v1682_v26 = vsel %vm5703_vm7, %v1674_v55, 0.0  ;;  %v1185_v34 = vsel %vm5723_vm10, %v1177_v21, 0.0  ;;  %2034 = vmatprep.subr.mxu0 %v1969_v37  ;;  %2093 = vmatprep.subr.mxu1 %v1995_v62  ;;  %vm824_vm15 = vcmp.eq.s32.totalorder %v811_v22, 1  ;;  %v7814_v53 = vld [vmem:[#allocation38_spill] sm:$0xff]  ;;  %vm7820_vm12 = vmmov %vm7809_vm5 }
 0x1d5   : > { %v1683_v2 = vsel %vm5715_vm3, %v1675_v36, 0.0  ;;  %1686 = vst [vmem:[#allocation3 + $0xa0] sm:$0xf] %v1682_v26  ;;  %1189 = vst [vmem:[#allocation3 + $0x178] sm:$0xf] %v1185_v34  ;;  %2035 = vmatpush1.msra.mxu0 %v1968_v48  ;;  %2094 = vmatpush1.msra.mxu1 %v1994_v49  ;;  %v845_v40 = vsel %vm7584_vm11, %v5414_v33, %v5755_v15  ;;  %v844_v43 = vsel %vm7584_vm11, %v834_v42, %v5414_v33  ;;  %vm7572_vm2 = vcmask 515072  }
 0x1d6   : > { %1687 = vst [vmem:[#allocation3 + $0x158] sm:$0xf] %v1683_v2  ;;  %v3381_v27 = vld [vmem:[#allocation2 + $0x14] sm:$0xf]  ;;  %v853_v38 = vsel %vm5749_vm14, %v845_v40, 0.0  ;;  %3794 = vrot.lane.b32.xlu0 %v3759_v0, %s4573_s28  ;;  %v852_v3 = vsel %vm824_vm15, %v844_v43, 0.0  ;;  %v5773_v33 = vpop.permute.xlu1 %705  ;;  %v1154_v47 = vrot.slane %v7795_v57, %v4784_v28  ;;  %v949_v11 = vrot.slane %v7814_v53, %v4788_v30 }
 0x1d7   : > { %3416 = vrot.lane.b32.xlu1 %v3381_v27, %s4576_s5  ;;  %v3450_v52 = vld [vmem:[#allocation2 + $0x14] sm:$0xf]  ;;  %v861_v13 = vrot.slane %v853_v38, 4  ;;  %vm896_vm7 = vcmp.eq.s32.totalorder %v886_v46, 1  ;;  %v860_v39 = vrot.slane %v852_v3, 4  ;;  %v5768_v4 = vpop.permute.xlu0 %908  ;;  %vm5777_vm1 = vcmp.eq.s32.totalorder %v1083_v7, 1 }
 0x1d8   : > { %v3828_v25 = vld [vmem:[#allocation2 + $0x14] sm:$0xf]  ;;  %v916_v6 = vsel %vm7572_vm2, %v5666_v24, %v5768_v4  ;;  %v1983_v57 = vld [vmem:[#allocation3 + $0x1a0] sm:$0xff]  ;;  %v1982_v1 = vld [vmem:[#allocation3 + $0xd0] sm:$0xff]  ;;  %vm5792_vm10 = vcmp.eq.s32.totalorder %v1154_v47, 1  ;;  %vm5798_vm8 = vcmp.eq.s32.totalorder %v949_v11, 1  ;;  %v953_v14 = vrot.slane %v7814_v53, %v4784_v28 }
 0x1d9   : > { %869 = vst [vmem:[#allocation3 + $0x188] sm:$0xf0] %v861_v13  ;;  %868 = vst [vmem:[#allocation3 + $0xe0] sm:$0xf0] %v860_v39  ;;  %v924_v44 = vsel %vm896_vm7, %v916_v6, 0.0  ;;  %v1986_v20 = vld [vmem:[#allocation3 + $0x160] sm:$0xff] }
 0x1da   : > { %v672_v9 = vld [vmem:[#allocation4 + $0x7] ss:$8 sm:$0xf]  ;;  %3863 = vrot.lane.b32.xlu0 %v3828_v25, %s4574_s18  ;;  %928 = vst [vmem:[#allocation3 + $0x1a8] sm:$0xf] %v924_v44  ;;  %v5787_v60 = vpop.permute.xlu1 %776  ;;  %vm7821_vm14 = vcmask 506880  }
 0x1db   : > { %3485 = vrot.lane.b32.xlu1 %v3450_v52, %s4578_s10  ;;  %v3633_v35 = vld [vmem:[#allocation2 + $0x14] sm:$0xf]  ;;  %v1102_v63 = vpop.permute.xlu0 %1101  ;;  %v1987_v19 = vld [vmem:[#allocation3 + $0x20] sm:$0xff]  ;;  %vm673_vm3 = vcmp.ne.f32.partialorder %v672_v9, 0.0  ;;  %v1979_v29 = vld [vmem:[#allocation3 + $0x8] sm:$0xff] }
 0x1dc   : > { %v1990_v8 = vld [vmem:[#allocation3 + $0xa0] sm:$0xff]  ;;  %v1107_v56 = vsel %vm7801_vm9, %v5701_v18, %v1102_v63  ;;  %v882_v18 = vrot.slane %v5731_v45, %v4766_v16  ;;  %v3702_v55 = vld [vmem:[#allocation2 + $0x14] sm:$0xf]  ;;  %v5806_v2 = vsel %vm673_vm3, 1, %v7634_v12  ;;  %v1978_v62 = vld [vmem:[#allocation3 + $0x148] sm:$0xff] }
 0x1dd   : > { %v1991_v32 = vld [vmem:[#allocation3 + $0x158] sm:$0xff]  ;;  %v1115_v17 = vsel %vm5777_vm1, %v1107_v56, 0.0  ;;  %v7819_v10 = vld [vmem:[#allocation40_spill] sm:$0xff]  ;;  %v685_v51 = vrot.slane %v5806_v2, %v4773_v23  ;;  %vm7822_vm1 = vcmask 457728  }
 0x1de   : > { %2095 = vmatprep.subr.mxu1 %v1991_v32  ;;  %v743_v54 = vld [vmem:[#allocation4 + $0x20] ss:$8 sm:$0xf]  ;;  %3668 = vrot.lane.b32.xlu0 %v3633_v35, %s4575_s30  ;;  %v1123_v59 = vrot.slane %v1115_v17, 4  ;;  %v1020_v26 = vrot.slane %v7819_v10, %v4788_v30  ;;  %v5810_v37 = vpop.permute.xlu1 %969  ;;  %vm895_vm15 = vcmp.eq.s32.totalorder %v882_v18, 1  ;;  %v1024_v53 = vrot.slane %v7819_v10, %v4784_v28 }
 0x1df   : > { %2096 = vmatpush1.msra.mxu1 %v1990_v8  ;;  %v1173_v50 = vpop.permute.xlu0 %1172  ;;  %vm744_vm5 = vcmp.ne.f32.partialorder %v743_v54, 0.0  ;;  %v976_v34 = vsel %vm7821_vm14, %v5137_v58, %v5810_v37  ;;  %v3507_v46 = vld [vmem:[#allocation2 + $0x14] sm:$0xf]  ;;  %v681_v58 = vrot.slane %v5806_v2, %v4766_v16  ;;  %vm695_vm9 = vcmp.eq.s32.totalorder %v685_v51, 1 }
 0x1e0   : > { %2097 = vmatprep.subr.mxu1 %v1987_v19  ;;  %1131 = vst [vmem:[#allocation3 + $0xb8] sm:$0xf0] %v1123_v59  ;;  %v1178_v21 = vsel %vm7820_vm12, %v5737_v5, %v1173_v50  ;;  %v984_v5 = vsel %vm5798_vm8, %v976_v34, 0.0  ;;  %vm1027_vm7 = vcmp.eq.s32.totalorder %v1020_v26, 1  ;;  %v5826_v40 = vsel %vm744_vm5, 1, %v7634_v12  ;;  %v1974_v9 = vld [vmem:[#allocation3 + $0x178] sm:$0xff]  ;;  %vm7824_vm5 = vmmov %vm7821_vm14 }
 0x1e1   : > { %2098 = vmatpush1.msra.mxu1 %v1986_v20  ;;  %v1186_v49 = vsel %vm5792_vm10, %v1178_v21, 0.0  ;;  %v1965_v48 = vld [vmem:[#allocation3 + $0x1a8] sm:$0xff]  ;;  %v992_v0 = vrot.slane %v984_v5, 4  ;;  %v756_v3 = vrot.slane %v5826_v40, %v4773_v23  ;;  %v3576_v7 = vld [vmem:[#allocation2 + $0x14] sm:$0xf]  ;;  %vm694_vm3 = vcmp.eq.s32.totalorder %v681_v58, 1 }
 0x1e2   : > { %2099 = vmatprep.subr.mxu1 %v1983_v57  ;;  %3737 = vrot.lane.b32.xlu0 %v3702_v55, %s4577_s8  ;;  %1190 = vst [vmem:[#allocation3 + $0xc8] sm:$0xf] %v1186_v49  ;;  %v1041_v38 = vpop.permute.xlu1 %1040  ;;  %vm7823_vm8 = vcmask 900096   ;;  %v542_v56 = vld [vmem:[#allocation4 + $0x5] ss:$8 sm:$0xf]  ;;  %v819_v17 = vrot.slane %v5695_v31, %v4788_v30  ;;  %v752_v18 = vrot.slane %v5826_v40, %v4766_v16 }
 0x1e3   : > { %2100 = vmatpush1.msra.mxu1 %v1982_v1  ;;  %2036 = vmatprep.subr.mxu0 %v1965_v48  ;;  %v905_v27 = vpop.permute.xlu0 %904  ;;  %1000 = vst [vmem:[#allocation3 + $0x1b8] sm:$0xf0] %v992_v0  ;;  %v1047_v52 = vsel %vm7822_vm1, %v5182_v41, %v1041_v38  ;;  %vm766_vm10 = vcmp.eq.s32.totalorder %v756_v3, 1  ;;  %vm957_vm12 = vcmp.eq.s32.totalorder %v953_v14, 1  ;;  %vm543_vm14 = vcmp.ne.f32.partialorder %v542_v56, 0.0 }
 0x1e4   : > { %2101 = vmatprep.subr.mxu1 %v1979_v29  ;;  %v915_v42 = vsel %vm7572_vm2, %v905_v27, %v5666_v24  ;;  %v1055_v13 = vsel %vm1027_vm7, %v1047_v52, 0.0  ;;  %v613_v1 = vld [vmem:[#allocation4 + $0x6] ss:$8 sm:$0xf]  ;;  %vm826_vm7 = vcmp.eq.s32.totalorder %v819_v17, 1  ;;  %v890_v50 = vrot.slane %v5731_v45, %v4788_v30 }
 0x1e5   : > { %2102 = vmatpush1.msra.mxu1 %v1978_v62  ;;  %v923_v43 = vsel %vm895_vm15, %v915_v42, 0.0  ;;  %1059 = vst [vmem:[#allocation3 + $0x190] sm:$0xf] %v1055_v13  ;;  %vm1028_vm15 = vcmp.eq.s32.totalorder %v1024_v53, 1  ;;  %v5863_v36 = vsel %vm543_vm14, 1, %v7634_v12  ;;  %vm7825_vm14 = vcmask 965632  }
 0x1e6   : > { %3542 = vrot.lane.b32.xlu0 %v3507_v46, %s4579_s11  ;;  %927 = vst [vmem:[#allocation3 + $0x80] sm:$0xf] %v923_v43  ;;  %v704_v39 = vpop.permute.xlu1 %703  ;;  %v555_v49 = vrot.slane %v5863_v36, %v4773_v23  ;;  %v551_v5 = vrot.slane %v5863_v36, %v4766_v16  ;;  %v412_v14 = vld [vmem:[#allocation4 + $0x3] ss:$8 sm:$0xf] }
 0x1e7   : > { %v5835_v25 = vpop.permute.xlu0 %707  ;;  %v714_v41 = vsel %vm7588_vm4, %v704_v39, %v5773_v33  ;;  %v823_v39 = vrot.slane %v5695_v31, %v4784_v28  ;;  %v894_v31 = vrot.slane %v5731_v45, %v4784_v28  ;;  %v483_v56 = vld [vmem:[#allocation4 + $0x4] ss:$8 sm:$0xf]  ;;  %v760_v45 = vrot.slane %v5826_v40, %v4788_v30 }
 0x1e8   : > { %v715_v24 = vsel %vm7588_vm4, %v5773_v33, %v5835_v25  ;;  %v722_v8 = vsel %vm694_vm3, %v714_v41, 0.0  ;;  %vm765_vm3 = vcmp.eq.s32.totalorder %v752_v18, 1 }
 0x1e9   : > { %v723_v6 = vsel %vm695_vm9, %v715_v24, 0.0  ;;  %v1975_v44 = vld [vmem:[#allocation3 + $0xc8] sm:$0xff]  ;;  %v730_v47 = vrot.slane %v722_v8, 4  ;;  %vm614_vm9 = vcmp.ne.f32.partialorder %v613_v1, 0.0 }
 0x1ea   : > { %3611 = vrot.lane.b32.xlu0 %v3576_v7, %s4580_s23  ;;  %v731_v32 = vrot.slane %v723_v6, 4  ;;  %2103 = vmatprep.subr.mxu1 %v1975_v44  ;;  %v576_v63 = vpop.permute.xlu1 %575  ;;  %v5873_v51 = vsel %vm614_vm9, 1, %v7634_v12  ;;  %vm413_vm9 = vcmp.ne.f32.partialorder %v412_v14, 0.0  ;;  %v353_v14 = vld [vmem:[#allocation4 + $0x2] ss:$8 sm:$0xf] }
 0x1eb   : > { %2104 = vmatpush1.msra.mxu1 %v1974_v9  ;;  %v5845_v35 = vpop.permute.xlu0 %778  ;;  %738 = vst [vmem:[#allocation3 + $0x120] sm:$0xf0] %v730_v47  ;;  %v626_v42 = vrot.slane %v5873_v51, %v4773_v23 }
 0x1ec   : > { %739 = vst [vmem:[#allocation3 + $0x150] sm:$0xf0] %v731_v32  ;;  %v786_v33 = vsel %vm7823_vm8, %v5787_v60, %v5845_v35  ;;  %v1970_v24 = vld [vmem:[#allocation3 + $0x190] sm:$0xff] }
 0x1ed   : > { %v794_v19 = vsel %vm766_vm10, %v786_v33, 0.0  ;;  %v1964_v11 = vld [vmem:[#allocation3 + $0x80] sm:$0xff]  ;;  %vm897_vm10 = vcmp.eq.s32.totalorder %v890_v50, 1  ;;  %v689_v33 = vrot.slane %v5806_v2, %v4788_v30 }
 0x1ee   : > { %798 = vst [vmem:[#allocation3 + $0x188] sm:$0xf] %v794_v19  ;;  %2037 = vmatpush1.msra.mxu0 %v1964_v11  ;;  %v5856_v54 = vpop.permute.xlu1 %646 }
 0x1ef   : > { %v972_v20 = vpop.permute.xlu0 %971 }
 0x1f0   : > { %v977_v57 = vsel %vm7824_vm5, %v5810_v37, %v972_v20  ;;  %vm564_vm5 = vcmp.eq.s32.totalorder %v551_v5, 1  ;;  %v622_v20 = vrot.slane %v5873_v51, %v4766_v16 }
 0x1f1   : > { %v985_v59 = vsel %vm957_vm12, %v977_v57, 0.0  ;;  %vm565_vm12 = vcmp.eq.s32.totalorder %v555_v49, 1  ;;  %v5905_v57 = vsel %vm413_vm9, 1, %v7634_v12 }
 0x1f2   : > { %v993_v22 = vrot.slane %v985_v59, 4  ;;  %v840_v10 = vpop.permute.xlu1 %839 }
 0x1f3   : > { %v1043_v55 = vpop.permute.xlu0 %1042  ;;  %v846_v21 = vsel %vm7584_vm11, %v5755_v15, %v840_v10 }
 0x1f4   : > { %1001 = vst [vmem:[#allocation3 + $0x28] sm:$0xf0] %v993_v22  ;;  %v1048_v29 = vsel %vm7822_vm1, %v1041_v38, %v1043_v55  ;;  %v854_v62 = vsel %vm826_vm7, %v846_v21, 0.0  ;;  %vm636_vm7 = vcmp.eq.s32.totalorder %v626_v42, 1  ;;  %vm827_vm1 = vcmp.eq.s32.totalorder %v823_v39, 1 }
 0x1f5   : > { %v1056_v26 = vsel %vm1028_vm15, %v1048_v29, 0.0  ;;  %v1961_v37 = vld [vmem:[#allocation3 + $0x188] sm:$0xff]  ;;  %v862_v34 = vrot.slane %v854_v62, 4  ;;  %vm7826_vm15 = vmmov %vm7825_vm14  ;;  %v425_v29 = vrot.slane %v5905_v57, %v4773_v23  ;;  %v421_v21 = vrot.slane %v5905_v57, %v4766_v16 }
 0x1f6   : > { %1060 = vst [vmem:[#allocation3 + $0xb8] sm:$0xf] %v1056_v26  ;;  %2038 = vmatprep.subr.mxu0 %v1961_v37  ;;  %v911_v46 = vpop.permute.xlu1 %910  ;;  %v282_v39 = vld [vmem:[#allocation4 + $0x1] ss:$8 sm:$0xf] }
 0x1f7   : > { %v775_v48 = vpop.permute.xlu0 %774  ;;  %870 = vst [vmem:[#allocation3 + $0x138] sm:$0xf0] %v862_v34  ;;  %v917_v27 = vsel %vm7572_vm2, %v5768_v4, %v911_v46 }
 0x1f8   : > { %v785_v15 = vsel %vm7823_vm8, %v775_v48, %v5787_v60  ;;  %v925_v58 = vsel %vm897_vm10, %v917_v27, 0.0  ;;  %vm696_vm10 = vcmp.eq.s32.totalorder %v689_v33, 1  ;;  %vm484_vm8 = vcmp.ne.f32.partialorder %v483_v56, 0.0 }
 0x1f9   : > { %v793_v0 = vsel %vm765_vm3, %v785_v15, 0.0  ;;  %929 = vst [vmem:[#allocation3 + $0x1b8] sm:$0xf] %v925_v58  ;;  %vm898_vm3 = vcmp.eq.s32.totalorder %v894_v31, 1  ;;  %v5915_v37 = vsel %vm484_vm8, 1, %v7634_v12 }
 0x1fa   : > { %797 = vst [vmem:[#allocation3 + $0xe0] sm:$0xf] %v793_v0  ;;  %v574_v60 = vpop.permute.xlu1 %573  ;;  %v496_v5 = vrot.slane %v5915_v37, %v4773_v23 }
 0x1fb   : > { %v5881_v38 = vpop.permute.xlu0 %577  ;;  %v584_v13 = vsel %vm7826_vm15, %v574_v60, %v576_v63  ;;  %vm435_vm15 = vcmp.eq.s32.totalorder %v425_v29, 1  ;;  %v693_v60 = vrot.slane %v5806_v2, %v4784_v28  ;;  %v764_v2 = vrot.slane %v5826_v40, %v4784_v28 }
 0x1fc   : > { %v585_v43 = vsel %vm7825_vm14, %v576_v63, %v5881_v38  ;;  %v592_v4 = vsel %vm564_vm5, %v584_v13, 0.0  ;;  %vm767_vm5 = vcmp.eq.s32.totalorder %v760_v45, 1  ;;  %vm7827_vm14 = vcmask 900096  }
 0x1fd   : > { %v593_v52 = vsel %vm565_vm12, %v585_v43, 0.0  ;;  %v1971_v3 = vld [vmem:[#allocation3 + $0xb8] sm:$0xff]  ;;  %v600_v6 = vrot.slane %v592_v4, 4  ;;  %vm635_vm12 = vcmp.eq.s32.totalorder %v622_v20, 1  ;;  %vm697_vm8 = vcmp.eq.s32.totalorder %v693_v60, 1 }
 0x1fe   : > { %v601_v7 = vrot.slane %v593_v52, 4  ;;  %2105 = vmatprep.subr.mxu1 %v1971_v3  ;;  %v446_v32 = vpop.permute.xlu1 %445  ;;  %v630_v40 = vrot.slane %v5873_v51, %v4788_v30 }
 0x1ff   : > { %2106 = vmatpush1.msra.mxu1 %v1970_v24  ;;  %v5888_v41 = vpop.permute.xlu0 %648  ;;  %608 = vst [vmem:[#allocation3 + $0x180] sm:$0xf0] %v600_v6 }
 0x200   : > { %609 = vst [vmem:[#allocation3 + $0x110] sm:$0xf0] %v601_v7  ;;  %v656_v44 = vsel %vm7585_vm6, %v5856_v54, %v5888_v41  ;;  %v1966_v43 = vld [vmem:[#allocation3 + $0x1b8] sm:$0xff] }
 0x201   : > { %v664_v8 = vsel %vm636_vm7, %v656_v44, 0.0  ;;  %v1960_v9 = vld [vmem:[#allocation3 + $0xe0] sm:$0xff]  ;;  %vm434_vm7 = vcmp.eq.s32.totalorder %v421_v21, 1  ;;  %v559_v44 = vrot.slane %v5863_v36, %v4788_v30 }
 0x202   : > { %668 = vst [vmem:[#allocation3 + $0x150] sm:$0xf] %v664_v8  ;;  %2039 = vmatpush1.msra.mxu0 %v1960_v9  ;;  %v5898_v19 = vpop.permute.xlu1 %516 }
 0x203   : > { %v842_v47 = vpop.permute.xlu0 %841 }
 0x204   : > { %v847_v63 = vsel %vm7584_vm11, %v840_v10, %v842_v47  ;;  %v492_v47 = vrot.slane %v5915_v37, %v4766_v16 }
 0x205   : > { %v855_v11 = vsel %vm827_vm1, %v847_v63, 0.0  ;;  %vm7828_vm1 = vcmask 982016  }
 0x206   : > { %v863_v53 = vrot.slane %v855_v11, 4  ;;  %v710_v1 = vpop.permute.xlu1 %709  ;;  %vm7829_vm9 = vmmov %vm7828_vm1 }
 0x207   : > { %v913_v17 = vpop.permute.xlu0 %912  ;;  %v716_v18 = vsel %vm7588_vm4, %v5835_v25, %v710_v1 }
 0x208   : > { %871 = vst [vmem:[#allocation3 + $0x140] sm:$0xf0] %v863_v53  ;;  %v918_v59 = vsel %vm7572_vm2, %v911_v46, %v913_v17  ;;  %v724_v50 = vsel %vm696_vm10, %v716_v18, 0.0  ;;  %vm7830_vm10 = vcmask 973824  }
 0x209   : > { %v926_v22 = vsel %vm898_vm3, %v918_v59, 0.0  ;;  %v1957_v55 = vld [vmem:[#allocation3 + $0x150] sm:$0xff]  ;;  %v732_v10 = vrot.slane %v724_v50, 4  ;;  %vm506_vm3 = vcmp.eq.s32.totalorder %v496_v5, 1 }
 0x20a   : > { %930 = vst [vmem:[#allocation3 + $0x28] sm:$0xf] %v926_v22  ;;  %2040 = vmatprep.subr.mxu0 %v1957_v55  ;;  %v781_v62 = vpop.permute.xlu1 %780 }
 0x20b   : > { %v645_v26 = vpop.permute.xlu0 %644  ;;  %740 = vst [vmem:[#allocation3 + $0x108] sm:$0xf0] %v732_v10  ;;  %v787_v34 = vsel %vm7827_vm14, %v5845_v35, %v781_v62  ;;  %vm566_vm14 = vcmp.eq.s32.totalorder %v559_v44, 1 }
 0x20c   : > { %v655_v25 = vsel %vm7585_vm6, %v645_v26, %v5856_v54  ;;  %v795_v48 = vsel %vm767_vm5, %v787_v34, 0.0  ;;  %vm768_vm5 = vcmp.eq.s32.totalorder %v764_v2, 1 }
 0x20d   : > { %v663_v49 = vsel %vm635_vm12, %v655_v25, 0.0  ;;  %799 = vst [vmem:[#allocation3 + $0x138] sm:$0xf] %v795_v48  ;;  %vm283_vm12 = vcmp.ne.f32.partialorder %v282_v39, 0.0 }
 0x20e   : > { %667 = vst [vmem:[#allocation3 + $0x120] sm:$0xf] %v663_v49  ;;  %v444_v54 = vpop.permute.xlu1 %443  ;;  %v5947_v63 = vsel %vm283_vm12, 1, %v7634_v12 }
 0x20f   : > { %v5923_v15 = vpop.permute.xlu0 %447  ;;  %v454_v27 = vsel %vm7829_vm9, %v444_v54, %v446_v32  ;;  %vm505_vm9 = vcmp.eq.s32.totalorder %v492_v47, 1  ;;  %v295_v59 = vrot.slane %v5947_v63, %v4773_v23  ;;  %v291_v18 = vrot.slane %v5947_v63, %v4766_v16 }
 0x210   : > { %v455_v46 = vsel %vm7828_vm1, %v446_v32, %v5923_v15  ;;  %v462_v35 = vsel %vm434_vm7, %v454_v27, 0.0  ;;  %vm354_vm7 = vcmp.ne.f32.partialorder %v353_v14, 0.0  ;;  %vm7832_vm1 = vcmask 965632  }
 0x211   : > { %v463_v0 = vsel %vm435_vm15, %v455_v46, 0.0  ;;  %v1967_v58 = vld [vmem:[#allocation3 + $0x28] sm:$0xff]  ;;  %v470_v52 = vrot.slane %v462_v35, 4  ;;  %vm7831_vm15 = vcmask 900096   ;;  %v5957_v55 = vsel %vm354_vm7, 1, %v7634_v12 }
 0x212   : > { %v471_v42 = vrot.slane %v463_v0, 4  ;;  %2107 = vmatprep.subr.mxu1 %v1967_v58  ;;  %v316_v7 = vpop.permute.xlu1 %315  ;;  %v366_v21 = vrot.slane %v5957_v55, %v4773_v23  ;;  %vm304_vm12 = vcmp.eq.s32.totalorder %v291_v18, 1  ;;  %v563_v0 = vrot.slane %v5863_v36, %v4784_v28 }
 0x213   : > { %2108 = vmatpush1.msra.mxu1 %v1966_v43  ;;  %v5930_v13 = vpop.permute.xlu0 %518  ;;  %478 = vst [vmem:[#allocation3 + $0x50] sm:$0xf0] %v470_v52  ;;  %v299_v39 = vrot.slane %v5947_v63, %v4788_v30 }
 0x214   : > { %479 = vst [vmem:[#allocation3 + $0x168] sm:$0xf0] %v471_v42  ;;  %v526_v3 = vsel %vm7830_vm10, %v5898_v19, %v5930_v13  ;;  %v1962_v54 = vld [vmem:[#allocation3 + $0x138] sm:$0xff]  ;;  %v500_v42 = vrot.slane %v5915_v37, %v4788_v30  ;;  %vm567_vm7 = vcmp.eq.s32.totalorder %v563_v0, 1 }
 0x215   : > { %v534_v4 = vsel %vm506_vm3, %v526_v3, 0.0  ;;  %v1956_v24 = vld [vmem:[#allocation3 + $0x120] sm:$0xff]  ;;  %vm637_vm3 = vcmp.eq.s32.totalorder %v630_v40, 1 }
 0x216   : > { %538 = vst [vmem:[#allocation3 + $0x110] sm:$0xf] %v534_v4  ;;  %2041 = vmatpush1.msra.mxu0 %v1956_v24  ;;  %v5940_v8 = vpop.permute.xlu1 %386 }
 0x217   : > { %v712_v6 = vpop.permute.xlu0 %711 }
 0x218   : > { %v717_v32 = vsel %vm7588_vm4, %v710_v1, %v712_v6 }
 0x219   : > { %v725_v9 = vsel %vm697_vm8, %v717_v32, 0.0  ;;  %vm305_vm8 = vcmp.eq.s32.totalorder %v295_v59, 1 }
 0x21a   : > { %v733_v31 = vrot.slane %v725_v9, 4  ;;  %v580_v56 = vpop.permute.xlu1 %579 }
 0x21b   : > { %v783_v33 = vpop.permute.xlu0 %782  ;;  %v586_v20 = vsel %vm7832_vm1, %v5881_v38, %v580_v56  ;;  %vm507_vm1 = vcmp.eq.s32.totalorder %v500_v42, 1 }
 0x21c   : > { %741 = vst [vmem:[#allocation3 + $0x60] sm:$0xf0] %v733_v31  ;;  %v788_v11 = vsel %vm7831_vm15, %v781_v62, %v783_v33  ;;  %v594_v45 = vsel %vm566_vm14, %v586_v20, 0.0  ;;  %v429_v62 = vrot.slane %v5905_v57, %v4788_v30  ;;  %vm7833_vm15 = vcmask 982016  }
 0x21d   : > { %v796_v53 = vsel %vm768_vm5, %v788_v11, 0.0  ;;  %v1953_v17 = vld [vmem:[#allocation3 + $0x110] sm:$0xff]  ;;  %v602_v1 = vrot.slane %v594_v45, 4  ;;  %vm376_vm5 = vcmp.eq.s32.totalorder %v366_v21, 1  ;;  %v370_v31 = vrot.slane %v5957_v55, %v4788_v30 }
 0x21e   : > { %800 = vst [vmem:[#allocation3 + $0x140] sm:$0xf] %v796_v53  ;;  %2042 = vmatprep.subr.mxu0 %v1953_v17  ;;  %v651_v50 = vpop.permute.xlu1 %650  ;;  %vm436_vm14 = vcmp.eq.s32.totalorder %v429_v62, 1  ;;  %v433_v53 = vrot.slane %v5905_v57, %v4784_v28  ;;  %v303_v21 = vrot.slane %v5947_v63, %v4784_v28 }
 0x21f   : > { %v515_v22 = vpop.permute.xlu0 %514  ;;  %610 = vst [vmem:[#allocation3 + $0x118] sm:$0xf0] %v602_v1  ;;  %v657_v10 = vsel %vm7585_vm6, %v5888_v41, %v651_v50 }
 0x220   : > { %v525_v38 = vsel %vm7830_vm10, %v515_v22, %v5898_v19  ;;  %v665_v26 = vsel %vm637_vm3, %v657_v10, 0.0  ;;  %vm7835_vm3 = vmmov %vm7830_vm10 }
 0x221   : > { %v533_v29 = vsel %vm505_vm9, %v525_v38, 0.0  ;;  %669 = vst [vmem:[#allocation3 + $0x108] sm:$0xf] %v665_v26  ;;  %vm7834_vm9 = vcmask 965632   ;;  %v504_v38 = vrot.slane %v5915_v37, %v4784_v28 }
 0x222   : > { %537 = vst [vmem:[#allocation3 + $0x180] sm:$0xf] %v533_v29  ;;  %v314_v49 = vpop.permute.xlu1 %313 }
 0x223   : > { %v318_v25 = vpop.permute.xlu0 %317  ;;  %v324_v48 = vsel %vm7586_vm13, %v314_v49, %v316_v7 }
 0x224   : > { %v325_v19 = vsel %vm7586_vm13, %v316_v7, %v318_v25  ;;  %v332_v46 = vsel %vm304_vm12, %v324_v48, 0.0  ;;  %v634_v7 = vrot.slane %v5873_v51, %v4784_v28  ;;  %v362_v51 = vrot.slane %v5957_v55, %v4766_v16  ;;  %v218_v48 = vld [vmem:[#allocation9] sm:$0xf] }
 0x225   : > { %v333_v34 = vsel %vm305_vm8, %v325_v19, 0.0  ;;  %v1963_v5 = vld [vmem:[#allocation3 + $0x140] sm:$0xff]  ;;  %v340_v27 = vrot.slane %v332_v46, 4  ;;  %vm306_vm8 = vcmp.eq.s32.totalorder %v299_v39, 1 }
 0x226   : > { %v341_v41 = vrot.slane %v333_v34, 4  ;;  %2109 = vmatprep.subr.mxu1 %v1963_v5  ;;  %v450_v43 = vpop.permute.xlu1 %449  ;;  %vm638_vm10 = vcmp.eq.s32.totalorder %v634_v7, 1  ;;  %vm375_vm12 = vcmp.eq.s32.totalorder %v362_v51, 1  ;;  %v374_v34 = vrot.slane %v5957_v55, %v4784_v28 }
 0x227   : > { %2110 = vmatpush1.msra.mxu1 %v1962_v54  ;;  %v389_v58 = vpop.permute.xlu0 %388  ;;  %348 = vst [vmem:[#allocation3 + $0xb0] sm:$0xf0] %v340_v27  ;;  %v456_v52 = vsel %vm7833_vm15, %v5923_v15, %v450_v43 }
 0x228   : > { %349 = vst [vmem:[#allocation3 + $0x1b0] sm:$0xf0] %v341_v41  ;;  %v396_v35 = vsel %vm7587_vm0, %v5940_v8, %v389_v58  ;;  %v464_v36 = vsel %vm436_vm14, %v456_v52, 0.0  ;;  %vm437_vm14 = vcmp.eq.s32.totalorder %v433_v53, 1 }
 0x229   : > { %v404_v60 = vsel %vm376_vm5, %v396_v35, 0.0  ;;  %v1952_v3 = vld [vmem:[#allocation3 + $0x180] sm:$0xff]  ;;  %v472_v4 = vrot.slane %v464_v36, 4  ;;  %vm377_vm5 = vcmp.eq.s32.totalorder %v370_v31, 1 }
 0x22a   : > { %408 = vst [vmem:[#allocation3 + $0x168] sm:$0xf] %v404_v60  ;;  %2043 = vmatpush1.msra.mxu0 %v1952_v3  ;;  %v521_v6 = vpop.permute.xlu1 %520 }
 0x22b   : > { %v582_v24 = vpop.permute.xlu0 %581  ;;  %480 = vst [vmem:[#allocation3 + $0x130] sm:$0xf0] %v472_v4  ;;  %v527_v15 = vsel %vm7835_vm3, %v5930_v13, %v521_v6 }
 0x22c   : > { %v587_v2 = vsel %vm7834_vm9, %v580_v56, %v582_v24  ;;  %v535_v9 = vsel %vm507_vm1, %v527_v15, 0.0  ;;  %vm7836_vm1 = vmmov %vm7835_vm3  ;;  %vm307_vm9 = vcmp.eq.s32.totalorder %v303_v21, 1  ;;  %vm7571_vm3 = vcmask 883712  }
 0x22d   : > { %v595_v44 = vsel %vm567_vm7, %v587_v2, 0.0  ;;  %539 = vst [vmem:[#allocation3 + $0x118] sm:$0xf] %v535_v9  ;;  %vm508_vm7 = vcmp.eq.s32.totalorder %v504_v38, 1 }
 0x22e   : > { %v603_v32 = vrot.slane %v595_v44, 4  ;;  %v320_v33 = vpop.permute.xlu1 %319  ;;  %v1944_v41 = vld [vmem:[#allocation3 + $0xb0] sm:$0xff] }
 0x22f   : > { %v653_v14 = vpop.permute.xlu0 %652  ;;  %v326_v11 = vsel %vm7586_vm13, %v318_v25, %v320_v33  ;;  %v1945_v49 = vld [vmem:[#allocation3 + $0x1b0] sm:$0xff] }
 0x230   : > { %611 = vst [vmem:[#allocation3 + $0x98] sm:$0xf0] %v603_v32  ;;  %v658_v47 = vsel %vm7585_vm6, %v651_v50, %v653_v14  ;;  %v334_v56 = vsel %vm306_vm8, %v326_v11, 0.0  ;;  %vm7837_vm8 = vcmask 1043456  }
 0x231   : > { %v666_v40 = vsel %vm638_vm10, %v658_v47, 0.0  ;;  %v1949_v13 = vld [vmem:[#allocation3 + $0x168] sm:$0xff]  ;;  %v342_v20 = vrot.slane %v334_v56, 4  ;;  %vm378_vm10 = vcmp.eq.s32.totalorder %v374_v34, 1 }
 0x232   : > { %670 = vst [vmem:[#allocation3 + $0x60] sm:$0xf] %v666_v40  ;;  %2044 = vmatprep.subr.mxu0 %v1949_v13 }
 0x233   : > { %v385_v17 = vpop.permute.xlu0 %384  ;;  %350 = vst [vmem:[#allocation3 + $0xd8] sm:$0xf0] %v342_v20 }
 0x234   : > { %v395_v45 = vsel %vm7587_vm0, %v385_v17, %v5940_v8  ;;  %v1958_v8 = vld [vmem:[#allocation3 + $0x108] sm:$0xff]  ;;  %v1954_v42 = vld [vmem:[#allocation3 + $0x118] sm:$0xff] }
 0x235   : > { %v391_v59 = vpop.permute.xlu1 %390  ;;  %v403_v1 = vsel %vm375_vm12, %v395_v45, 0.0  ;;  %vm7838_vm12 = vmmov %vm7837_vm8 }
 0x236   : > { %v397_v22 = vsel %vm7587_vm0, %v389_v58, %v391_v59  ;;  %407 = vst [vmem:[#allocation3 + $0x50] sm:$0xf] %v403_v1 }
 0x237   : > { %v405_v18 = vsel %vm377_vm5, %v397_v22, 0.0  ;;  %v452_v50 = vpop.permute.xlu0 %451  ;;  %vm7839_vm5 = vmmov %vm7837_vm8 }
 0x238   : > { %409 = vst [vmem:[#allocation3 + $0x130] sm:$0xf] %v405_v18  ;;  %v457_v57 = vsel %vm7833_vm15, %v450_v43, %v452_v50  ;;  %vm7841_vm15 = vmmov %vm7839_vm5 }
 0x239   : > { %v465_v29 = vsel %vm437_vm14, %v457_v57, 0.0  ;;  %v1959_v10 = vld [vmem:[#allocation3 + $0x60] sm:$0xff]  ;;  %vm7840_vm14 = vmmov %vm7839_vm5 }
 0x23a   : > { %v473_v26 = vrot.slane %v465_v29, 4  ;;  %2111 = vmatprep.subr.mxu1 %v1959_v10  ;;  %v1946_v52 = vld [vmem:[#allocation3 + $0xd8] sm:$0xff] }
 0x23b   : > { %2112 = vmatpush1.msra.mxu1 %v1958_v8  ;;  %v523_v25 = vpop.permute.xlu0 %522 }
 0x23c   : > { %481 = vst [vmem:[#allocation3 + $0x48] sm:$0xf0] %v473_v26  ;;  %v528_v62 = vsel %vm7836_vm1, %v521_v6, %v523_v25  ;;  %vm7843_vm1 = vmmov %vm7839_vm5 }
 0x23d   : > { %v536_v19 = vsel %vm508_vm7, %v528_v62, 0.0  ;;  %v1948_v37 = vld [vmem:[#allocation3 + $0x50] sm:$0xff]  ;;  %vm7842_vm7 = vmmov %vm7839_vm5 }
 0x23e   : > { %540 = vst [vmem:[#allocation3 + $0x98] sm:$0xf] %v536_v19  ;;  %2045 = vmatpush1.msra.mxu0 %v1948_v37 }
 0x23f   : > { %2046 = vmatprep.subr.mxu0 %v1945_v49  ;;  %v1950_v43 = vld [vmem:[#allocation3 + $0x130] sm:$0xff] }
 0x240   : > { %v322_v5 = vpop.permute.xlu0 %321  ;;  %2047 = vmatpush1.msra.mxu0 %v1944_v41 }
 0x241   : > { %v327_v63 = vsel %vm7586_vm13, %v320_v33, %v322_v5  ;;  %4283 = vmatmul.mubr.msk.f32.vlgmr.msra.gmra.mxu0 %vm7571_vm3, %v218_v48 }
 0x242   : > { %v335_v46 = vsel %vm307_vm9, %v327_v63, 0.0  ;;  %4016 = vmatprep.mubr.f32.mxu0 %v4591_v61  ;;  %vm7844_vm9 = vmmov %vm7843_vm1 }
 0x243   : > { %v343_v54 = vrot.slane %v335_v46, 4 }
 0x244   : > { %v393_v0 = vpop.permute.xlu0 %392 }
 0x245   : > { %351 = vst [vmem:[#allocation3 + $0x18] sm:$0xf0] %v343_v54  ;;  %v398_v27 = vsel %vm7587_vm0, %v391_v59, %v393_v0  ;;  %v1955_v58 = vld [vmem:[#allocation3 + $0x98] sm:$0xff] }
 0x246   : > { %v406_v55 = vsel %vm378_vm10, %v398_v27, 0.0  ;;  %2113 = vmatprep.subr.mxu1 %v1955_v58  ;;  %v2222_v58 = vld [vmem:[#allocation4] ss:$8 sm:$0xf] }
 0x247   : > { %410 = vst [vmem:[#allocation3 + $0x48] sm:$0xf] %v406_v55  ;;  %2114 = vmatpush1.msra.mxu1 %v1954_v42  ;;  %vm2223_vm10 = vcmp.ne.f32.partialorder %v2222_v58, 0.0 }
 0x248   : > { %v6017_v53 = vpop.permute.xlu0 %3794  ;;  %v2226_v42 = vsel %vm2223_vm10, 1, %v7634_v12 }
 0x249   : > { %7845 = vst [vmem:[#allocation21_spill] sm:$0xff] %v6017_v53  ;;  %v6025_v59 = vpop.permute.xlu1 %3416 }
 0x24c   : > { %v1947_v60 = vld [vmem:[#allocation3 + $0x18] sm:$0xff]  ;;  %v6019_v20 = vpop.permute.xlu0 %3863 }
 0x24d   : > { %7846 = vst [vmem:[#allocation31_spill] sm:$0xff] %v6019_v20  ;;  %v6029_v22 = vpop.permute.xlu1 %3485 }
 0x24e   : > { %v1951_v35 = vld [vmem:[#allocation3 + $0x48] sm:$0xff] }
 0x24f   : > { %2115 = vmatprep.subr.mxu1 %v1951_v35  ;;  %v2238_v35 = vrot.slane %v2226_v42, %v4788_v30 }
 0x250   : > { %2116 = vmatpush1.msra.mxu1 %v1950_v43  ;;  %v6021_v17 = vpop.permute.xlu0 %3668  ;;  %v2242_v43 = vrot.slane %v2226_v42, %v4784_v28 }
 0x251   : > { %2117 = vmatprep.subr.mxu1 %v1947_v60  ;;  %7847 = vst [vmem:[#allocation17_spill] sm:$0xff] %v6021_v17 }
 0x252   : > { %2118 = vmatpush1.msra.mxu1 %v1946_v52 }
 0x253   : > { %4286 = vmatmul.mubr.msk.f32.vlgmr.msra.gmra.mxu1 %vm7571_vm3, %v218_v48  ;;  %vm7953_vm3 = vcmask 982016  }
 0x254   : > { %4087 = vmatprep.mubr.f32.mxu1 %v4591_v61  ;;  %v6023_v45 = vpop.permute.xlu0 %3737 }
 0x255   : > { %7848 = vst [vmem:[#allocation30_spill] sm:$0xff] %v6023_v45 }
 0x258   : > { %v6027_v1 = vpop.permute.xlu0 %3542 }
 0x259   : > { %7849 = vst [vmem:[#allocation23_spill] sm:$0xff] %v6027_v1 }
 0x25c   : > { %v6031_v18 = vpop.permute.xlu0 %3611 }
 0x25d   : > { %7850 = vst [vmem:[#allocation37_spill] sm:$0xff] %v6031_v18 }
 0x301   : > { %v2082_v3 = vpop.f32.mrf.mxu0 }
 0x302   : > { %v2167_v7 = vmul.f32 %v2082_v3, %v2082_v3  ;;  %v2158_v24 = vsel %vm7837_vm8, %v2082_v3, 0.0  ;;  %vm2245_vm8 = vcmp.eq.s32.totalorder %v2238_v35, 1 }
 0x303   : > { %v2084_v36 = vpop.f32.mrf.mxu0 }
 0x304   : > { %v2168_v4 = vmul.f32 %v2084_v36, %v2084_v36  ;;  %v2159_v39 = vsel %vm7838_vm12, %v2084_v36, 0.0  ;;  %v2171_v2 = vsel %vm7839_vm5, %v2167_v7, 0.0  ;;  %v3338_v7 = vld [vmem:[#allocation4 + $0x42] ss:$8 sm:$0xf]  ;;  %vm7851_vm12 = vcmask 592896  }
 0x305   : > { %v2160_v44 = vadd.f32 %v2159_v39, %v2158_v24  ;;  %vm7852_vm5 = vcmask 596992  }
 0x306   : > { %v2172_v6 = vsel %vm7840_vm14, %v2168_v4, 0.0  ;;  %vm7853_vm14 = vmmov %vm7843_vm1 }
 0x307   : > { %v2173_v51 = vadd.f32 %v2172_v6, %v2171_v2  ;;  %v7855_v2 = vld [vmem:[#allocation16_spill] sm:$0xff] }
 0x313   : > { %v2153_v15 = vpop.f32.mrf.mxu1 }
 0x314   : > { %v2161_v32 = vsel %vm7841_vm15, %v2153_v15, 0.0  ;;  %v2169_v9 = vmul.f32 %v2153_v15, %v2153_v15  ;;  %vm2246_vm15 = vcmp.eq.s32.totalorder %v2242_v43, 1 }
 0x315   : > { %v2162_v14 = vadd.f32 %v2161_v32, %v2160_v44  ;;  %v2155_v61 = vpop.f32.mrf.mxu1 }
 0x316   : > { %v2174_v31 = vsel %vm7842_vm7, %v2169_v9, 0.0  ;;  %v2163_v47 = vsel %vm7843_vm1, %v2155_v61, 0.0  ;;  %v2170_v33 = vmul.f32 %v2155_v61, %v2155_v61  ;;  %vm7854_vm7 = vmmov %vm7852_vm5  ;;  %vm7856_vm1 = vnez %v7855_v2 }
 0x317   : > { %v2164_v40 = vadd.f32 %v2163_v47, %v2162_v14  ;;  %v2175_v11 = vadd.f32 %v2174_v31, %v2173_v51  ;;  %v2230_v14 = vrot.slane %v2226_v42, %v4766_v16 }
 0x318   : > { %v2176_v13 = vsel %vm7844_vm9, %v2170_v33, 0.0  ;;  %vm3339_vm9 = vcmp.ne.f32.partialorder %v3338_v7, 0.0  ;;  %v2234_v33 = vrot.slane %v2226_v42, %v4773_v23 }
 0x319   : > { %2165 = vadd.xlane.f32.xlu1 %v2164_v40  ;;  %v2177_v56 = vadd.f32 %v2176_v13, %v2175_v11  ;;  %v3342_v32 = vsel %vm3339_vm9, 1, %v7634_v12 }
 0x31a   : > { %v3346_v51 = vrot.slane %v3342_v32, %v4766_v16  ;;  %v3354_v31 = vrot.slane %v3342_v32, %v4788_v30  ;;  %v3350_v47 = vrot.slane %v3342_v32, %v4773_v23  ;;  %v3358_v40 = vrot.slane %v3342_v32, %v4784_v28 }
 0x31b   : > { %2178 = vadd.xlane.f32.xlu0 %v2177_v56 }
 0x31c   : > { %vm3359_vm10 = vcmp.eq.s32.totalorder %v3346_v51, 1 }
 0x3a2   : > { %v2166_v38 = vpop.xlane.xlu1 %2165 }
 0x3a3   : > { %v2180_v50 = vmul.f32 0.001953125, %v2166_v38 }
 0x3a4   : > { %v2179_v57 = vpop.xlane.xlu0 %2178 }
 0x3a5   : > { %v2182_v29 = vmul.f32 %v2180_v50, %v2180_v50  ;;  %v2181_v10 = vmul.f32 0.001953125, %v2179_v57  ;;  %v2187_v25 = vsub.f32 %v2153_v15, %v2180_v50  ;;  %v2188_v62 = vsub.f32 %v2155_v61, %v2180_v50 }
 0x3a6   : > { %v2185_v19 = vsub.f32 %v2082_v3, %v2180_v50  ;;  %v2186_v37 = vsub.f32 %v2084_v36, %v2180_v50 }
 0x3a7   : > { %v2183_v26 = vsub.f32 %v2181_v10, %v2182_v29 }
 0x3a9   : > { %v2184_v8 = vmax.f32 %v2183_v26, 0.0 }
 0x3ab   : > { %v2189_v21 = vadd.f32 1e-05, %v2184_v8 }
 0x3ad   : > { %4406 = vrsqrt.f32 %v2189_v21 }
 0x3ba   : > { %v4407_v49 = vpop.eup %4406 }
 0x3bb   : > { %v2193_v34 = vmul.f32 %v4407_v49, %v2187_v25  ;;  %v2194_v48 = vmul.f32 %v4407_v49, %v2188_v62  ;;  %v2191_v5 = vmul.f32 %v4407_v49, %v2185_v19  ;;  %v2192_v41 = vmul.f32 %v4407_v49, %v2186_v37 }
 0x3bd   : > { %v2197_v63 = vmax.f32 %v2193_v34, 0.0  ;;  %v2198_v46 = vmax.f32 %v2194_v48, 0.0  ;;  %v2195_v54 = vmax.f32 %v2191_v5, 0.0  ;;  %v2196_v0 = vmax.f32 %v2192_v41, 0.0 }
 0x3bf   : > { %v2206_v27 = vcombine.low %v2197_v63, %v2198_v46  ;;  %v2205_v55 = vcombine.low %v2195_v54, %v2196_v0 }
 0x3c1   : > { %2209 = vrot.lane.b32.xlu1 %v2206_v27, %s4572_s20  ;;  %2207 = vrot.lane.b32.xlu0 %v2205_v55, %s4572_s20  ;;  %s7857_s20 = smov 46  }
 0x433   : > { %v2210_v60 = vpop.permute.xlu1 %2209  ;;  %v2208_v52 = vpop.permute.xlu0 %2207 }
 0x434   : > { %v2212_v3 = vrot.slane %v2210_v60, 4  ;;  %v2211_v36 = vrot.slane %v2208_v52, 4 }
 0x436   : > { %2221 = vst.msk [vmem:[#allocation2 + $0x10] sm:$0xf] %vm7851_vm12, %v2212_v3  ;;  %v2213_v4 = vsel %vm7852_vm5, %v2211_v36, %v2208_v52  ;;  %v2214_v24 = vsel %vm7853_vm14, %v2211_v36, %v2212_v3  ;;  %vm6070_vm12 = vcmp.eq.s32.totalorder %v3354_v31, 1  ;;  %vm3360_vm5 = vcmp.eq.s32.totalorder %v3350_v47, 1 }
 0x437   : > { %v6042_v39 = vsel %vm7854_vm7, %v2214_v24, %v2210_v60  ;;  %2219 = vst.msk [vmem:[#allocation2] sm:$0xff] %vm7856_vm1, %v2213_v4  ;;  %vm6076_vm14 = vcmp.eq.s32.totalorder %v2234_v33, 1 }
 0x438   : > { %2220 = vst [vmem:[#allocation2 + $0x8] sm:$0xff] %v6042_v39  ;;  %v6049_v6 = vcombine.high %v6042_v39, %v6042_v39  ;;  %v2255_v44 = vsel %vm2245_vm8, %v6042_v39, 0.0  ;;  %vm6065_vm8 = vcmp.eq.s32.totalorder %v2230_v14, 1 }
 0x439   : > { %2259 = vst [vmem:[#allocation3 + $0xd8] sm:$0xf] %v2255_v44 }
 0x43a   : > { %v2256_v15 = vsel %vm2246_vm15, %v6049_v6, 0.0  ;;  %vm3362_vm15 = vcmp.eq.s32.totalorder %v3358_v40, 1 }
 0x43b   : > { %2260 = vst [vmem:[#allocation3 + $0x18] sm:$0xf] %v2256_v15 }
 0x43d   : > { %v3273_v9 = vld [vmem:[#allocation2 + $0x10] sm:$0xf] }
 0x43e   : > { %3308 = vrot.lane.b32.xlu1 %v3273_v9, %s7857_s20  ;;  %v6057_v61 = vld [vmem:[#allocation2] sm:$0xff]  ;;  %v3147_v11 = vld [vmem:[#allocation2 + $0x10] sm:$0xf] }
 0x43f   : > { %3174 = vrot.lane.b32.xlu0 %v6057_v61, %s4582_s24  ;;  %v3340_v38 = vld [vmem:[#allocation2 + $0x4] sm:$0xff]  ;;  %v3341_v10 = vld [vmem:[#allocation2 + $0xc] sm:$0xff]  ;;  %v6157_v43 = vcombine.high %v6057_v61, %v6057_v61 }
 0x440   : > { %v3365_v57 = vcombine.high %v3340_v38, %v3340_v38  ;;  %v3369_v29 = vsel %vm3359_vm10, %v3340_v38, 0.0  ;;  %v2224_v26 = vld [vmem:[#allocation2] sm:$0xff]  ;;  %v3216_v8 = vld [vmem:[#allocation2 + $0x10] sm:$0xf]  ;;  %v3366_v21 = vcombine.high %v3341_v10, %v3341_v10  ;;  %v3371_v62 = vsel %vm6070_vm12, %v3341_v10, 0.0 }
 0x441   : > { %3373 = vst [vmem:[#allocation3 + $0x40] sm:$0xf] %v3369_v29  ;;  %v2249_v25 = vcombine.high %v2224_v26, %v2224_v26  ;;  %v2253_v19 = vsel %vm6065_vm8, %v2224_v26, 0.0  ;;  %3375 = vst [vmem:[#allocation3 + $0xd0] sm:$0xf] %v3371_v62  ;;  %v6105_v0 = vld [vmem:[#allocation2 + $0xc] sm:$0xff] }
 0x442   : > { %3182 = vrot.lane.b32.xlu1 %v3147_v11, %s4582_s24  ;;  %v3370_v37 = vsel %vm3360_vm5, %v3365_v57, 0.0  ;;  %2257 = vst [vmem:[#allocation3 + $0xb0] sm:$0xf] %v2253_v19  ;;  %v3372_v49 = vsel %vm3362_vm15, %v3366_v21, 0.0  ;;  %v3021_v48 = vld [vmem:[#allocation2 + $0x10] sm:$0xf]  ;;  %v6259_v40 = vcombine.high %v6105_v0, %v6105_v0 }
 0x443   : > { %3048 = vrot.lane.b32.xlu0 %v6057_v61, %s4584_s25  ;;  %3374 = vst [vmem:[#allocation3 + $0xa8] sm:$0xf] %v3370_v37  ;;  %v2254_v34 = vsel %vm6076_vm14, %v2249_v25, 0.0  ;;  %3376 = vst [vmem:[#allocation3 + $0x1a0] sm:$0xf] %v3372_v49  ;;  %v6113_v58 = vld [vmem:[#allocation2 + $0x4] sm:$0xff] }
 0x444   : > { %2258 = vst [vmem:[#allocation3 + $0x1b0] sm:$0xf] %v2254_v34  ;;  %v3090_v5 = vld [vmem:[#allocation2 + $0x10] sm:$0xf]  ;;  %vm7878_vm8 = vcmask 392192   ;;  %vm7879_vm14 = vcmask 384000  }
 0x445   : > { %v2895_v41 = vld [vmem:[#allocation2 + $0x10] sm:$0xf] }
 0x446   : > { %3251 = vrot.lane.b32.xlu1 %v3216_v8, %s4586_s27  ;;  %v2964_v63 = vld [vmem:[#allocation2 + $0x10] sm:$0xf]  ;;  %v6301_v8 = vcombine.high %v6113_v58, %v6113_v58 }
 0x447   : > { %2922 = vrot.lane.b32.xlu0 %v6057_v61, %s4585_s26  ;;  %v2769_v46 = vld [vmem:[#allocation2 + $0x10] sm:$0xf] }
 0x448   : > { %v2838_v54 = vld [vmem:[#allocation2 + $0x10] sm:$0xf] }
 0x449   : > { %v2643_v27 = vld [vmem:[#allocation2 + $0x10] sm:$0xf] }
 0x44a   : > { %3056 = vrot.lane.b32.xlu1 %v3021_v48, %s4584_s25  ;;  %v2712_v55 = vld [vmem:[#allocation2 + $0x10] sm:$0xf] }
 0x44b   : > { %2796 = vrot.lane.b32.xlu0 %v6057_v61, %s4589_s7  ;;  %v2517_v42 = vld [vmem:[#allocation2 + $0x10] sm:$0xf] }
 0x44c   : > { %v2586_v35 = vld [vmem:[#allocation2 + $0x10] sm:$0xf] }
 0x44e   : > { %3125 = vrot.lane.b32.xlu1 %v3090_v5, %s4587_s6 }
 0x44f   : > { %2670 = vrot.lane.b32.xlu0 %v6057_v61, %s4573_s28 }
 0x452   : > { %2930 = vrot.lane.b32.xlu1 %v2895_v41, %s4585_s26  ;;  %v3143_v41 = vld [vmem:[#allocation4 + $0x27] ss:$8 sm:$0xf] }
 0x453   : > { %2544 = vrot.lane.b32.xlu0 %v6057_v61, %s4575_s30  ;;  %vm3144_vm7 = vcmp.ne.f32.partialorder %v3143_v41, 0.0 }
 0x456   : > { %2999 = vrot.lane.b32.xlu1 %v2964_v63, %s4588_s4 }
 0x457   : > { %2418 = vrot.lane.b32.xlu0 %v6057_v61, %s4579_s11 }
 0x45a   : > { %2804 = vrot.lane.b32.xlu1 %v2769_v46, %s4589_s7 }
 0x45b   : > { %2292 = vrot.lane.b32.xlu0 %v6057_v61, %s4576_s5 }
 0x45e   : > { %2873 = vrot.lane.b32.xlu1 %v2838_v54, %s4590_s22  ;;  %v3212_v54 = vld [vmem:[#allocation4 + $0x40] ss:$8 sm:$0xf] }
 0x45f   : > { %3790 = vrot.lane.b32.xlu0 %v6105_v0, %s4573_s28  ;;  %vm3213_vm1 = vcmp.ne.f32.partialorder %v3212_v54, 0.0  ;;  %v3086_v54 = vld [vmem:[#allocation4 + $0x26] ss:$8 sm:$0xf] }
 0x460   : > { %v6367_v41 = vsel %vm3213_vm1, 1, %v7634_v12  ;;  %vm3087_vm12 = vcmp.ne.f32.partialorder %v3086_v54, 0.0  ;;  %v2960_v54 = vld [vmem:[#allocation4 + $0x24] ss:$8 sm:$0xf]  ;;  %vm7881_vm1 = vcmask 449536  }
 0x461   : > { %v3221_v1 = vrot.slane %v6367_v41, %v4766_v16 }
 0x462   : > { %2678 = vrot.lane.b32.xlu1 %v2643_v27, %s4573_s28 }
 0x463   : > { %3859 = vrot.lane.b32.xlu0 %v6105_v0, %s4574_s18  ;;  %vm3234_vm5 = vcmp.eq.s32.totalorder %v3221_v1, 1 }
 0x466   : > { %2747 = vrot.lane.b32.xlu1 %v2712_v55, %s4574_s18  ;;  %v6354_v55 = vsel %vm3144_vm7, 1, %v7634_v12 }
 0x467   : > { %3855 = vrot.lane.b32.xlu0 %v6113_v58, %s4574_s18 }
 0x46a   : > { %2552 = vrot.lane.b32.xlu1 %v2517_v42, %s4575_s30 }
 0x46b   : > { %3664 = vrot.lane.b32.xlu0 %v6105_v0, %s4575_s30 }
 0x46e   : > { %2621 = vrot.lane.b32.xlu1 %v2586_v35, %s4577_s8  ;;  %v3152_v35 = vrot.slane %v6354_v55, %v4766_v16 }
 0x46f   : > { %3733 = vrot.lane.b32.xlu0 %v6105_v0, %s4577_s8 }
 0x470   : > { %vm3165_vm10 = vcmp.eq.s32.totalorder %v3152_v35, 1 }
 0x472   : > { %3300 = vrot.lane.b32.xlu1 %v6057_v61, %s7857_s20 }
 0x473   : > { %3729 = vrot.lane.b32.xlu0 %v6113_v58, %s4577_s8 }
 0x476   : > { %3243 = vrot.lane.b32.xlu1 %v6057_v61, %s4586_s27 }
 0x477   : > { %3538 = vrot.lane.b32.xlu0 %v6105_v0, %s4579_s11 }
 0x47a   : > { %3117 = vrot.lane.b32.xlu1 %v6057_v61, %s4587_s6 }
 0x47b   : > { %3607 = vrot.lane.b32.xlu0 %v6105_v0, %s4580_s23 }
 0x47e   : > { %2991 = vrot.lane.b32.xlu1 %v6057_v61, %s4588_s4 }
 0x47f   : > { %3603 = vrot.lane.b32.xlu0 %v6113_v58, %s4580_s23 }
 0x482   : > { %2865 = vrot.lane.b32.xlu1 %v6057_v61, %s4590_s22 }
 0x483   : > { %3412 = vrot.lane.b32.xlu0 %v6105_v0, %s4576_s5 }
 0x486   : > { %2739 = vrot.lane.b32.xlu1 %v6057_v61, %s4574_s18 }
 0x487   : > { %3481 = vrot.lane.b32.xlu0 %v6105_v0, %s4578_s10 }
 0x48a   : > { %2613 = vrot.lane.b32.xlu1 %v6057_v61, %s4577_s8 }
 0x48b   : > { %3477 = vrot.lane.b32.xlu0 %v6113_v58, %s4578_s10 }
 0x48e   : > { %2487 = vrot.lane.b32.xlu1 %v6057_v61, %s4580_s23 }
 0x48f   : > { %3304 = vrot.lane.b32.xlu0 %v6042_v39, %s7857_s20 }
 0x492   : > { %3786 = vrot.lane.b32.xlu1 %v6113_v58, %s4573_s28 }
 0x493   : > { %3176 = vrot.lane.b32.xlu0 %v6157_v43, %s4582_s24 }
 0x496   : > { %3660 = vrot.lane.b32.xlu1 %v6113_v58, %s4575_s30 }
 0x497   : > { %3245 = vrot.lane.b32.xlu0 %v6157_v43, %s4586_s27 }
 0x49a   : > { %3534 = vrot.lane.b32.xlu1 %v6113_v58, %s4579_s11 }
 0x49b   : > { %3050 = vrot.lane.b32.xlu0 %v6157_v43, %s4584_s25 }
 0x49e   : > { %3408 = vrot.lane.b32.xlu1 %v6113_v58, %s4576_s5  ;;  %v3017_v58 = vld [vmem:[#allocation4 + $0x25] ss:$8 sm:$0xf] }
 0x49f   : > { %3119 = vrot.lane.b32.xlu0 %v6157_v43, %s4587_s6  ;;  %vm3018_vm9 = vcmp.ne.f32.partialorder %v3017_v58, 0.0 }
 0x4a0   : > { %v6378_v17 = vsel %vm3018_vm9, 1, %v7634_v12  ;;  %vm2961_vm9 = vcmp.ne.f32.partialorder %v2960_v54, 0.0 }
 0x4a2   : > { %3178 = vrot.lane.b32.xlu1 %v6042_v39, %s4582_s24 }
 0x4a3   : > { %2924 = vrot.lane.b32.xlu0 %v6157_v43, %s4585_s26 }
 0x4a6   : > { %3247 = vrot.lane.b32.xlu1 %v6042_v39, %s4586_s27 }
 0x4a7   : > { %2993 = vrot.lane.b32.xlu0 %v6157_v43, %s4588_s4 }
 0x4aa   : > { %3052 = vrot.lane.b32.xlu1 %v6042_v39, %s4584_s25 }
 0x4ab   : > { %2798 = vrot.lane.b32.xlu0 %v6157_v43, %s4589_s7 }
 0x4ae   : > { %3121 = vrot.lane.b32.xlu1 %v6042_v39, %s4587_s6 }
 0x4af   : > { %2867 = vrot.lane.b32.xlu0 %v6157_v43, %s4590_s22 }
 0x4b0   : > { %v6191_v60 = vpop.permute.xlu1 %3308 }
 0x4b1   : > { %v6193_v52 = vpop.permute.xlu0 %3174 }
 0x4b2   : > { %2926 = vrot.lane.b32.xlu1 %v6042_v39, %s4585_s26 }
 0x4b3   : > { %2672 = vrot.lane.b32.xlu0 %v6157_v43, %s4573_s28 }
 0x4b4   : > { %v6199_v3 = vpop.permute.xlu1 %3182 }
 0x4b5   : > { %v6201_v36 = vpop.permute.xlu0 %3048 }
 0x4b6   : > { %2995 = vrot.lane.b32.xlu1 %v6042_v39, %s4588_s4 }
 0x4b7   : > { %2741 = vrot.lane.b32.xlu0 %v6157_v43, %s4574_s18 }
 0x4b8   : > { %v6207_v7 = vpop.permute.xlu1 %3251 }
 0x4b9   : > { %v6209_v4 = vpop.permute.xlu0 %2922 }
 0x4ba   : > { %2800 = vrot.lane.b32.xlu1 %v6042_v39, %s4589_s7 }
 0x4bb   : > { %2546 = vrot.lane.b32.xlu0 %v6157_v43, %s4575_s30 }
 0x4bc   : > { %v6215_v24 = vpop.permute.xlu1 %3056 }
 0x4bd   : > { %v6217_v2 = vpop.permute.xlu0 %2796 }
 0x4be   : > { %2869 = vrot.lane.b32.xlu1 %v6042_v39, %s4590_s22 }
 0x4bf   : > { %2615 = vrot.lane.b32.xlu0 %v6157_v43, %s4577_s8 }
 0x4c0   : > { %v6223_v44 = vpop.permute.xlu1 %3125 }
 0x4c1   : > { %v6225_v15 = vpop.permute.xlu0 %2670 }
 0x4c2   : > { %2674 = vrot.lane.b32.xlu1 %v6042_v39, %s4573_s28 }
 0x4c3   : > { %2420 = vrot.lane.b32.xlu0 %v6157_v43, %s4579_s11 }
 0x4c4   : > { %v6231_v32 = vpop.permute.xlu1 %2930 }
 0x4c5   : > { %v6233_v9 = vpop.permute.xlu0 %2544 }
 0x4c6   : > { %2743 = vrot.lane.b32.xlu1 %v6042_v39, %s4574_s18 }
 0x4c7   : > { %2489 = vrot.lane.b32.xlu0 %v6157_v43, %s4580_s23 }
 0x4c8   : > { %v6239_v51 = vpop.permute.xlu1 %2999 }
 0x4c9   : > { %7864 = vst [vmem:[#allocation27_spill] sm:$0xff] %v6239_v51  ;;  %v6241_v14 = vpop.permute.xlu0 %2418  ;;  %v2460_v51 = vld [vmem:[#allocation2 + $0x10] sm:$0xf] }
 0x4ca   : > { %2548 = vrot.lane.b32.xlu1 %v6042_v39, %s4575_s30 }
 0x4cb   : > { %2294 = vrot.lane.b32.xlu0 %v6157_v43, %s4576_s5 }
 0x4cc   : > { %v6247_v31 = vpop.permute.xlu1 %2804 }
 0x4cd   : > { %7865 = vst [vmem:[#allocation32_spill] sm:$0xff] %v6247_v31  ;;  %v6249_v47 = vpop.permute.xlu0 %2292  ;;  %v2639_v31 = vld [vmem:[#allocation4 + $0x7] ss:$8 sm:$0xf] }
 0x4ce   : > { %2617 = vrot.lane.b32.xlu1 %v6042_v39, %s4577_s8 }
 0x4cf   : > { %2363 = vrot.lane.b32.xlu0 %v6157_v43, %s4578_s10 }
 0x4d0   : > { %v6255_v33 = vpop.permute.xlu1 %2873 }
 0x4d1   : > { %7866 = vst [vmem:[#allocation35_spill] sm:$0xff] %v6255_v33  ;;  %v6261_v11 = vpop.permute.xlu0 %3790 }
 0x4d2   : > { %2422 = vrot.lane.b32.xlu1 %v6042_v39, %s4579_s11 }
 0x4d3   : > { %3414 = vrot.lane.b32.xlu0 %v6259_v40, %s4576_s5 }
 0x4d4   : > { %v6267_v13 = vpop.permute.xlu1 %2678 }
 0x4d5   : > { %7867 = vst [vmem:[#allocation24_spill] sm:$0xff] %v6267_v13  ;;  %v6269_v56 = vpop.permute.xlu0 %3859  ;;  %v6391_v13 = vsel %vm3087_vm12, 1, %v7634_v12 }
 0x4d6   : > { %2491 = vrot.lane.b32.xlu1 %v6042_v39, %s4580_s23 }
 0x4d7   : > { %3483 = vrot.lane.b32.xlu0 %v6259_v40, %s4578_s10 }
 0x4d8   : > { %v6275_v38 = vpop.permute.xlu1 %2747 }
 0x4d9   : > { %7868 = vst [vmem:[#allocation39_spill] sm:$0xff] %v6275_v38  ;;  %v6277_v50 = vpop.permute.xlu0 %3855  ;;  %v3026_v38 = vrot.slane %v6378_v17, %v4766_v16 }
 0x4da   : > { %2296 = vrot.lane.b32.xlu1 %v6042_v39, %s4576_s5 }
 0x4db   : > { %3306 = vrot.lane.b32.xlu0 %v6049_v6, %s7857_s20  ;;  %vm3039_vm7 = vcmp.eq.s32.totalorder %v3026_v38, 1  ;;  %v3156_v38 = vrot.slane %v6354_v55, %v4773_v23 }
 0x4dc   : > { %v6283_v57 = vpop.permute.xlu1 %2552 }
 0x4dd   : > { %7869 = vst [vmem:[#allocation33_spill] sm:$0xff] %v6283_v57  ;;  %v6285_v29 = vpop.permute.xlu0 %3664 }
 0x4de   : > { %2365 = vrot.lane.b32.xlu1 %v6042_v39, %s4578_s10 }
 0x4df   : > { %3180 = vrot.lane.b32.xlu0 %v6049_v6, %s4582_s24 }
 0x4e0   : > { %v6291_v10 = vpop.permute.xlu1 %2621 }
 0x4e1   : > { %7870 = vst [vmem:[#allocation28_spill] sm:$0xff] %v6291_v10  ;;  %v6293_v26 = vpop.permute.xlu0 %3733 }
 0x4e2   : > { %7871 = vst [vmem:[#allocation25_spill] sm:$0xff] %v6293_v26  ;;  %3302 = vrot.lane.b32.xlu1 %v6157_v43, %s7857_s20 }
 0x4e3   : > { %3249 = vrot.lane.b32.xlu0 %v6049_v6, %s4586_s27 }
 0x4e4   : > { %v6303_v21 = vpop.permute.xlu1 %3300 }
 0x4e5   : > { %v6305_v39 = vpop.permute.xlu0 %3729 }
 0x4e6   : > { %7872 = vst [vmem:[#allocation18_spill] sm:$0xff] %v6305_v39  ;;  %3788 = vrot.lane.b32.xlu1 %v6301_v8, %s4573_s28 }
 0x4e7   : > { %3054 = vrot.lane.b32.xlu0 %v6049_v6, %s4584_s25 }
 0x4e8   : > { %v3244_v25 = vpop.permute.xlu1 %3243 }
 0x4e9   : > { %v6311_v62 = vpop.permute.xlu0 %3538 }
 0x4ea   : > { %7873 = vst [vmem:[#allocation29_spill] sm:$0xff] %v6311_v62  ;;  %3857 = vrot.lane.b32.xlu1 %v6301_v8, %s4574_s18 }
 0x4eb   : > { %3123 = vrot.lane.b32.xlu0 %v6049_v6, %s4587_s6 }
 0x4ec   : > { %v6317_v19 = vpop.permute.xlu1 %3117 }
 0x4ed   : > { %v6319_v37 = vpop.permute.xlu0 %3607 }
 0x4ee   : > { %7874 = vst [vmem:[#allocation26_spill] sm:$0xff] %v6319_v37  ;;  %3662 = vrot.lane.b32.xlu1 %v6301_v8, %s4575_s30  ;;  %v6423_v37 = vsel %vm2961_vm9, 1, %v7634_v12 }
 0x4ef   : > { %2928 = vrot.lane.b32.xlu0 %v6049_v6, %s4585_s26 }
 0x4f0   : > { %v6325_v49 = vpop.permute.xlu1 %2991 }
 0x4f1   : > { %v6327_v34 = vpop.permute.xlu0 %3603 }
 0x4f2   : > { %7875 = vst [vmem:[#allocation34_spill] sm:$0xff] %v6327_v34  ;;  %3731 = vrot.lane.b32.xlu1 %v6301_v8, %s4577_s8 }
 0x4f3   : > { %2997 = vrot.lane.b32.xlu0 %v6049_v6, %s4588_s4 }
 0x4f4   : > { %v6333_v48 = vpop.permute.xlu1 %2865 }
 0x4f5   : > { %v6335_v5 = vpop.permute.xlu0 %3412 }
 0x4f6   : > { %7876 = vst [vmem:[#allocation19_spill] sm:$0xff] %v6335_v5  ;;  %3536 = vrot.lane.b32.xlu1 %v6301_v8, %s4579_s11 }
 0x4f7   : > { %2802 = vrot.lane.b32.xlu0 %v6049_v6, %s4589_s7 }
 0x4f8   : > { %v6341_v63 = vpop.permute.xlu1 %2739 }
 0x4f9   : > { %v6343_v46 = vpop.permute.xlu0 %3481 }
 0x4fa   : > { %3605 = vrot.lane.b32.xlu1 %v6301_v8, %s4580_s23 }
 0x4fb   : > { %2871 = vrot.lane.b32.xlu0 %v6049_v6, %s4590_s22  ;;  %s4593_s22 = smov [#allocation10]  }
 0x4fc   : > { %v6349_v0 = vpop.permute.xlu1 %2613  ;;  %s4495_s25 = sshll.u32 %s4593_s22, 4  ;;  %s4496_s25 = int_to_ptr.vmem [resolvable:$false] %s4495_s25 }
 0x4fd   : > { %v6351_v27 = vpop.permute.xlu0 %3477 }
 0x4fe   : > { %7877 = vst [vmem:[#allocation36_spill] sm:$0xff] %v6351_v27  ;;  %3792 = vrot.lane.b32.xlu1 %v6259_v40, %s4573_s28  ;;  %v2891_v27 = vld [vmem:[#allocation4 + $0x23] ss:$8 sm:$0xf] }
 0x4ff   : > { %2676 = vrot.lane.b32.xlu0 %v6049_v6, %s4573_s28  ;;  %vm2892_vm15 = vcmp.ne.f32.partialorder %v2891_v27, 0.0  ;;  %s4280_s28 = sshll.u32 %s4738_s29, 3 }
 0x500   : > { %v6360_v42 = vpop.permute.xlu1 %2487 }
 0x501   : > { %v6364_v43 = vpop.permute.xlu0 %3304 }
 0x502   : > { %3861 = vrot.lane.b32.xlu1 %v6259_v40, %s4574_s18 }
 0x503   : > { %2745 = vrot.lane.b32.xlu0 %v6049_v6, %s4574_s18  ;;  %s4301_s18 = sshll.u32 %s4635_s16, 7  ;;  %s4497_s16 = scalar_lea.vmem %s4496_s25, 256 }
 0x504   : > { %v6373_v18 = vpop.permute.xlu1 %3786 }
 0x505   : > { %v3177_v45 = vpop.permute.xlu0 %3176 }
 0x506   : > { %v3184_v10 = vsel %vm7878_vm8, %v6193_v52, %v3177_v45  ;;  %3410 = vrot.lane.b32.xlu1 %v6301_v8, %s4576_s5  ;;  %vm7883_vm8 = vcmask 441344  }
 0x507   : > { %v3192_v58 = vsel %vm3165_vm10, %v3184_v10, 0.0  ;;  %2550 = vrot.lane.b32.xlu0 %v6049_v6, %s4575_s30 }
 0x508   : > { %v3200_v35 = vrot.slane %v3192_v58, 4  ;;  %v6386_v57 = vpop.permute.xlu1 %3660  ;;  %v3095_v58 = vrot.slane %v6391_v13, %v4766_v16 }
 0x509   : > { %v3246_v20 = vpop.permute.xlu0 %3245 }
 0x50a   : > { %3208 = vst [vmem:[#allocation3 + $0x90] sm:$0xf0] %v3200_v35  ;;  %v3253_v52 = vsel %vm7879_vm14, %v3244_v25, %v3246_v20  ;;  %3479 = vrot.lane.b32.xlu1 %v6301_v8, %s4578_s10  ;;  %v6405_v25 = vsel %vm2892_vm15, 1, %v7634_v12  ;;  %v2765_v35 = vld [vmem:[#allocation4 + $0x21] ss:$8 sm:$0xf] }
 0x50b   : > { %v3261_v10 = vsel %vm3234_vm5, %v3253_v52, 0.0  ;;  %2619 = vrot.lane.b32.xlu0 %v6049_v6, %s4577_s8  ;;  %vm3108_vm10 = vcmp.eq.s32.totalorder %v3095_v58, 1  ;;  %v2900_v33 = vrot.slane %v6405_v25, %v4766_v16  ;;  %vm2766_vm12 = vcmp.ne.f32.partialorder %v2765_v35, 0.0 }
 0x50c   : > { %3265 = vst [vmem:[#allocation3] sm:$0xf] %v3261_v10  ;;  %v6398_v1 = vpop.permute.xlu1 %3534  ;;  %vm3166_vm5 = vcmp.eq.s32.totalorder %v3156_v38, 1  ;;  %v3225_v58 = vrot.slane %v6367_v41, %v4773_v23  ;;  %vm7884_vm15 = vcmask 392192  }
 0x50d   : > { %7880 = vst [vmem:[#allocation20_spill] sm:$0xff] %v6398_v1  ;;  %v6402_v53 = vpop.permute.xlu0 %3050  ;;  %vm2913_vm14 = vcmp.eq.s32.totalorder %v2900_v33, 1 }
 0x50e   : > { %v3058_v8 = vsel %vm7881_vm1, %v6201_v36, %v6402_v53  ;;  %3666 = vrot.lane.b32.xlu1 %v6259_v40, %s4575_s30  ;;  %vm6452_vm9 = vcmp.eq.s32.totalorder %v3225_v58, 1  ;;  %s215_s30 = scalar_lea.vmem [#allocation10], %s4280_s28 }
 0x50f   : > { %v3066_v27 = vsel %vm3039_vm7, %v3058_v8, 0.0  ;;  %2424 = vrot.lane.b32.xlu0 %v6049_v6, %s4579_s11  ;;  %vm7885_vm7 = vcmask 506880  }
 0x510   : > { %v3074_v52 = vrot.slane %v3066_v27, 4  ;;  %v6416_v10 = vpop.permute.xlu1 %3408  ;;  %v2834_v27 = vld [vmem:[#allocation4 + $0x22] ss:$8 sm:$0xf] }
 0x511   : > { %7882 = vst [vmem:[#allocation22_spill] sm:$0xff] %v6416_v10  ;;  %v6420_v36 = vpop.permute.xlu0 %3119  ;;  %vm2835_vm1 = vcmp.ne.f32.partialorder %v2834_v27, 0.0 }
 0x512   : > { %3082 = vst [vmem:[#allocation3 + $0xe8] sm:$0xf0] %v3074_v52  ;;  %v3127_v54 = vsel %vm7883_vm8, %v6317_v19, %v6420_v36  ;;  %3735 = vrot.lane.b32.xlu1 %v6259_v40, %s4577_s8  ;;  %v2969_v19 = vrot.slane %v6423_v37, %v4766_v16  ;;  %vm7890_vm8 = vcmask 384000  }
 0x513   : > { %v3135_v8 = vsel %vm3108_vm10, %v3127_v54, 0.0  ;;  %2493 = vrot.lane.b32.xlu0 %v6049_v6, %s4580_s23  ;;  %v6443_v54 = vsel %vm2766_vm12, 1, %v7634_v12  ;;  %vm7891_vm12 = vcmask 457728  }
 0x514   : > { %3139 = vst [vmem:[#allocation3 + $0x90] sm:$0xf] %v3135_v8  ;;  %v6434_v10 = vpop.permute.xlu1 %3178  ;;  %vm6460_vm10 = vcmp.eq.s32.totalorder %v2969_v19, 1 }
 0x515   : > { %v3185_v52 = vsel %vm7884_vm15, %v3177_v45, %v6434_v10  ;;  %v6440_v35 = vpop.permute.xlu0 %2924 }
 0x516   : > { %v3193_v38 = vsel %vm3166_vm5, %v3185_v52, 0.0  ;;  %v2932_v34 = vsel %vm7885_vm7, %v6209_v4, %v6440_v35  ;;  %3540 = vrot.lane.b32.xlu1 %v6259_v40, %s4579_s11  ;;  %v3030_v52 = vrot.slane %v6378_v17, %v4773_v23  ;;  %vm2640_vm5 = vcmp.ne.f32.partialorder %v2639_v31, 0.0 }
 0x517   : > { %v3201_v33 = vrot.slane %v3193_v38, 4  ;;  %v2940_v8 = vsel %vm2913_vm14, %v2932_v34, 0.0  ;;  %2298 = vrot.lane.b32.xlu0 %v6049_v6, %s4576_s5  ;;  %v2774_v34 = vrot.slane %v6443_v54, %v4766_v16  ;;  %v6471_v38 = vsel %vm2835_vm1, 1, %v7634_v12 }
 0x518   : > { %v2948_v62 = vrot.slane %v2940_v8, 4  ;;  %v6458_v1 = vpop.permute.xlu1 %3247  ;;  %vm3040_vm14 = vcmp.eq.s32.totalorder %v3030_v52, 1  ;;  %vm7892_vm7 = vcmask 449536  }
 0x519   : > { %3209 = vst [vmem:[#allocation3 + $0xc0] sm:$0xf0] %v3201_v33  ;;  %v3254_v58 = vsel %vm7890_vm8, %v3246_v20, %v6458_v1  ;;  %v6468_v27 = vpop.permute.xlu0 %2993  ;;  %v2708_v33 = vld [vmem:[#allocation4 + $0x20] ss:$8 sm:$0xf]  ;;  %vm2787_vm15 = vcmp.eq.s32.totalorder %v2774_v34, 1 }
 0x51a   : > { %2956 = vst [vmem:[#allocation3 + $0x80] sm:$0xf0] %v2948_v62  ;;  %v3262_v8 = vsel %vm6452_vm9, %v3254_v58, 0.0  ;;  %v3001_v19 = vsel %vm7891_vm12, %v6325_v49, %v6468_v27  ;;  %3609 = vrot.lane.b32.xlu1 %v6259_v40, %s4580_s23  ;;  %v3099_v62 = vrot.slane %v6391_v13, %v4773_v23  ;;  %v2843_v40 = vrot.slane %v6471_v38, %v4766_v16 }
 0x51b   : > { %3266 = vst [vmem:[#allocation3 + $0x68] sm:$0xf] %v3262_v8  ;;  %v3009_v20 = vsel %vm6460_vm10, %v3001_v19, 0.0  ;;  %2367 = vrot.lane.b32.xlu0 %v6049_v6, %s4578_s10  ;;  %v6496_v6 = vsel %vm2640_vm5, 1, %v7634_v12  ;;  %vm2709_vm1 = vcmp.ne.f32.partialorder %v2708_v33, 0.0  ;;  %vm7897_vm8 = vcmask 441344  }
 0x51c   : > { %3013 = vst [vmem:[#allocation3 + $0xe8] sm:$0xf] %v3009_v20  ;;  %v6486_v45 = vpop.permute.xlu1 %3052  ;;  %vm6503_vm9 = vcmp.eq.s32.totalorder %v3099_v62, 1  ;;  %v2513_v19 = vld [vmem:[#allocation4 + $0x5] ss:$8 sm:$0xf] }
 0x51d   : > { %v3059_v31 = vsel %vm7892_vm7, %v6402_v53, %v6486_v45  ;;  %v6493_v49 = vpop.permute.xlu0 %2798  ;;  %v2904_v53 = vrot.slane %v6405_v25, %v4773_v23  ;;  %vm6511_vm10 = vcmp.eq.s32.totalorder %v2843_v40, 1  ;;  %v2391_v33 = vld [vmem:[#allocation2 + $0x10] sm:$0xf]  ;;  %vm2514_vm12 = vcmp.ne.f32.partialorder %v2513_v19, 0.0 }
 0x51e   : > { %v3067_v52 = vsel %vm3040_vm14, %v3059_v31, 0.0  ;;  %v2806_v4 = vsel %vm7584_vm11, %v6217_v2, %v6493_v49  ;;  %2361 = vrot.lane.b32.xlu1 %v6057_v61, %s4578_s10  ;;  %v2648_v61 = vrot.slane %v6496_v6, %v4766_v16 }
 0x51f   : > { %v3075_v34 = vrot.slane %v3067_v52, 4  ;;  %v2814_v58 = vsel %vm2787_vm15, %v2806_v4, 0.0  ;;  %v6523_v52 = vsel %vm2709_vm1, 1, %v7634_v12  ;;  %vm2914_vm5 = vcmp.eq.s32.totalorder %v2904_v53, 1 }
 0x520   : > { %v2822_v20 = vrot.slane %v2814_v58, 4  ;;  %v6509_v31 = vpop.permute.xlu1 %3121  ;;  %7898 = vst [vmem:[#allocation38_spill] sm:$0xff] %v6523_v52  ;;  %v2582_v58 = vld [vmem:[#allocation4 + $0x6] ss:$8 sm:$0xf]  ;;  %vm2661_vm14 = vcmp.eq.s32.totalorder %v2648_v61, 1  ;;  %v2717_v8 = vrot.slane %v6523_v52, %v4766_v16 }
 0x521   : > { %3083 = vst [vmem:[#allocation3 + $0xf8] sm:$0xf0] %v3075_v34  ;;  %v3128_v2 = vsel %vm7897_vm8, %v6420_v36, %v6509_v31  ;;  %v6520_v62 = vpop.permute.xlu0 %2867  ;;  %v2973_v34 = vrot.slane %v6423_v37, %v4773_v23  ;;  %vm7899_vm15 = vcmask 506880   ;;  %v6545_v53 = vsel %vm2514_vm12, 1, %v7634_v12 }
 0x522   : > { %2830 = vst [vmem:[#allocation3 + $0xe0] sm:$0xf0] %v2822_v20  ;;  %v3136_v40 = vsel %vm6503_vm9, %v3128_v2, 0.0  ;;  %v2875_v4 = vsel %vm7572_vm2, %v6333_v48, %v6520_v62  ;;  %2426 = vrot.lane.b32.xlu1 %v2391_v33, %s4579_s11  ;;  %7900 = vst [vmem:[#allocation40_spill] sm:$0xff] %v6545_v53  ;;  %vm2583_vm7 = vcmp.ne.f32.partialorder %v2582_v58, 0.0  ;;  %vm6559_vm9 = vcmp.eq.s32.totalorder %v2717_v8, 1  ;;  %s4175_s11 = scalar_lea.hbm %s7515_s3, %s4301_s18 }
 0x523   : > { %3140 = vst [vmem:[#allocation3 + $0xc0] sm:$0xf] %v3136_v40  ;;  %v2883_v36 = vsel %vm6511_vm10, %v2875_v4, 0.0  ;;  %vm6551_vm1 = vcmp.eq.s32.totalorder %v2973_v34, 1  ;;  %vm7906_vm10 = vcmask 457728   ;;  %vm7908_vm8 = vcmask 900096  }
 0x524   : > { %2887 = vst [vmem:[#allocation3 + $0x80] sm:$0xf] %v2883_v36  ;;  %v6535_v20 = vpop.permute.xlu1 %2926  ;;  %v2387_v36 = vld [vmem:[#allocation4 + $0x3] ss:$8 sm:$0xf] }
 0x525   : > { %v2933_v48 = vsel %vm7899_vm15, %v6440_v35, %v6535_v20  ;;  %v6542_v19 = vpop.permute.xlu0 %2672  ;;  %v2778_v35 = vrot.slane %v6443_v54, %v4773_v23  ;;  %vm2388_vm12 = vcmp.ne.f32.partialorder %v2387_v36, 0.0  ;;  %vm7911_vm15 = vcmask 965632  }
 0x526   : > { %v2941_v2 = vsel %vm2914_vm5, %v2933_v48, 0.0  ;;  %v2680_v33 = vsel %vm7588_vm4, %v6225_v15, %v6542_v19  ;;  %2495 = vrot.lane.b32.xlu1 %v2460_v51, %s4580_s23  ;;  %v2522_v15 = vrot.slane %v6545_v53, %v4766_v16  ;;  %v2265_v51 = vld [vmem:[#allocation2 + $0x10] sm:$0xf]  ;;  %s4163_s23 = scalar_lea.sflag [#allocation6], %s4738_s29 }
 0x527   : > { %v2949_v61 = vrot.slane %v2941_v2, 4  ;;  %v2688_v40 = vsel %vm2661_vm14, %v2680_v33, 0.0  ;;  %v6571_v2 = vsel %vm2583_vm7, 1, %v7634_v12  ;;  %vm2788_vm5 = vcmp.eq.s32.totalorder %v2778_v35, 1  ;;  %v2334_v48 = vld [vmem:[#allocation2 + $0x10] sm:$0xf] }
 0x528   : > { %v2696_v26 = vrot.slane %v2688_v40, 4  ;;  %v6557_v39 = vpop.permute.xlu1 %2995  ;;  %7907 = vst [vmem:[#allocation41_spill] sm:$0xff] %v6571_v2  ;;  %v2456_v40 = vld [vmem:[#allocation4 + $0x4] ss:$8 sm:$0xf]  ;;  %vm2535_vm14 = vcmp.eq.s32.totalorder %v2522_v15, 1  ;;  %v2591_v4 = vrot.slane %v6571_v2, %v4766_v16 }
 0x529   : > { %7903 = vst [vmem:[#allocation16_spill] sm:$0xff] %v6557_v39  ;;  %2957 = vst [vmem:[#allocation3 + $0x1a8] sm:$0xf0] %v2949_v61  ;;  %v3002_v34 = vsel %vm7906_vm10, %v6468_v27, %v6557_v39  ;;  %v6568_v58 = vpop.permute.xlu0 %2741  ;;  %v2847_v61 = vrot.slane %v6471_v38, %v4773_v23  ;;  %v6593_v35 = vsel %vm2388_vm12, 1, %v7634_v12  ;;  %vm2457_vm7 = vcmp.ne.f32.partialorder %v2456_v40, 0.0 }
 0x52a   : > { %2704 = vst [vmem:[#allocation3 + $0x120] sm:$0xf0] %v2696_v26  ;;  %v3010_v8 = vsel %vm6551_vm1, %v3002_v34, 0.0  ;;  %v2749_v33 = vsel %vm7908_vm8, %v6341_v63, %v6568_v58  ;;  %2300 = vrot.lane.b32.xlu1 %v2265_v51, %s4576_s5  ;;  %7910 = vst [vmem:[#allocation43_spill] sm:$0xff] %v6593_v35  ;;  %s4177_s5 = sshll.u32 %s215_s30, 4  ;;  %s4178_s5 = int_to_ptr.vmem [resolvable:$true] %s4177_s5 }
 0x52b   : > { %3014 = vst [vmem:[#allocation3 + $0xf8] sm:$0xf] %v3010_v8  ;;  %v2757_v27 = vsel %vm6559_vm9, %v2749_v33, 0.0  ;;  %vm6599_vm1 = vcmp.eq.s32.totalorder %v2847_v61, 1  ;;  %vm2604_vm9 = vcmp.eq.s32.totalorder %v2591_v4, 1  ;;  %s4491_s24 = scalar_lea.vmem %s4178_s5, 128  ;;  %p4498_p3 = scmp.lt.s32.totalorder %s4178_s5, %s4496_s25 }
 0x52c   : > { %2761 = vst [vmem:[#allocation3 + $0xe0] sm:$0xf] %v2757_v27  ;;  %v6583_v26 = vpop.permute.xlu1 %2800  ;;  %v2261_v27 = vld [vmem:[#allocation4 + $0x1] ss:$8 sm:$0xf]  ;;  %p4492_p11 = scmp.ne.s32.totalorder %s4178_s5, %s4491_s24  ;;  %p4499_p9 = scmp.lt.s32.totalorder %s4497_s16, %s4491_s24 }
 0x52d   : > { %7909 = vst [vmem:[#allocation42_spill] sm:$0xff] %v6583_v26  ;;  %v2807_v63 = vsel %vm7584_vm11, %v6493_v49, %v6583_v26  ;;  %v6590_v36 = vpop.permute.xlu0 %2546  ;;  %v2652_v49 = vrot.slane %v6496_v6, %v4773_v23  ;;  %vm2262_vm10 = vcmp.ne.f32.partialorder %v2261_v27, 0.0 }
 0x52e   : > { %v2815_v34 = vsel %vm2788_vm5, %v2807_v63, 0.0  ;;  %v2554_v51 = vsel %vm7911_vm15, %v6233_v9, %v6590_v36  ;;  %2369 = vrot.lane.b32.xlu1 %v2334_v48, %s4578_s10  ;;  %v2396_v9 = vrot.slane %v6593_v35, %v4766_v16  ;;  %v6615_v63 = vsel %vm2457_vm7, 1, %v7634_v12  ;;  %p4493_p6 = pnand %p4492_p11, %p8198_p2  ;;  %p4500_p13 = por %p4499_p9, %p4498_p3 }
 0x52f   : > { %v2823_v15 = vrot.slane %v2815_v34, 4  ;;  %v2562_v8 = vsel %vm2535_vm14, %v2554_v51, 0.0  ;;  %7915 = vst [vmem:[#allocation45_spill] sm:$0xff] %v6615_v63  ;;  %v2721_v34 = vrot.slane %v6523_v52, %v4773_v23  ;;  %vm2662_vm8 = vcmp.eq.s32.totalorder %v2652_v49, 1 }
 0x530   : > { %v2570_v26 = vrot.slane %v2562_v8, 4  ;;  %v6605_v39 = vpop.permute.xlu1 %2869  ;;  %vm2409_vm12 = vcmp.eq.s32.totalorder %v2396_v9, 1  ;;  %v6634_v33 = vsel %vm2262_vm10, 1, %v7634_v12  ;;  %vm7918_vm5 = vcmask 982016   ;;  %p4494_p12 = pneg %p4493_p6 }
 0x531   : > { %7914 = vst [vmem:[#allocation44_spill] sm:$0xff] %v6605_v39  ;;  %2831 = vst [vmem:[#allocation3 + $0x188] sm:$0xf0] %v2823_v15  ;;  %v2876_v40 = vsel %vm7572_vm2, %v6520_v62, %v6605_v39  ;;  %v6612_v61 = vpop.permute.xlu0 %2615  ;;  %v3377_v15 = vld [vmem:[#allocation4 + $0x43] ss:$8 sm:$0xf] }
 0x532   : > { %2578 = vst [vmem:[#allocation3 + $0x180] sm:$0xf0] %v2570_v26  ;;  %v2884_v48 = vsel %vm6599_vm1, %v2876_v40, 0.0  ;;  %v2623_v4 = vsel %vm7585_vm6, %v6349_v0, %v6612_v61  ;;  %v2465_v26 = vrot.slane %v6615_v63, %v4766_v16  ;;  %7917 = vst [vmem:[#allocation47_spill] sm:$0xff] %v6634_v33  ;;  %vm6639_vm14 = vcmp.eq.s32.totalorder %v2721_v34, 1  ;;  %p4501_p5 = pnand %p4500_p13, %p4494_p12 }
 0x533   : > { %2888 = vst [vmem:[#allocation3 + $0x1a8] sm:$0xf] %v2884_v48  ;;  %v2631_v51 = vsel %vm2604_vm9, %v2623_v4, 0.0  ;;  %v3446_v40 = vld [vmem:[#allocation4 + $0x44] ss:$8 sm:$0xf] }
 0x534   : > { %2635 = vst [vmem:[#allocation3 + $0x120] sm:$0xf] %v2631_v51  ;;  %v6624_v62 = vpop.permute.xlu1 %2674  ;;  %vm3378_vm15 = vcmp.ne.f32.partialorder %v3377_v15, 0.0  ;;  %v3269_v51 = vld [vmem:[#allocation4 + $0x41] ss:$8 sm:$0xf] }
 0x535   : > { %7916 = vst [vmem:[#allocation46_spill] sm:$0xff] %v6624_v62  ;;  %v2681_v8 = vsel %vm7588_vm4, %v6542_v19, %v6624_v62  ;;  %v6631_v0 = vpop.permute.xlu0 %2420  ;;  %v2526_v19 = vrot.slane %v6545_v53, %v4773_v23  ;;  %vm2478_vm7 = vcmp.eq.s32.totalorder %v2465_v26, 1  ;;  %vm7922_vm1 = vcmask 900096   ;;  %v3755_v53 = vld [vmem:[#allocation4 + $0x61] ss:$8 sm:$0xf] }
 0x536   : > { %v2689_v27 = vsel %vm2662_vm8, %v2681_v8, 0.0  ;;  %v2428_v49 = vsel %vm7918_vm5, %v6241_v14, %v6631_v0  ;;  %v2270_v8 = vrot.slane %v6634_v33, %v4766_v16  ;;  %v2595_v14 = vrot.slane %v6571_v2, %v4773_v23 }
 0x537   : > { %v2697_v48 = vrot.slane %v2689_v27, 4  ;;  %v2436_v4 = vsel %vm2409_vm12, %v2428_v49, 0.0  ;;  %vm3447_vm9 = vcmp.ne.f32.partialorder %v3446_v40, 0.0  ;;  %vm7923_vm10 = vcmask 973824  }
 0x538   : > { %v2444_v62 = vrot.slane %v2436_v4, 4  ;;  %v6645_v39 = vpop.permute.xlu1 %2743  ;;  %v6662_v49 = vsel %vm3378_vm15, 1, %v7634_v12  ;;  %vm3270_vm8 = vcmp.ne.f32.partialorder %v3269_v51, 0.0  ;;  %vm6664_vm12 = vcmp.eq.s32.totalorder %v2526_v19, 1 }
 0x539   : > { %7921 = vst [vmem:[#allocation48_spill] sm:$0xff] %v6645_v39  ;;  %2705 = vst [vmem:[#allocation3 + $0x150] sm:$0xf0] %v2697_v48  ;;  %v2750_v34 = vsel %vm7922_vm1, %v6568_v58, %v6645_v39  ;;  %v6654_v27 = vpop.permute.xlu0 %2489  ;;  %vm6670_vm5 = vcmp.eq.s32.totalorder %v2270_v8, 1  ;;  %v6681_v40 = vsel %vm3447_vm9, 1, %v7634_v12  ;;  %vm7933_vm15 = vcmask 965632  }
 0x53a   : > { %2452 = vst [vmem:[#allocation3 + $0x50] sm:$0xf0] %v2444_v62  ;;  %v2758_v15 = vsel %vm6639_vm14, %v2750_v34, 0.0  ;;  %v2497_v26 = vsel %vm7923_vm10, %v6360_v42, %v6654_v27  ;;  %7924 = vst [vmem:[#allocation49_spill] sm:$0xff] %v6662_v49  ;;  %vm6674_vm14 = vcmp.eq.s32.totalorder %v2595_v14, 1  ;;  %v2400_v42 = vrot.slane %v6593_v35, %v4773_v23 }
 0x53b   : > { %2762 = vst [vmem:[#allocation3 + $0x188] sm:$0xf] %v2758_v15  ;;  %v2505_v48 = vsel %vm2478_vm7, %v2497_v26, 0.0  ;;  %7932 = vst [vmem:[#allocation51_spill] sm:$0xff] %v6681_v40  ;;  %v3394_v8 = vrot.slane %v6662_v49, %v4788_v30  ;;  %v3398_v14 = vrot.slane %v6662_v49, %v4784_v28  ;;  %v6693_v15 = vsel %vm3270_vm8, 1, %v7634_v12 }
 0x53c   : > { %2509 = vst [vmem:[#allocation3 + $0x180] sm:$0xf] %v2505_v48  ;;  %v6668_v58 = vpop.permute.xlu1 %2548  ;;  %v2330_v19 = vld [vmem:[#allocation4 + $0x2] ss:$8 sm:$0xf]  ;;  %v2274_v35 = vrot.slane %v6634_v33, %v4773_v23  ;;  %v3463_v2 = vrot.slane %v6681_v40, %v4788_v30  ;;  %vm6719_vm1 = vcmp.eq.s32.totalorder %v2400_v42, 1  ;;  %v3282_v33 = vrot.slane %v6693_v15, %v4773_v23 }
 0x53d   : > { %7927 = vst [vmem:[#allocation50_spill] sm:$0xff] %v6668_v58  ;;  %v2555_v51 = vsel %vm7933_vm15, %v6590_v36, %v6668_v58  ;;  %v6686_v34 = vpop.permute.xlu0 %2294  ;;  %v2469_v36 = vrot.slane %v6615_v63, %v4773_v23  ;;  %vm2331_vm7 = vcmp.ne.f32.partialorder %v2330_v19, 0.0  ;;  %v3286_v63 = vrot.slane %v6693_v15, %v4788_v30 }
 0x53e   : > { %v2563_v26 = vsel %vm6664_vm12, %v2555_v51, 0.0  ;;  %v2302_v48 = vsel %vm7586_vm13, %v6249_v47, %v6686_v34  ;;  %v3467_v47 = vrot.slane %v6681_v40, %v4784_v28  ;;  %vm6727_vm9 = vcmp.eq.s32.totalorder %v3394_v8, 1 }
 0x53f   : > { %v2571_v58 = vrot.slane %v2563_v26, 4  ;;  %v2310_v39 = vsel %vm6670_vm5, %v2302_v48, 0.0  ;;  %vm6731_vm10 = vcmp.eq.s32.totalorder %v3398_v14, 1  ;;  %vm6738_vm8 = vcmp.eq.s32.totalorder %v2469_v36, 1 }
 0x540   : > { %v2318_v4 = vrot.slane %v2310_v39, 4  ;;  %v6708_v51 = vpop.permute.xlu1 %2617  ;;  %v3290_v39 = vrot.slane %v6693_v15, %v4784_v28  ;;  %vm6742_vm12 = vcmp.eq.s32.totalorder %v3463_v2, 1  ;;  %vm6746_vm5 = vcmp.eq.s32.totalorder %v2274_v35, 1 }
 0x541   : > { %7934 = vst [vmem:[#allocation52_spill] sm:$0xff] %v6708_v51  ;;  %2579 = vst [vmem:[#allocation3 + $0x110] sm:$0xf0] %v2571_v58  ;;  %v2624_v62 = vsel %vm7585_vm6, %v6612_v61, %v6708_v51  ;;  %v6717_v26 = vpop.permute.xlu0 %2363  ;;  %v6736_v61 = vsel %vm2331_vm7, 1, %v7634_v12  ;;  %vm6752_vm15 = vcmp.eq.s32.totalorder %v3467_v47, 1  ;;  %vm6756_vm7 = vcmp.eq.s32.totalorder %v3286_v63, 1 }
 0x542   : > { %2326 = vst [vmem:[#allocation3 + $0xb0] sm:$0xf0] %v2318_v4  ;;  %v2632_v19 = vsel %vm6674_vm14, %v2624_v62, 0.0  ;;  %7941 = vst [vmem:[#allocation53_spill] sm:$0xff] %v6736_v61  ;;  %vm3756_vm14 = vcmp.ne.f32.partialorder %v3755_v53, 0.0  ;;  %v3160_v2 = vrot.slane %v6354_v55, %v4788_v30  ;;  %v3164_v35 = vrot.slane %v6354_v55, %v4784_v28 }
 0x543   : > { %2636 = vst [vmem:[#allocation3 + $0x150] sm:$0xf] %v2632_v19  ;;  %v3824_v62 = vld [vmem:[#allocation4 + $0x62] ss:$8 sm:$0xf]  ;;  %vm6767_vm2 = vcmp.eq.s32.totalorder %v3290_v39, 1  ;;  %v2343_v63 = vrot.slane %v6736_v61, %v4773_v23  ;;  %v3278_v51 = vrot.slane %v6693_v15, %v4766_v16  ;;  %v3034_v14 = vrot.slane %v6378_v17, %v4788_v30 }
 0x544   : > { %v6750_v8 = vpop.permute.xlu1 %2422  ;;  %v6782_v39 = vsel %vm3756_vm14, 1, %v7634_v12  ;;  %vm6794_vm11 = vcmp.eq.s32.totalorder %v3164_v35, 1  ;;  %v3629_v58 = vld [vmem:[#allocation4 + $0x47] ss:$8 sm:$0xf]  ;;  %v3233_v35 = vrot.slane %v6367_v41, %v4784_v28  ;;  %v3103_v47 = vrot.slane %v6391_v13, %v4788_v30 }
 0x545   : > { %7948 = vst [vmem:[#allocation54_spill] sm:$0xff] %v6750_v8  ;;  %v2429_v53 = vsel %vm7953_vm3, %v6631_v0, %v6750_v8  ;;  %v3415_v19 = vpop.permute.xlu0 %3414  ;;  %vm3825_vm3 = vcmp.ne.f32.partialorder %v3824_v62, 0.0  ;;  %v3764_v15 = vrot.slane %v6782_v39, %v4766_v16  ;;  %v3768_v42 = vrot.slane %v6782_v39, %v4773_v23 }
 0x546   : > { %v2437_v40 = vsel %vm6719_vm1, %v2429_v53, 0.0  ;;  %v3420_v55 = vsel %vm7586_vm13, %v6335_v5, %v3415_v19  ;;  %v3421_v0 = vsel %vm7586_vm13, %v3415_v19, %v6025_v59  ;;  %vm6790_vm1 = vcmp.eq.s32.totalorder %v3160_v2, 1 }
 0x547   : > { %v2445_v8 = vrot.slane %v2437_v40, 4  ;;  %v3428_v49 = vsel %vm6727_vm9, %v3420_v55, 0.0  ;;  %v3429_v61 = vsel %vm6731_vm10, %v3421_v0, 0.0  ;;  %v3229_v40 = vrot.slane %v6367_v41, %v4788_v30 }
 0x548   : > { %v3436_v52 = vrot.slane %v3428_v49, 4  ;;  %v3437_v48 = vrot.slane %v3429_v61, 4  ;;  %v6788_v53 = vpop.permute.xlu1 %2491  ;;  %vm7960_vm9 = vcmask 973824   ;;  %vm6805_vm10 = vcmp.eq.s32.totalorder %v2343_v63, 1 }
 0x549   : > { %2453 = vst [vmem:[#allocation3 + $0x168] sm:$0xf0] %v2445_v8  ;;  %v2498_v49 = vsel %vm7960_vm9, %v6654_v27, %v6788_v53  ;;  %v3484_v61 = vpop.permute.xlu0 %3483  ;;  %v6821_v63 = vsel %vm3825_vm3, 1, %v7634_v12  ;;  %vm6831_vm14 = vcmp.eq.s32.totalorder %v3278_v51, 1  ;;  %vm6835_vm3 = vcmp.eq.s32.totalorder %v3282_v33, 1 }
 0x54a   : > { %3444 = vst [vmem:[#allocation3 + $0xd0] sm:$0xf0] %v3436_v52  ;;  %3445 = vst [vmem:[#allocation3 + $0x1a0] sm:$0xf0] %v3437_v48  ;;  %v2506_v8 = vsel %vm6738_vm8, %v2498_v49, 0.0  ;;  %v3489_v19 = vsel %vm7587_vm0, %v6343_v46, %v3484_v61  ;;  %v3490_v27 = vsel %vm7587_vm0, %v3484_v61, %v6029_v22  ;;  %vm3630_vm8 = vcmp.ne.f32.partialorder %v3629_v58, 0.0 }
 0x54b   : > { %2510 = vst [vmem:[#allocation3 + $0x110] sm:$0xf] %v2506_v8  ;;  %v3497_v41 = vsel %vm6742_vm12, %v3489_v19, 0.0  ;;  %v3498_v52 = vsel %vm6752_vm15, %v3490_v27, 0.0  ;;  %vm6839_vm12 = vcmp.eq.s32.totalorder %v3229_v40, 1  ;;  %vm6848_vm15 = vcmp.eq.s32.totalorder %v3233_v35, 1 }
 0x54c   : > { %3501 = vst [vmem:[#allocation3 + $0x160] sm:$0xf] %v3497_v41  ;;  %3502 = vst [vmem:[#allocation3 + $0x20] sm:$0xf] %v3498_v52  ;;  %v6829_v55 = vpop.permute.xlu1 %2296  ;;  %v3038_v33 = vrot.slane %v6378_v17, %v4784_v28  ;;  %v3833_v40 = vrot.slane %v6821_v63, %v4766_v16  ;;  %vm7971_vm9 = vcmask 375808   ;;  %v6864_v35 = vsel %vm3630_vm8, 1, %v7634_v12 }
 0x54d   : > { %v2303_v0 = vsel %vm7586_vm13, %v6686_v34, %v6829_v55  ;;  %v3307_v48 = vpop.permute.xlu0 %3306  ;;  %vm7972_vm6 = vmmov %vm7971_vm9  ;;  %v3698_v8 = vld [vmem:[#allocation4 + $0x60] ss:$8 sm:$0xf]  ;;  %vm6870_vm13 = vcmp.eq.s32.totalorder %v3764_v15, 1  ;;  %v3107_v15 = vrot.slane %v6391_v13, %v4784_v28  ;;  %vm7981_vm8 = vcmask 392192  }
 0x54e   : > { %v2311_v49 = vsel %vm6746_vm5, %v2303_v0, 0.0  ;;  %v3312_v61 = vsel %vm7971_vm9, %v6364_v43, %v3307_v48  ;;  %v3313_v34 = vsel %vm7972_vm6, %v3307_v48, %v6191_v60  ;;  %vm6874_vm5 = vcmp.eq.s32.totalorder %v3768_v42, 1  ;;  %v3503_v58 = vld [vmem:[#allocation4 + $0x45] ss:$8 sm:$0xf]  ;;  %vm7982_vm9 = vmmov %vm7981_vm8 }
 0x54f   : > { %v2319_v19 = vrot.slane %v2311_v49, 4  ;;  %v3320_v17 = vsel %vm6756_vm7, %v3312_v61, 0.0  ;;  %v3321_v27 = vsel %vm6767_vm2, %v3313_v34, 0.0  ;;  %v3837_v60 = vrot.slane %v6821_v63, %v4773_v23 }
 0x550   : > { %v3328_v52 = vrot.slane %v3320_v17, 4  ;;  %v3329_v0 = vrot.slane %v3321_v27, 4  ;;  %v6880_v48 = vpop.permute.xlu1 %2365  ;;  %vm6882_vm6 = vcmp.eq.s32.totalorder %v3034_v14, 1  ;;  %vm6893_vm2 = vcmp.eq.s32.totalorder %v3038_v33, 1 }
 0x551   : > { %2327 = vst [vmem:[#allocation3 + $0x1b0] sm:$0xf0] %v2319_v19  ;;  %v2372_v42 = vsel %vm7587_vm0, %v6717_v26, %v6880_v48  ;;  %v3181_v49 = vpop.permute.xlu0 %3180  ;;  %v3638_v14 = vrot.slane %v6864_v35, %v4766_v16  ;;  %vm3504_vm0 = vcmp.ne.f32.partialorder %v3503_v58, 0.0  ;;  %vm6909_vm4 = vcmp.eq.s32.totalorder %v3833_v40, 1 }
 0x552   : > { %3336 = vst [vmem:[#allocation3 + $0x148] sm:$0xf0] %v3328_v52  ;;  %3337 = vst [vmem:[#allocation3 + $0x8] sm:$0xf0] %v3329_v0  ;;  %v2380_v34 = vsel %vm6805_vm10, %v2372_v42, 0.0  ;;  %v3186_v13 = vsel %vm7981_vm8, %v6434_v10, %v3181_v49  ;;  %v3187_v19 = vsel %vm7982_vm9, %v3181_v49, %v6199_v3  ;;  %vm6913_vm7 = vcmp.eq.s32.totalorder %v3837_v60, 1 }
 0x553   : > { %2384 = vst [vmem:[#allocation3 + $0x168] sm:$0xf] %v2380_v34  ;;  %v3194_v33 = vsel %vm6790_vm1, %v3186_v13, 0.0  ;;  %v3195_v17 = vsel %vm6794_vm11, %v3187_v19, 0.0  ;;  %v3642_v10 = vrot.slane %v6864_v35, %v4773_v23  ;;  %v2908_v3 = vrot.slane %v6405_v25, %v4788_v30 }
 0x554   : > { %v3202_v52 = vrot.slane %v3194_v33, 4  ;;  %v3203_v5 = vrot.slane %v3195_v17, 4  ;;  %v3303_v0 = vpop.permute.xlu1 %3302  ;;  %vm6921_vm1 = vcmp.eq.s32.totalorder %v3103_v47, 1  ;;  %vm6925_vm11 = vcmp.eq.s32.totalorder %v3107_v15, 1 }
 0x555   : > { %v2912_v60 = vrot.slane %v6405_v25, %v4784_v28  ;;  %v2977_v42 = vrot.slane %v6423_v37, %v4788_v30  ;;  %vm7991_vm10 = vcmask 375808   ;;  %v3250_v47 = vpop.permute.xlu0 %3249  ;;  %vm7993_vm9 = vcmp.ne.f32.partialorder %v3698_v8, 0.0  ;;  %v3572_v19 = vld [vmem:[#allocation4 + $0x46] ss:$8 sm:$0xf] }
 0x556   : > { %v3310_v49 = vsel %vm7991_vm10, %v6303_v21, %v3303_v0  ;;  %vm7992_vm8 = vmmov %vm7991_vm10  ;;  %v6939_v13 = vsel %vm7993_vm9, 1, %v7634_v12  ;;  %v6943_v15 = vsel %vm3504_vm0, 1, %v7634_v12  ;;  %3210 = vst [vmem:[#allocation3 + $0x178] sm:$0xf0] %v3202_v52  ;;  %vm7994_vm10 = vcmask 384000  }
 0x557   : > { %v3311_v34 = vsel %vm7992_vm8, %v3303_v0, %v6364_v43  ;;  %3211 = vst [vmem:[#allocation3 + $0xc8] sm:$0xf0] %v3203_v5  ;;  %v3318_v25 = vsel %vm6831_vm14, %v3310_v49, 0.0  ;;  %v3255_v43 = vsel %vm7994_vm10, %v6458_v1, %v3250_v47  ;;  %vm7995_vm8 = vmmov %vm7994_vm10  ;;  %vm6957_vm0 = vcmp.eq.s32.totalorder %v3638_v14, 1  ;;  %v8035_v1 = vld [vmem:[#allocation25_spill] sm:$0xff] }
 0x558   : > { %v3319_v21 = vsel %vm6835_vm3, %v3311_v34, 0.0  ;;  %v3256_v8 = vsel %vm7995_vm8, %v3250_v47, %v6207_v7  ;;  %v3326_v33 = vrot.slane %v3318_v25, 4  ;;  %v3263_v58 = vsel %vm6839_vm12, %v3255_v43, 0.0  ;;  %v3789_v7 = vpop.permute.xlu1 %3788 }
 0x559   : > { %v3327_v17 = vrot.slane %v3319_v21, 4  ;;  %v3264_v52 = vsel %vm6848_vm15, %v3256_v8, 0.0  ;;  %vm6961_vm14 = vcmp.eq.s32.totalorder %v3642_v10, 1  ;;  %3267 = vst [vmem:[#allocation3 + $0x148] sm:$0xf] %v3263_v58  ;;  %vm6965_vm3 = vcmp.eq.s32.totalorder %v2908_v3, 1 }
 0x55a   : > { %3268 = vst [vmem:[#allocation3 + $0x8] sm:$0xf] %v3264_v52  ;;  %vm6969_vm9 = vcmp.eq.s32.totalorder %v2912_v60, 1  ;;  %v8002_v4 = vmov 0  ;;  %v3707_v51 = vrot.slane %v6939_v13, %v4766_v16  ;;  %v3711_v14 = vrot.slane %v6939_v13, %v4773_v23  ;;  %3334 = vst [vmem:[#allocation3] sm:$0xf0] %v3326_v33  ;;  %v3055_v60 = vpop.permute.xlu0 %3054 }
 0x55b   : > { %v8003_v4 = vsel %vm6969_vm9, 4294967295, %v8002_v4  ;;  %v2981_v10 = vrot.slane %v6423_v37, %v4784_v28  ;;  %v3512_v5 = vrot.slane %v6943_v15, %v4766_v16  ;;  %3335 = vst [vmem:[#allocation3 + $0x68] sm:$0xf0] %v3327_v17  ;;  %vm8004_vm12 = vcmask 908288  }
 0x55c   : > { %v3796_v3 = vsel %vm8004_vm12, %v6373_v18, %v3789_v7  ;;  %vm8005_vm15 = vmmov %vm8004_vm12  ;;  %v3516_v49 = vrot.slane %v6943_v15, %v4773_v23  ;;  %vm3573_vm10 = vcmp.ne.f32.partialorder %v3572_v19, 0.0  ;;  %vm8006_vm8 = vcmask 449536   ;;  %v3858_v17 = vpop.permute.xlu1 %3857 }
 0x55d   : > { %v3797_v0 = vsel %vm8005_vm15, %v3789_v7, %v6261_v11  ;;  %v3804_v34 = vsel %vm6870_vm13, %v3796_v3, 0.0  ;;  %v3060_v47 = vsel %vm8006_vm8, %v6486_v45, %v3055_v60  ;;  %vm8007_vm9 = vmmov %vm8006_vm8  ;;  %vm6999_vm13 = vcmp.eq.s32.totalorder %v3707_v51, 1 }
 0x55e   : > { %v3805_v37 = vsel %vm6874_vm5, %v3797_v0, 0.0  ;;  %v3061_v18 = vsel %vm8007_vm9, %v3055_v60, %v6215_v24  ;;  %v3812_v25 = vrot.slane %v3804_v34, 4  ;;  %v3068_v43 = vsel %vm6882_vm6, %v3060_v47, 0.0  ;;  %v3124_v52 = vpop.permute.xlu0 %3123  ;;  %v8142_v24 = vld [vmem:[#allocation17_spill] sm:$0xff] }
 0x55f   : > { %v3813_v21 = vrot.slane %v3805_v37, 4  ;;  %v3069_v8 = vsel %vm6893_vm2, %v3061_v18, 0.0  ;;  %v3076_v33 = vrot.slane %v3068_v43, 4  ;;  %vm7003_vm5 = vcmp.eq.s32.totalorder %v2977_v42, 1 }
 0x560   : > { %v3077_v9 = vrot.slane %v3069_v8, 4  ;;  %vm7007_vm9 = vcmp.eq.s32.totalorder %v2981_v10, 1  ;;  %v2782_v36 = vrot.slane %v6443_v54, %v4788_v30  ;;  %3820 = vst [vmem:[#allocation3 + $0x128] sm:$0xf0] %v3812_v25  ;;  %vm8014_vm6 = vcmask 900096  }
 0x561   : > { %3821 = vst [vmem:[#allocation3 + $0x38] sm:$0xf0] %v3813_v21  ;;  %v3865_v61 = vsel %vm8014_vm6, %v6277_v50, %v3858_v17  ;;  %vm8015_vm2 = vmmov %vm8014_vm6  ;;  %vm7017_vm12 = vcmp.eq.s32.totalorder %v3711_v14, 1  ;;  %v7023_v7 = vsel %vm3573_vm10, 1, %v7634_v12  ;;  %vm8018_vm15 = vcmask 441344  }
 0x562   : > { %v3866_v58 = vsel %vm8015_vm2, %v3858_v17, %v6269_v56  ;;  %3084 = vst [vmem:[#allocation3 + $0x190] sm:$0xf0] %v3076_v33  ;;  %3085 = vst [vmem:[#allocation3 + $0xb8] sm:$0xf0] %v3077_v9  ;;  %v3873_v51 = vsel %vm6909_vm4, %v3865_v61, 0.0  ;;  %v3129_v10 = vsel %vm8018_vm15, %v6509_v31, %v3124_v52  ;;  %vm7037_vm10 = vcmp.eq.s32.totalorder %v3512_v5, 1  ;;  %v2929_v60 = vpop.permute.xlu0 %2928 }
 0x563   : > { %v3874_v50 = vsel %vm6913_vm7, %v3866_v58, 0.0  ;;  %vm8019_vm8 = vmmov %vm8018_vm15  ;;  %3877 = vst [vmem:[#allocation3 + $0x58] sm:$0xf] %v3873_v51  ;;  %v3137_v12 = vsel %vm6921_vm1, %v3129_v10, 0.0  ;;  %vm7041_vm4 = vcmp.eq.s32.totalorder %v3516_v49, 1  ;;  %v2786_v31 = vrot.slane %v6443_v54, %v4784_v28 }
 0x564   : > { %v3130_v14 = vsel %vm8019_vm8, %v3124_v52, %v6223_v44  ;;  %3878 = vst [vmem:[#allocation3 + $0xf0] sm:$0xf] %v3874_v50  ;;  %3141 = vst [vmem:[#allocation3 + $0x178] sm:$0xf] %v3137_v12  ;;  %v3663_v44 = vpop.permute.xlu1 %3662  ;;  %vm7047_vm7 = vcmp.eq.s32.totalorder %v2782_v36, 1  ;;  %v2851_v40 = vrot.slane %v6471_v38, %v4788_v30  ;;  %v2855_v5 = vrot.slane %v6471_v38, %v4784_v28  ;;  %v8041_v52 = vld [vmem:[#allocation16_spill] sm:$0xff] }
 0x565   : > { %v3138_v19 = vsel %vm6925_vm11, %v3130_v14, 0.0  ;;  %v3772_v3 = vrot.slane %v6782_v39, %v4788_v30  ;;  %vm8026_vm1 = vcmask 965632   ;;  %v3581_v49 = vrot.slane %v7023_v7, %v4766_v16  ;;  %v8043_v50 = vld [vmem:[#allocation27_spill] sm:$0xff] }
 0x566   : > { %3142 = vst [vmem:[#allocation3 + $0xc8] sm:$0xf] %v3138_v19  ;;  %v3670_v0 = vsel %vm8026_vm1, %v6386_v57, %v3663_v44  ;;  %vm8027_vm11 = vmmov %vm8026_vm1  ;;  %v3776_v34 = vrot.slane %v6782_v39, %v4784_v28  ;;  %vm8028_vm6 = vcmask 506880   ;;  %vm8030_vm15 = vnez %v8003_v4  ;;  %v2998_v4 = vpop.permute.xlu0 %2997 }
 0x567   : > { %v3671_v54 = vsel %vm8027_vm11, %v3663_v44, %v6285_v29  ;;  %v3678_v37 = vsel %vm6957_vm0, %v3670_v0, 0.0  ;;  %v2934_v47 = vsel %vm8028_vm6, %v6535_v20, %v2929_v60  ;;  %vm8029_vm2 = vmmov %vm8028_vm6  ;;  %vm7077_vm0 = vcmp.eq.s32.totalorder %v2786_v31, 1  ;;  %v8055_v0 = vld [vmem:[#allocation20_spill] sm:$0xff]  ;;  %v8095_v44 = vld [vmem:[#allocation51_spill] sm:$0xff] }
 0x568   : > { %v3679_v38 = vsel %vm6961_vm14, %v3671_v54, 0.0  ;;  %v2935_v57 = vsel %vm8029_vm2, %v2929_v60, %v6231_v32  ;;  %v3686_v18 = vrot.slane %v3678_v37, 4  ;;  %v2942_v21 = vsel %vm6965_vm3, %v2934_v47, 0.0  ;;  %v3732_v8 = vpop.permute.xlu1 %3731  ;;  %v8033_v32 = vld [vmem:[#allocation18_spill] sm:$0xff]  ;;  %v8057_v60 = vld [vmem:[#allocation29_spill] sm:$0xff] }
 0x569   : > { %v3687_v25 = vrot.slane %v3679_v38, 4  ;;  %v2943_v39 = vsel %vm8030_vm15, %v2935_v57, 0.0  ;;  %v2950_v43 = vrot.slane %v2942_v21, 4  ;;  %v3585_v20 = vrot.slane %v7023_v7, %v4773_v23  ;;  %v8059_v38 = vld [vmem:[#allocation38_spill] sm:$0xff]  ;;  %v8062_v21 = vld [vmem:[#allocation32_spill] sm:$0xff] }
 0x56a   : > { %v2951_v22 = vrot.slane %v2943_v39, 4  ;;  %3694 = vst [vmem:[#allocation3 + $0x70] sm:$0xf0] %v3686_v18  ;;  %vm8034_vm14 = vcmask 916480   ;;  %vm7087_vm8 = vcmp.eq.s32.totalorder %v2851_v40, 1  ;;  %vm7091_vm1 = vcmp.eq.s32.totalorder %v2855_v5, 1 }
 0x56b   : > { %3695 = vst [vmem:[#allocation3 + $0x78] sm:$0xf0] %v3687_v25  ;;  %v3739_v33 = vsel %vm8034_vm14, %v8033_v32, %v3732_v8  ;;  %vm8036_vm3 = vmmov %vm8034_vm14  ;;  %vm8042_vm11 = vcmask 457728   ;;  %v3934_v14 = vld [vmem:[#allocation3 + $0xf0] sm:$0xf]  ;;  %vm7108_vm2 = vcmp.eq.s32.totalorder %v3581_v49, 1  ;;  %v2656_v40 = vrot.slane %v6496_v6, %v4788_v30 }
 0x56c   : > { %v3740_v9 = vsel %vm8036_vm3, %v3732_v8, %v8035_v1  ;;  %2958 = vst [vmem:[#allocation3 + $0x1b8] sm:$0xf0] %v2950_v43  ;;  %2959 = vst [vmem:[#allocation3 + $0x28] sm:$0xf0] %v2951_v22  ;;  %v3747_v61 = vsel %vm6999_vm13, %v3739_v33, 0.0  ;;  %v3003_v51 = vsel %vm8042_vm11, %v8041_v52, %v2998_v4  ;;  %vm8045_vm13 = vcmask 1043456   ;;  %v3537_v45 = vpop.permute.xlu1 %3536 }
 0x56d   : > { %v3748_v58 = vsel %vm7017_vm12, %v3740_v9, 0.0  ;;  %vm8044_vm6 = vmmov %vm8042_vm11  ;;  %v3933_v12 = vld [vmem:[#allocation3 + $0x58] sm:$0xf]  ;;  %3751 = vst [vmem:[#allocation3 + $0x128] sm:$0xf] %v3747_v61  ;;  %v3011_v19 = vsel %vm7003_vm5, %v3003_v51, 0.0  ;;  %4287 = vmatprep.subr.msk.mxu0 %vm8045_vm13, %v3934_v14  ;;  %v2660_v5 = vrot.slane %v6496_v6, %v4784_v28  ;;  %v3845_v37 = vrot.slane %v6821_v63, %v4784_v28 }
 0x56e   : > { %v3004_v10 = vsel %vm8044_vm6, %v2998_v4, %v8043_v50  ;;  %3752 = vst [vmem:[#allocation3 + $0x38] sm:$0xf] %v3748_v58  ;;  %vm7112_vm12 = vcmp.eq.s32.totalorder %v3772_v3, 1  ;;  %vm7116_vm15 = vcmp.eq.s32.totalorder %v3776_v34, 1  ;;  %3015 = vst [vmem:[#allocation3 + $0x190] sm:$0xf] %v3011_v19  ;;  %v3841_v3 = vrot.slane %v6821_v63, %v4788_v30  ;;  %v2803_v34 = vpop.permute.xlu0 %2802 }
 0x56f   : > { %v3012_v41 = vsel %vm7007_vm9, %v3004_v10, 0.0  ;;  %vm8052_vm5 = vmmov %vm8045_vm13  ;;  %vm7121_vm9 = vcmp.eq.s32.totalorder %v3585_v20, 1  ;;  %vm8056_vm14 = vcmask 982016   ;;  %v2725_v47 = vrot.slane %v8059_v38, %v4788_v30  ;;  %v8060_v18 = vld [vmem:[#allocation42_spill] sm:$0xff]  ;;  %v8064_v33 = vld [vmem:[#allocation49_spill] sm:$0xff] }
 0x570   : > { %3016 = vst [vmem:[#allocation3 + $0xb8] sm:$0xf] %v3012_v41  ;;  %4288 = vmatpush1.msk.msra.mxu0 %vm8052_vm5, %v3933_v12  ;;  %v3544_v54 = vsel %vm8056_vm14, %v8055_v0, %v3537_v45  ;;  %vm8058_vm3 = vmmov %vm8056_vm14  ;;  %vm8061_vm11 = vcmask 523264   ;;  %v3606_v32 = vpop.permute.xlu1 %3605  ;;  %v2729_v2 = vrot.slane %v8059_v38, %v4784_v28  ;;  %v3386_v9 = vrot.slane %v8064_v33, %v4766_v16  ;;  %v8065_v4 = vld [vmem:[#allocation34_spill] sm:$0xff]  ;;  %v8073_v14 = vld [vmem:[#allocation44_spill] sm:$0xff] }
 0x571   : > { %v3545_v49 = vsel %vm8058_vm3, %v3537_v45, %v8057_v60  ;;  %v3552_v57 = vsel %vm7037_vm10, %v3544_v54, 0.0  ;;  %v2808_v25 = vsel %vm8061_vm11, %v8060_v18, %v2803_v34  ;;  %vm8063_vm6 = vmmov %vm8061_vm11  ;;  %vm8066_vm10 = vcmask 973824   ;;  %v8067_v58 = vld [vmem:[#allocation26_spill] sm:$0xff]  ;;  %v8075_v19 = vld [vmem:[#allocation35_spill] sm:$0xff] }
 0x572   : > { %v3553_v6 = vsel %vm7041_vm4, %v3545_v49, 0.0  ;;  %v2809_v39 = vsel %vm8063_vm6, %v2803_v34, %v8062_v21  ;;  %v3560_v43 = vrot.slane %v3552_v57, 4  ;;  %v2816_v63 = vsel %vm7047_vm7, %v2808_v25, 0.0  ;;  %vm8068_vm4 = vmmov %vm8066_vm10  ;;  %v2872_v52 = vpop.permute.xlu0 %2871  ;;  %v8090_v57 = vld [vmem:[#allocation40_spill] sm:$0xff]  ;;  %v8101_v51 = vld [vmem:[#allocation41_spill] sm:$0xff] }
 0x573   : > { %v3561_v22 = vrot.slane %v3553_v6, 4  ;;  %v2817_v8 = vsel %vm7077_vm0, %v2809_v39, 0.0  ;;  %v2824_v20 = vrot.slane %v2816_v63, 4  ;;  %v3613_v61 = vsel %vm8066_vm10, %v8065_v4, %v3606_v32  ;;  %v8091_v39 = vld [vmem:[#allocation46_spill] sm:$0xff]  ;;  %v8175_v49 = vld [vmem:[#allocation37_spill] sm:$0xff] }
 0x574   : > { %v2825_v27 = vrot.slane %v2817_v8, 4  ;;  %3568 = vst [vmem:[#allocation3 + $0x10] sm:$0xf0] %v3560_v43  ;;  %v3614_v59 = vsel %vm8068_vm4, %v3606_v32, %v8067_v58  ;;  %vm7159_vm7 = vcmp.eq.s32.totalorder %v2656_v40, 1  ;;  %vm7163_vm0 = vcmp.eq.s32.totalorder %v2660_v5, 1  ;;  %v3929_v40 = vld [vmem:[#allocation3 + $0x128] sm:$0xff]  ;;  %v3793_v54 = vpop.permute.xlu1 %3792 }
 0x575   : > { %3569 = vst [vmem:[#allocation3 + $0x100] sm:$0xf0] %v3561_v22  ;;  %2832 = vst [vmem:[#allocation3 + $0x138] sm:$0xf0] %v2824_v20  ;;  %v3621_v50 = vsel %vm7108_vm2, %v3613_v61, 0.0  ;;  %v3622_v10 = vsel %vm7121_vm9, %v3614_v59, 0.0  ;;  %v3390_v36 = vrot.slane %v8064_v33, %v4773_v23  ;;  %v2530_v6 = vrot.slane %v8090_v57, %v4788_v30 }
 0x576   : > { %2833 = vst [vmem:[#allocation3 + $0x140] sm:$0xf0] %v2825_v27  ;;  %vm8074_vm13 = vcmask 515072   ;;  %v3930_v45 = vld [vmem:[#allocation3 + $0x38] sm:$0xff]  ;;  %3625 = vst [vmem:[#allocation3 + $0x70] sm:$0xf] %v3621_v50  ;;  %v2534_v18 = vrot.slane %v8090_v57, %v4784_v28  ;;  %v3455_v33 = vrot.slane %v8095_v44, %v4766_v16  ;;  %v2599_v50 = vrot.slane %v8101_v51, %v4788_v30 }
 0x577   : > { %v2877_v12 = vsel %vm8074_vm13, %v8073_v14, %v2872_v52  ;;  %vm8076_vm5 = vmmov %vm8074_vm13  ;;  %3626 = vst [vmem:[#allocation3 + $0x78] sm:$0xf] %v3622_v10  ;;  %3958 = vmatprep.subr.mxu0 %v3930_v45  ;;  %vm7179_vm2 = vcmp.eq.s32.totalorder %v3841_v3, 1  ;;  %vm7183_vm9 = vcmp.eq.s32.totalorder %v3845_v37, 1  ;;  %vm7187_vm14 = vcmp.eq.s32.totalorder %v2725_v47, 1  ;;  %v8088_v37 = vld [vmem:[#allocation21_spill] sm:$0xff]  ;;  %v2677_v47 = vpop.permute.xlu0 %2676 }
 0x578   : > { %v2878_v41 = vsel %vm8076_vm5, %v2872_v52, %v8075_v19  ;;  %v2885_v5 = vsel %vm7087_vm8, %v2877_v12, 0.0  ;;  %3959 = vmatpush1.msra.mxu0 %v3929_v40  ;;  %vm7191_vm8 = vcmp.eq.s32.totalorder %v2729_v2, 1  ;;  %vm8087_vm3 = vcmask 908288   ;;  %v3862_v2 = vpop.permute.xlu1 %3861  ;;  %v8097_v61 = vld [vmem:[#allocation31_spill] sm:$0xff] }
 0x579   : > { %v2886_v42 = vsel %vm7091_vm1, %v2878_v41, 0.0  ;;  %2889 = vst [vmem:[#allocation3 + $0x1b8] sm:$0xf] %v2885_v5  ;;  %vm7197_vm1 = vcmp.eq.s32.totalorder %v3386_v9, 1  ;;  %v3798_v34 = vsel %vm8087_vm3, %v6261_v11, %v3793_v54  ;;  %vm8089_vm11 = vmmov %vm8087_vm3  ;;  %v8093_v11 = vld [vmem:[#allocation24_spill] sm:$0xff]  ;;  %v3459_v9 = vrot.slane %v8095_v44, %v4773_v23  ;;  %v8104_v12 = vld [vmem:[#allocation39_spill] sm:$0xff] }
 0x57a   : > { %2890 = vst [vmem:[#allocation3 + $0x28] sm:$0xf] %v2886_v42  ;;  %v3799_v38 = vsel %vm8089_vm11, %v3793_v54, %v8088_v37  ;;  %v3806_v25 = vsel %vm7112_vm12, %v3798_v34, 0.0  ;;  %vm8092_vm6 = vmmov %vm8087_vm3  ;;  %vm8096_vm12 = vcmask 900096   ;;  %vm7229_vm4 = vcmp.eq.s32.totalorder %v3390_v36, 1  ;;  %v8114_v34 = vld [vmem:[#allocation22_spill] sm:$0xff] }
 0x57b   : > { %v3807_v21 = vsel %vm7116_vm15, %v3799_v38, 0.0  ;;  %v2682_v43 = vsel %vm8092_vm6, %v8091_v39, %v2677_v47  ;;  %vm8094_vm10 = vmmov %vm8087_vm3  ;;  %v3814_v63 = vrot.slane %v3806_v25, 4  ;;  %v3867_v4 = vsel %vm8096_vm12, %v6269_v56, %v3862_v2  ;;  %v2746_v52 = vpop.permute.xlu0 %2745  ;;  %v8102_v56 = vld [vmem:[#allocation48_spill] sm:$0xff]  ;;  %v8116_v38 = vld [vmem:[#allocation19_spill] sm:$0xff] }
 0x57c   : > { %v2683_v22 = vsel %vm8094_vm10, %v2677_v47, %v8093_v11  ;;  %v3815_v8 = vrot.slane %v3807_v21, 4  ;;  %v2690_v20 = vsel %vm7159_vm7, %v2682_v43, 0.0  ;;  %vm8098_vm15 = vmmov %vm8096_vm12  ;;  %v3875_v23 = vsel %vm7179_vm2, %v3867_v4, 0.0  ;;  %v3411_v0 = vpop.permute.xlu1 %3410  ;;  %v8120_v39 = vld [vmem:[#allocation50_spill] sm:$0xff]  ;;  %v8122_v11 = vld [vmem:[#allocation33_spill] sm:$0xff] }
 0x57d   : > { %v2691_v27 = vsel %vm7163_vm0, %v2683_v22, 0.0  ;;  %v2698_v32 = vrot.slane %v2690_v20, 4  ;;  %3822 = vst [vmem:[#allocation3 + $0x88] sm:$0xf0] %v3814_v63  ;;  %v3868_v59 = vsel %vm8098_vm15, %v3862_v2, %v8097_v61  ;;  %vm8103_vm7 = vmmov %vm8096_vm12  ;;  %v3925_v45 = vld [vmem:[#allocation3 + $0x70] sm:$0xff]  ;;  %vm7247_vm13 = vcmp.eq.s32.totalorder %v2530_v6, 1 }
 0x57e   : > { %v2699_v31 = vrot.slane %v2691_v27, 4  ;;  %3823 = vst [vmem:[#allocation3 + $0x170] sm:$0xf0] %v3815_v8  ;;  %v3876_v10 = vsel %vm7183_vm9, %v3868_v59, 0.0  ;;  %v2751_v14 = vsel %vm8103_vm7, %v8102_v56, %v2746_v52  ;;  %vm8105_vm0 = vmmov %vm8103_vm7  ;;  %v3926_v41 = vld [vmem:[#allocation3 + $0x78] sm:$0xff]  ;;  %vm7251_vm5 = vcmp.eq.s32.totalorder %v2534_v18, 1 }
 0x57f   : > { %2706 = vst [vmem:[#allocation3 + $0x108] sm:$0xf0] %v2698_v32  ;;  %v2752_v19 = vsel %vm8105_vm0, %v2746_v52, %v8104_v12  ;;  %3879 = vst [vmem:[#allocation3 + $0x30] sm:$0xf] %v3875_v23  ;;  %v2759_v40 = vsel %vm7187_vm14, %v2751_v14, 0.0  ;;  %3960 = vmatprep.subr.mxu0 %v3926_v41  ;;  %vm7255_vm2 = vcmp.eq.s32.totalorder %v3455_v33, 1  ;;  %v2603_v17 = vrot.slane %v8101_v51, %v4784_v28  ;;  %v2551_v57 = vpop.permute.xlu0 %2550 }
 0x580   : > { %2707 = vst [vmem:[#allocation3 + $0x60] sm:$0xf0] %v2699_v31  ;;  %3880 = vst [vmem:[#allocation3 + $0x198] sm:$0xf] %v3876_v10  ;;  %v2760_v5 = vsel %vm7191_vm8, %v2752_v19, 0.0  ;;  %3961 = vmatpush1.msra.mxu0 %v3925_v45  ;;  %vm7259_vm9 = vcmp.eq.s32.totalorder %v3459_v9, 1  ;;  %v3646_v36 = vrot.slane %v6864_v35, %v4788_v30  ;;  %v3650_v18 = vrot.slane %v6864_v35, %v4784_v28  ;;  %v3480_v32 = vpop.permute.xlu1 %3479 }
 0x581   : > { %2763 = vst [vmem:[#allocation3 + $0x138] sm:$0xf] %v2759_v40  ;;  %2764 = vst [vmem:[#allocation3 + $0x140] sm:$0xf] %v2760_v5  ;;  %vm8115_vm14 = vcmask 1039360   ;;  %vm7271_vm3 = vcmp.eq.s32.totalorder %v2599_v50, 1  ;;  %v3715_v59 = vrot.slane %v6939_v13, %v4788_v30  ;;  %v3719_v52 = vrot.slane %v6939_v13, %v4784_v28 }
 0x582   : > { %v3418_v37 = vsel %vm8115_vm14, %v8114_v34, %v3411_v0  ;;  %vm8117_vm8 = vmmov %vm8115_vm14  ;;  %vm8121_vm11 = vcmask 965632   ;;  %v8126_v2 = vld [vmem:[#allocation43_spill] sm:$0xff]  ;;  %v8127_v33 = vld [vmem:[#allocation36_spill] sm:$0xff]  ;;  %vm8128_vm10 = vcmask 1031168   ;;  %vm8131_vm15 = vcmask 916480  }
 0x583   : > { %v3419_v47 = vsel %vm8117_vm8, %v3411_v0, %v8116_v38  ;;  %v3426_v25 = vsel %vm7197_vm1, %v3418_v37, 0.0  ;;  %v2556_v43 = vsel %vm8121_vm11, %v8120_v39, %v2551_v57  ;;  %vm8123_vm6 = vmmov %vm8121_vm11  ;;  %vm7289_vm1 = vcmp.eq.s32.totalorder %v2603_v17, 1  ;;  %v2620_v61 = vpop.permute.xlu0 %2619  ;;  %v8130_v50 = vld [vmem:[#allocation52_spill] sm:$0xff]  ;;  %v8140_v40 = vld [vmem:[#allocation45_spill] sm:$0xff] }
 0x584   : > { %v3427_v21 = vsel %vm7229_vm4, %v3419_v47, 0.0  ;;  %v2557_v22 = vsel %vm8123_vm6, %v2551_v57, %v8122_v11  ;;  %v3434_v63 = vrot.slane %v3426_v25, 4  ;;  %v2564_v20 = vsel %vm7247_vm13, %v2556_v43, 0.0  ;;  %vm8129_vm12 = vmmov %vm8128_vm10  ;;  %v8132_v10 = vld [vmem:[#allocation28_spill] sm:$0xff]  ;;  %v3667_v45 = vpop.permute.xlu1 %3666  ;;  %v8152_v43 = vld [vmem:[#allocation47_spill] sm:$0xff] }
 0x585   : > { %v3435_v8 = vrot.slane %v3427_v21, 4  ;;  %v2565_v35 = vsel %vm7251_vm5, %v2557_v22, 0.0  ;;  %v2572_v27 = vrot.slane %v2564_v20, 4  ;;  %v2404_v44 = vrot.slane %v8126_v2, %v4788_v30  ;;  %vm8133_vm4 = vmmov %vm8131_vm15  ;;  %v3913_v41 = vld [vmem:[#allocation3] sm:$0xff] }
 0x586   : > { %v2573_v3 = vrot.slane %v2565_v35, 4  ;;  %3442 = vst [vmem:[#allocation3 + $0x40] sm:$0xf0] %v3434_v63  ;;  %v3487_v9 = vsel %vm8128_vm10, %v8127_v33, %v3480_v32  ;;  %v3488_v4 = vsel %vm8129_vm12, %v3480_v32, %v6343_v46  ;;  %v2625_v23 = vsel %vm8131_vm15, %v8130_v50, %v2620_v61  ;;  %v3935_v14 = vld [vmem:[#allocation3 + $0x30] sm:$0xf]  ;;  %vm8143_vm14 = vmmov %vm8123_vm6  ;;  %v3901_v39 = vld [vmem:[#allocation3 + $0x80] sm:$0xff] }
 0x587   : > { %3443 = vst [vmem:[#allocation3 + $0xa8] sm:$0xf0] %v3435_v8  ;;  %2580 = vst [vmem:[#allocation3 + $0x118] sm:$0xf0] %v2572_v27  ;;  %v3495_v62 = vsel %vm7255_vm2, %v3487_v9, 0.0  ;;  %v3496_v51 = vsel %vm7259_vm9, %v3488_v4, 0.0  ;;  %v2626_v46 = vsel %vm8133_vm4, %v2620_v61, %v8132_v10  ;;  %v2473_v5 = vrot.slane %v8140_v40, %v4788_v30  ;;  %v7331_v54 = vpop.permute.xlu0 %2424 }
 0x588   : > { %2581 = vst [vmem:[#allocation3 + $0x98] sm:$0xf0] %v2573_v3  ;;  %v3936_v56 = vld [vmem:[#allocation3 + $0x198] sm:$0xf]  ;;  %3499 = vst [vmem:[#allocation3 + $0x10] sm:$0xf] %v3495_v62  ;;  %v3673_v0 = vsel %vm8143_vm14, %v3667_v45, %v8142_v24  ;;  %v3520_v38 = vrot.slane %v6943_v15, %v4788_v30  ;;  %v3736_v21 = vpop.permute.xlu1 %3735  ;;  %v2278_v11 = vrot.slane %v8152_v43, %v4788_v30 }
 0x589   : > { %3500 = vst [vmem:[#allocation3 + $0x100] sm:$0xf] %v3496_v51  ;;  %v2633_v13 = vsel %vm7271_vm3, %v2625_v23, 0.0  ;;  %v2634_v12 = vsel %vm7289_vm1, %v2626_v46, 0.0  ;;  %vm8134_vm7 = vcmask 1043456   ;;  %vm7316_vm0 = vcmp.eq.s32.totalorder %v3646_v36, 1  ;;  %vm8141_vm9 = vmmov %vm8123_vm6 }
 0x58a   : > { %4290 = vmatprep.subr.msk.mxu1 %vm8134_vm7, %v3936_v56  ;;  %vm7320_vm13 = vcmp.eq.s32.totalorder %v3650_v18, 1  ;;  %2637 = vst [vmem:[#allocation3 + $0x108] sm:$0xf] %v2633_v13  ;;  %2638 = vst [vmem:[#allocation3 + $0x60] sm:$0xf] %v2634_v12  ;;  %vm2411_vm2 = vcmp.eq.s32.totalorder %v2404_v44, 1  ;;  %v3672_v42 = vsel %vm8141_vm9, %v6285_v29, %v3667_v45  ;;  %v3524_v18 = vrot.slane %v6943_v15, %v4784_v28 }
 0x58b   : > { %vm8139_vm5 = vmmov %vm8134_vm7  ;;  %vm7333_vm8 = vcmp.eq.s32.totalorder %v3715_v59, 1  ;;  %vm7337_vm3 = vcmp.eq.s32.totalorder %v3719_v52, 1  ;;  %v3680_v36 = vsel %vm7316_vm0, %v3672_v42, 0.0  ;;  %v3681_v34 = vsel %vm7320_vm13, %v3673_v0, 0.0  ;;  %v8148_v29 = vld [vmem:[#allocation54_spill] sm:$0xff]  ;;  %v7362_v20 = vpop.permute.xlu0 %2493  ;;  %v8163_v61 = vld [vmem:[#allocation53_spill] sm:$0xff] }
 0x58c   : > { %4291 = vmatpush1.msk.msra.mxu1 %vm8139_vm5, %v3935_v14  ;;  %vm8149_vm11 = vcmask 982016   ;;  %v3688_v47 = vrot.slane %v3680_v36, 4  ;;  %v3689_v57 = vrot.slane %v3681_v34, 4  ;;  %vm7352_vm6 = vcmp.eq.s32.totalorder %v2473_v5, 1  ;;  %vm8153_vm1 = vmmov %vm8133_vm4  ;;  %v8154_v63 = vld [vmem:[#allocation30_spill] sm:$0xff]  ;;  %v8165_v62 = vld [vmem:[#allocation23_spill] sm:$0xff] }
 0x58d   : > { %v2430_v37 = vsel %vm8149_vm11, %v8148_v29, %v7331_v54  ;;  %v3741_v22 = vsel %vm8153_vm1, %v8035_v1, %v3736_v21  ;;  %vm8155_vm10 = vmmov %vm8153_vm1  ;;  %v3589_v15 = vrot.slane %v7023_v7, %v4788_v30  ;;  %vm8156_vm12 = vcmask 973824   ;;  %v3917_v23 = vld [vmem:[#allocation3 + $0x40] sm:$0xff]  ;;  %v3914_v56 = vld [vmem:[#allocation3 + $0x68] sm:$0xff] }
 0x58e   : > { %v2438_v6 = vsel %vm2411_vm2, %v2430_v37, 0.0  ;;  %3696 = vst [vmem:[#allocation3 + $0xa0] sm:$0xf0] %v3688_v47  ;;  %3697 = vst [vmem:[#allocation3 + $0x158] sm:$0xf0] %v3689_v57  ;;  %v3742_v8 = vsel %vm8155_vm10, %v3736_v21, %v8154_v63  ;;  %v3749_v35 = vsel %vm7333_vm8, %v3741_v22, 0.0  ;;  %v2499_v3 = vsel %vm8156_vm12, %v6788_v53, %v7362_v20  ;;  %v3541_v53 = vpop.permute.xlu1 %3540 }
 0x58f   : > { %v2446_v25 = vrot.slane %v2438_v6, 4  ;;  %v3750_v27 = vsel %vm7337_vm3, %v3742_v8, 0.0  ;;  %v3921_v32 = vld [vmem:[#allocation3 + $0x10] sm:$0xff]  ;;  %v3593_v31 = vrot.slane %v7023_v7, %v4784_v28  ;;  %3753 = vst [vmem:[#allocation3 + $0x88] sm:$0xf] %v3749_v35  ;;  %v2507_v44 = vsel %vm7352_vm6, %v2499_v3, 0.0  ;;  %vm8164_vm0 = vmmov %vm8149_vm11  ;;  %v7395_v50 = vpop.permute.xlu0 %2298 }
 0x590   : > { %v3922_v1 = vld [vmem:[#allocation3 + $0x100] sm:$0xff]  ;;  %3754 = vst [vmem:[#allocation3 + $0x170] sm:$0xf] %v3750_v27  ;;  %vm7377_vm15 = vcmp.eq.s32.totalorder %v3520_v38, 1  ;;  %vm7381_vm4 = vcmp.eq.s32.totalorder %v3524_v18, 1  ;;  %v3918_v4 = vld [vmem:[#allocation3 + $0xa8] sm:$0xff]  ;;  %v2347_v59 = vrot.slane %v8163_v61, %v4788_v30  ;;  %v3546_v52 = vsel %vm8164_vm0, %v8057_v60, %v3541_v53  ;;  %vm8166_vm13 = vmmov %vm8164_vm0 }
 0x591   : > { %2454 = vst [vmem:[#allocation3 + $0x130] sm:$0xf0] %v2446_v25  ;;  %3962 = vmatprep.subr.mxu0 %v3922_v1  ;;  %2511 = vst [vmem:[#allocation3 + $0x118] sm:$0xf] %v2507_v44  ;;  %vm7385_vm7 = vcmp.eq.s32.totalorder %v2278_v11, 1  ;;  %v3547_v51 = vsel %vm8166_vm13, %v3541_v53, %v8165_v62  ;;  %vm7397_vm5 = vcmp.eq.s32.totalorder %v3589_v15, 1  ;;  %v2339_v45 = vrot.slane %v8163_v61, %v4766_v16 }
 0x592   : > { %3963 = vmatpush1.msra.mxu0 %v3921_v32  ;;  %v3554_v46 = vsel %vm7377_vm15, %v3546_v52, 0.0  ;;  %v3555_v30 = vsel %vm7381_vm4, %v3547_v51, 0.0  ;;  %vm8169_vm2 = vcmask 1039360   ;;  %vm7408_vm9 = vcmp.eq.s32.totalorder %v3593_v31, 1  ;;  %v3610_v42 = vpop.permute.xlu1 %3609  ;;  %vm8174_vm8 = vmmov %vm8156_vm12  ;;  %v3909_v16 = vld [vmem:[#allocation3 + $0x90] sm:$0xff]  ;;  %v3905_v6 = vld [vmem:[#allocation3 + $0xe8] sm:$0xff] }
 0x593   : > { %3964 = vmatprep.subr.mxu0 %v3918_v4  ;;  %v2304_v60 = vsel %vm8169_vm2, %v6829_v55, %v7395_v50  ;;  %v3562_v13 = vrot.slane %v3554_v46, 4  ;;  %v3563_v12 = vrot.slane %v3555_v30, 4  ;;  %v3910_v55 = vld [vmem:[#allocation3 + $0xc0] sm:$0xff]  ;;  %vm7416_vm14 = vcmp.eq.s32.totalorder %v2347_v59, 1  ;;  %vm8176_vm3 = vmmov %vm8174_vm8  ;;  %v7424_v36 = vpop.permute.xlu0 %2367  ;;  %v3898_v22 = vld [vmem:[#allocation3 + $0x188] sm:$0xff] }
 0x594   : > { %3965 = vmatpush1.msra.mxu0 %v3917_v23  ;;  %v2312_v19 = vsel %vm7385_vm7, %v2304_v60, 0.0  ;;  %v3615_v0 = vsel %vm8174_vm8, %v8067_v58, %v3610_v42  ;;  %v3616_v17 = vsel %vm8176_vm3, %v3610_v42, %v8175_v49  ;;  %vm8177_vm11 = vcmask 1031168   ;;  %v3906_v58 = vld [vmem:[#allocation3 + $0xf8] sm:$0xff]  ;;  %v3897_v63 = vld [vmem:[#allocation3 + $0xe0] sm:$0xff]  ;;  %v3894_v15 = vld [vmem:[#allocation3 + $0x150] sm:$0xff] }
 0x595   : > { %3966 = vmatprep.subr.mxu0 %v3914_v56  ;;  %v2320_v5 = vrot.slane %v2312_v19, 4  ;;  %3570 = vst [vmem:[#allocation3 + $0x160] sm:$0xf0] %v3562_v13  ;;  %3571 = vst [vmem:[#allocation3 + $0x20] sm:$0xf0] %v3563_v12  ;;  %v3623_v34 = vsel %vm7397_vm5, %v3615_v0, 0.0  ;;  %v2373_v37 = vsel %vm8177_vm11, %v6880_v48, %v7424_v36  ;;  %v2408_v18 = vrot.slane %v8126_v2, %v4784_v28 }
 0x596   : > { %3967 = vmatpush1.msra.mxu0 %v3913_v41  ;;  %v3624_v29 = vsel %vm7408_vm9, %v3616_v17, 0.0  ;;  %v3931_v47 = vld [vmem:[#allocation3 + $0x88] sm:$0xff]  ;;  %3627 = vst [vmem:[#allocation3 + $0xa0] sm:$0xf] %v3623_v34  ;;  %v2381_v57 = vsel %vm7416_vm14, %v2373_v37, 0.0  ;;  %vm2352_vm6 = vcmp.eq.s32.totalorder %v2339_v45, 1  ;;  %v2362_v25 = vpop.permute.xlu1 %2361  ;;  %vm8178_vm1 = vmmov %vm8177_vm11  ;;  %v2477_v2 = vrot.slane %v8140_v40, %v4784_v28 }
 0x597   : > { %3968 = vmatprep.subr.mxu0 %v3910_v55  ;;  %2328 = vst [vmem:[#allocation3 + $0xd8] sm:$0xf0] %v2320_v5  ;;  %v3932_v38 = vld [vmem:[#allocation3 + $0x170] sm:$0xff]  ;;  %3628 = vst [vmem:[#allocation3 + $0x158] sm:$0xf] %v3624_v29  ;;  %v3902_v48 = vld [vmem:[#allocation3 + $0x1a8] sm:$0xff]  ;;  %v2371_v21 = vsel %vm8178_vm1, %v2362_v25, %v6717_v26  ;;  %v2282_v33 = vrot.slane %v8152_v43, %v4784_v28 }
 0x598   : > { %3969 = vmatpush1.msra.mxu0 %v3909_v16  ;;  %4029 = vmatprep.subr.mxu1 %v3932_v38  ;;  %2385 = vst [vmem:[#allocation3 + $0x130] sm:$0xf] %v2381_v57  ;;  %v2379_v11 = vsel %vm2352_vm6, %v2371_v21, 0.0  ;;  %vm2412_vm10 = vcmp.eq.s32.totalorder %v2408_v18, 1  ;;  %vm8179_vm12 = vmmov %vm8164_vm0  ;;  %v3893_v26 = vld [vmem:[#allocation3 + $0x120] sm:$0xff]  ;;  %v3890_v3 = vld [vmem:[#allocation3 + $0x110] sm:$0xff] }
 0x599   : > { %3970 = vmatprep.subr.mxu0 %v3906_v58  ;;  %4030 = vmatpush1.msra.mxu1 %v3931_v47  ;;  %2383 = vst [vmem:[#allocation3 + $0x50] sm:$0xf] %v2379_v11  ;;  %vm7443_vm15 = vcmp.eq.s32.totalorder %v2477_v2, 1  ;;  %v3889_v40 = vld [vmem:[#allocation3 + $0x180] sm:$0xff]  ;;  %vm8182_vm4 = vmmov %vm8176_vm3  ;;  %vm7453_vm7 = vcmp.eq.s32.totalorder %v2282_v33, 1  ;;  %v3882_v51 = vld [vmem:[#allocation3 + $0x1b0] sm:$0xff] }
 0x59a   : > { %3971 = vmatpush1.msra.mxu0 %v3905_v6  ;;  %v2427_v8 = vpop.permute.xlu1 %2426  ;;  %v3920_v62 = vld [vmem:[#allocation3 + $0x1a0] sm:$0xff]  ;;  %v3919_v23 = vld [vmem:[#allocation3 + $0xd0] sm:$0xff]  ;;  %v3916_v60 = vld [vmem:[#allocation3 + $0x8] sm:$0xff]  ;;  %vm8186_vm13 = vcmask 883712   ;;  %vm8189_vm14 = vcmask 1043456  }
 0x59b   : > { %3972 = vmatprep.subr.mxu0 %v3902_v48  ;;  %v2431_v35 = vsel %vm8179_vm12, %v7331_v54, %v2427_v8  ;;  %v3886_v54 = vld [vmem:[#allocation3 + $0x168] sm:$0xff]  ;;  %v2200_v10 = vld [vmem:[#allocation9 + $0x4] sm:$0xf]  ;;  %v3881_v30 = vld [vmem:[#allocation3 + $0xb0] sm:$0xff] }
 0x59c   : > { %3973 = vmatpush1.msra.mxu0 %v3901_v39  ;;  %v2439_v27 = vsel %vm2412_vm10, %v2431_v35, 0.0  ;;  %v3924_v53 = vld [vmem:[#allocation3 + $0x20] sm:$0xff]  ;;  %vm8185_vm0 = vmmov %vm8169_vm2  ;;  %v3915_v14 = vld [vmem:[#allocation3 + $0x148] sm:$0xff] }
 0x59d   : > { %3974 = vmatprep.subr.mxu0 %v3898_v22  ;;  %v3927_v32 = vld [vmem:[#allocation3 + $0xa0] sm:$0xff]  ;;  %v2447_v31 = vrot.slane %v2439_v27, 4  ;;  %v3912_v12 = vld [vmem:[#allocation3 + $0xc8] sm:$0xff]  ;;  %v3908_v41 = vld [vmem:[#allocation3 + $0xb8] sm:$0xff] }
 0x59e   : > { %3975 = vmatpush1.msra.mxu0 %v3897_v63  ;;  %v3928_v1 = vld [vmem:[#allocation3 + $0x158] sm:$0xff]  ;;  %v2496_v9 = vpop.permute.xlu1 %2495  ;;  %v3923_v7 = vld [vmem:[#allocation3 + $0x160] sm:$0xff]  ;;  %vm8187_vm2 = vmmov %vm8178_vm1 }
 0x59f   : > { %3976 = vmatprep.subr.mxu0 %v3894_v15  ;;  %4031 = vmatprep.subr.mxu1 %v3928_v1  ;;  %2455 = vst [vmem:[#allocation3 + $0x48] sm:$0xf0] %v2447_v31  ;;  %v2500_v4 = vsel %vm8182_vm4, %v7362_v20, %v2496_v9  ;;  %v2351_v20 = vrot.slane %v8163_v61, %v4784_v28  ;;  %v3911_v61 = vld [vmem:[#allocation3 + $0x178] sm:$0xff]  ;;  %v3907_v45 = vld [vmem:[#allocation3 + $0x190] sm:$0xff]  ;;  %v3904_v42 = vld [vmem:[#allocation3 + $0x28] sm:$0xff] }
 0x5a0   : > { %3977 = vmatpush1.msra.mxu0 %v3893_v26  ;;  %4032 = vmatpush1.msra.mxu1 %v3927_v32  ;;  %v2508_v59 = vsel %vm7443_vm15, %v2500_v4, 0.0  ;;  %v3885_v52 = vld [vmem:[#allocation3 + $0x50] sm:$0xff]  ;;  %v3903_v55 = vld [vmem:[#allocation3 + $0x1b8] sm:$0xff]  ;;  %v3900_v24 = vld [vmem:[#allocation3 + $0x140] sm:$0xff] }
 0x5a1   : > { %3978 = vmatprep.subr.mxu0 %v3890_v3  ;;  %4033 = vmatprep.subr.mxu1 %v3924_v53  ;;  %2512 = vst [vmem:[#allocation3 + $0x98] sm:$0xf] %v2508_v59  ;;  %vm2355_vm5 = vcmp.eq.s32.totalorder %v2351_v20, 1  ;;  %v3899_v0 = vld [vmem:[#allocation3 + $0x138] sm:$0xff]  ;;  %v3896_v49 = vld [vmem:[#allocation3 + $0x60] sm:$0xff]  ;;  %v3895_v17 = vld [vmem:[#allocation3 + $0x108] sm:$0xff] }
 0x5a2   : > { %3979 = vmatpush1.msra.mxu0 %v3889_v40  ;;  %4034 = vmatpush1.msra.mxu1 %v3923_v7  ;;  %v2301_v46 = vpop.permute.xlu1 %2300  ;;  %v3887_v29 = vld [vmem:[#allocation3 + $0x130] sm:$0xff]  ;;  %v3883_v58 = vld [vmem:[#allocation3 + $0xd8] sm:$0xff]  ;;  %vm8188_vm9 = vmmov %vm8186_vm13  ;;  %v4592_v59 = vmov 1983009808  }
 0x5a3   : > { %3980 = vmatprep.subr.mxu0 %v3886_v54  ;;  %4035 = vmatprep.subr.mxu1 %v3920_v62  ;;  %v2305_v56 = vsel %vm8185_vm0, %v7395_v50, %v2301_v46  ;;  %vm8190_vm8 = vmmov %vm8189_vm14 }
 0x5a4   : > { %3981 = vmatpush1.msra.mxu0 %v3885_v52  ;;  %4036 = vmatpush1.msra.mxu1 %v3919_v23  ;;  %v2313_v13 = vsel %vm7453_vm7, %v2305_v56, 0.0  ;;  %vm8191_vm3 = vmmov %vm8190_vm8  ;;  %v4146_v52 = vunpack.c.l.s4 %v4592_v59 }
 0x5a5   : > { %3982 = vmatprep.subr.mxu0 %v3882_v51  ;;  %4037 = vmatprep.subr.mxu1 %v3916_v60  ;;  %v2321_v28 = vrot.slane %v2313_v13, 4  ;;  %vm8192_vm11 = vmmov %vm8191_vm3 }
 0x5a6   : > { %3983 = vmatpush1.msra.mxu0 %v3881_v30  ;;  %4038 = vmatpush1.msra.mxu1 %v3915_v14  ;;  %v2370_v19 = vpop.permute.xlu1 %2369  ;;  %vm8193_vm6 = vmmov %vm8191_vm3  ;;  %v4147_v62 = vunpack.c.0.s8 %v4146_v52  ;;  %v8197_v14 = vld [vmem:[#allocation15_spill] sm:$0xff] }
 0x5a7   : > { %4289 = vmatmul.mubr.msk.f32.vlgmr.msra.gmra.mxu0 %vm8186_vm13, %v2200_v10  ;;  %4039 = vmatprep.subr.mxu1 %v3912_v12  ;;  %2329 = vst [vmem:[#allocation3 + $0x18] sm:$0xf0] %v2321_v28  ;;  %v2374_v50 = vsel %vm8187_vm2, %v7424_v36, %v2370_v19  ;;  %v3891_v36 = vld [vmem:[#allocation3 + $0x118] sm:$0xff]  ;;  %vm8194_vm1 = vmmov %vm8191_vm3 }
 0x5a8   : > { %4040 = vmatpush1.msra.mxu1 %v3911_v61  ;;  %v2382_v5 = vsel %vm2355_vm5, %v2374_v50, 0.0  ;;  %v3892_v16 = vld [vmem:[#allocation3 + $0x98] sm:$0xff]  ;;  %vm8195_vm10 = vmmov %vm8194_vm1  ;;  %v4150_v13 = vsub.s32 %v4147_v62, %v8197_v14 }
 0x5a9   : > { %4041 = vmatprep.subr.mxu1 %v3908_v41  ;;  %2386 = vst [vmem:[#allocation3 + $0x48] sm:$0xf] %v2382_v5  ;;  %vm8196_vm12 = vmmov %vm8194_vm1 }
 0x5aa   : > { %4042 = vmatpush1.msra.mxu1 %v3907_v45 }
 0x5ab   : > { %4043 = vmatprep.subr.mxu1 %v3904_v42 }
 0x5ac   : > { %4044 = vmatpush1.msra.mxu1 %v3903_v55 }
 0x5ad   : > { %4045 = vmatprep.subr.mxu1 %v3900_v24 }
 0x5ae   : > { %4046 = vmatpush1.msra.mxu1 %v3899_v0  ;;  %v3884_v37 = vld [vmem:[#allocation3 + $0x18] sm:$0xff] }
 0x5af   : > { %4047 = vmatprep.subr.mxu1 %v3896_v49 }
 0x5b0   : > { %4048 = vmatpush1.msra.mxu1 %v3895_v17  ;;  %v3888_v34 = vld [vmem:[#allocation3 + $0x48] sm:$0xff] }
 0x5b1   : > { %4049 = vmatprep.subr.mxu1 %v3892_v16 }
 0x5b2   : > { %4050 = vmatpush1.msra.mxu1 %v3891_v36 }
 0x5b3   : > { %4051 = vmatprep.subr.mxu1 %v3888_v34 }
 0x5b4   : > { %4052 = vmatpush1.msra.mxu1 %v3887_v29 }
 0x5b5   : > { %4053 = vmatprep.subr.mxu1 %v3884_v37 }
 0x5b6   : > { %4054 = vmatpush1.msra.mxu1 %v3883_v58 }
 0x5b7   : > { %4292 = vmatmul.mubr.msk.f32.vlgmr.msra.gmra.mxu1 %vm8188_vm9, %v2200_v10 }
 0x667   : > { %v4018_v38 = vpop.f32.mrf.mxu0 }
 0x668   : > { %v4103_v57 = vmul.f32 %v4018_v38, %v4018_v38  ;;  %v4094_v18 = vsel %vm8189_vm14, %v4018_v38, 0.0 }
 0x669   : > { %v4020_v47 = vpop.f32.mrf.mxu0 }
 0x66a   : > { %v4104_v6 = vmul.f32 %v4020_v47, %v4020_v47  ;;  %v4095_v25 = vsel %vm8190_vm8, %v4020_v47, 0.0  ;;  %v4107_v48 = vsel %vm8191_vm3, %v4103_v57, 0.0 }
 0x66b   : > { %v4096_v39 = vadd.f32 %v4095_v25, %v4094_v18 }
 0x66c   : > { %v4108_v21 = vsel %vm8192_vm11, %v4104_v6, 0.0 }
 0x66d   : > { %v4109_v2 = vadd.f32 %v4108_v21, %v4107_v48 }
 0x677   : > { %v4089_v11 = vpop.f32.mrf.mxu1 }
 0x678   : > { %v4097_v22 = vsel %vm8193_vm6, %v4089_v11, 0.0  ;;  %v4105_v63 = vmul.f32 %v4089_v11, %v4089_v11 }
 0x679   : > { %v4098_v8 = vadd.f32 %v4097_v22, %v4096_v39  ;;  %v4091_v15 = vpop.f32.mrf.mxu1 }
 0x67a   : > { %v4110_v35 = vsel %vm8194_vm1, %v4105_v63, 0.0  ;;  %v4099_v26 = vsel %vm8195_vm10, %v4091_v15, 0.0  ;;  %v4106_v27 = vmul.f32 %v4091_v15, %v4091_v15 }
 0x67b   : > { %v4100_v3 = vadd.f32 %v4099_v26, %v4098_v8  ;;  %v4111_v1 = vadd.f32 %v4110_v35, %v4109_v2 }
 0x67c   : > { %v4112_v32 = vsel %vm8196_vm12, %v4106_v27, 0.0 }
 0x67d   : > { %4101 = vadd.xlane.f32.xlu0 %v4100_v3  ;;  %v4113_v31 = vadd.f32 %v4112_v32, %v4111_v1 }
 0x67f   : > { %4114 = vadd.xlane.f32.xlu1 %v4113_v31 }
 0x706   : > { %v4102_v44 = vpop.xlane.xlu0 %4101 }
 0x707   : > { %v4116_v40 = vmul.f32 0.001953125, %v4102_v44 }
 0x708   : > { %v4115_v33 = vpop.xlane.xlu1 %4114 }
 0x709   : > { %v4117_v9 = vmul.f32 0.001953125, %v4115_v33  ;;  %v4118_v54 = vmul.f32 %v4116_v40, %v4116_v40  ;;  %v4121_v43 = vsub.f32 %v4018_v38, %v4116_v40  ;;  %v4122_v51 = vsub.f32 %v4020_v47, %v4116_v40 }
 0x70a   : > { %v4123_v23 = vsub.f32 %v4089_v11, %v4116_v40  ;;  %v4124_v20 = vsub.f32 %v4091_v15, %v4116_v40 }
 0x70b   : > { %v4119_v53 = vsub.f32 %v4117_v9, %v4118_v54 }
 0x70d   : > { %v4120_v4 = vmax.f32 %v4119_v53, 0.0 }
 0x70f   : > { %v4125_v7 = vadd.f32 1e-05, %v4120_v4 }
 0x711   : > { %4408 = vrsqrt.f32 %v4125_v7 }
 0x71e   : > { %v4409_v10 = vpop.eup %4408 }
 0x71f   : > { %v4127_v46 = vmul.f32 %v4409_v10, %v4121_v43  ;;  %v4128_v30 = vmul.f32 %v4409_v10, %v4122_v51  ;;  %v4129_v60 = vmul.f32 %v4409_v10, %v4123_v23  ;;  %v4130_v56 = vmul.f32 %v4409_v10, %v4124_v20 }
 0x721   : > { %v4131_v12 = vmax.f32 %v4127_v46, 0.0  ;;  %v4132_v28 = vmax.f32 %v4128_v30, 0.0  ;;  %v4133_v61 = vmax.f32 %v4129_v60, 0.0  ;;  %v4134_v19 = vmax.f32 %v4130_v56, 0.0 }
 0x723   : > { %v4293_v41 = vpack.c.bf16 %v4132_v28, %v4131_v12  ;;  %v4294_v50 = vpack.c.bf16 %v4134_v19, %v4133_v61 }
 0x725   : > { %v4151_v45 = vrot.slane %v4293_v41, %v4150_v13  ;;  %v4158_v5 = vrot.slane %v4294_v50, %v4150_v13 }
 0x727   : > { %v4159_v42 = vcombine.low %v4151_v45, %v4158_v5 }
 0x729   : > { %4161 = vst [vmem:[%s215_s30] sm:$0xff] %v4159_v42 }
 0x72a   : > { %4504 = shalt.err (!%p4501_p5)
}
 0x72b   : > { %s4505_s26 = scalar_lea.hbm %s4175_s11, 128  ;;  %s4509_s6 = scalar_lea.hbm %s7515_s3, 256 }
 0x72c   : > { %p4506_p10 = scmp.ne.s32.totalorder %s4175_s11, %s4505_s26  ;;  %p4510_p4 = scmp.lt.s32.totalorder %s4175_s11, %s7515_s3 }
 0x72d   : > { %p4511_p8 = scmp.lt.s32.totalorder %s4509_s6, %s4505_s26 }
 0x72e   : > { %p4507_p1 = pnand %p4506_p10, %p8198_p2 }
 0x72f   : > { %p4512_p7 = por %p4511_p8, %p4510_p4 }
 0x730   : > { %p4508_p0 = pneg %p4507_p1 }
 0x732   : > { %p4513_p11 = pnand %p4512_p7, %p4508_p0 }
 0x734   : > { %4516 = shalt.err (!%p4513_p11)
}
 0x735   : > { %4312 = dma.vmem_to_hbm [thread:$0]  (%p8198_p2), %s4178_s5, 128, %s4175_s11, %s4163_s23  }
 0x736 PF: > { %s4189_s20 = sand.u32 1, %s4551_s12   ;;  %p8199_p6 = scmp.ne.s32.totalorder %s7590_s19, 0 }
 0x737   : > { %p8200_p12 = scmp.ge.s32.totalorder %s4563_s15, 2  ;;  %s4190_s28 = scalar_lea.sflag [#allocation6], %s4189_s20 }
 0x739   : > { %p4326_p3 = pnand %p8200_p12, %p8199_p6 }
 0x73b   : > { %p4327_p9 = pneg %p4326_p3 }
 0x73d   : > { %4546 = dma.done.wait (%p4327_p9), %s4190_s28, 128  }
 0x73e   : > { %4548 = vsyncadd (%p4327_p9), %s4190_s28, 4294967168  ;;  %p17_p13 = scmp.ge.s32.totalorder %s4686_s9, 4   ;;  %s8201_s12 = smov %s4555_s13 }
 0x73f   : > { %s8202_s13 = smov %s4559_s14  ;;  %s8203_s14 = smov %s4695_s17 }
 0x740   : > { %s8204_s15 = smov %s4686_s9  ;;  %19 = sbr.rel (!%p17_p13) target bundleno = 6 (0x6), region = 113 }
 0x745   :  { %4195 = vsyncpa [#allocation5], 1 }
 0x746   :  { %4197 = vsyncpa [#allocation5 + $0x1], 1 }
 0x747   :  { %4198 = vsyncpa [#allocation8], 1 }
 0x748   :  { %4200 = vsyncpa [#allocation8 + $0x1], 1 }
 0x749   :  { %4201 = vsyncpa [#allocation6], 1 }
 0x74a   :  { %4203 = vsyncpa [#allocation6 + $0x1], 1 }

</bundles_post_ra>
